<compile_context>
chip_gen: v5e
topology: v5e:2x2
jax: 0.10.0
libtpu: 0.0.40
codegen_flags: <defaults>
</compile_context>

<pallas_src>
import functools

import jax
import jax.numpy as jnp
from jax import lax
from jax.experimental import pallas as pl
from jax.experimental.pallas import tpu as pltpu

_VMEM_LIMIT = 32 * 1024 * 1024  # explicit scoped-VMEM budget, safe on v5e/v6e/v7x


def _round_up(x, m):
    return ((x + m - 1) // m) * m


def _choose_tile(size, max_tile, align):
    """Full size if it fits, else the largest `align`-multiple divisor <= max_tile.

    Falls back to the full size if no aligned divisor exists (fine at the
    padded sizes used here: M is a multiple of 8, N of 128/512)."""
    if size <= max_tile:
        return size
    t = (max_tile // align) * align
    while t >= align:
        if size % t == 0:
            return t
        t -= align
    return size


# ----------------------------------------------------------------------------
# Blocked linear kernel:  (M, K) @ (K, N) + b   (lane-dense output)
#   * grid = (N//tn, M//tm, K//tk): N (vocab) OUTER so the big weight tile is
#     fetched once per N tile and stays resident while activation tiles stream;
#     K is the innermost reduction axis with an f32 VMEM accumulator.
#   * weight is bf16, activation cast to bf16 at the dot; f32 accumulation.
# Used for: hoisted GRU input projections, decoder context projection, and the
# flattened (Bp*T, Hp) @ (Hp, Vp) output Dense.
# ----------------------------------------------------------------------------
def linear_kernel(x_ref, w_ref, b_ref, o_ref, acc_ref):
    k = pl.program_id(2)

    @pl.when(k == 0)
    def _():
        acc_ref[...] = jnp.zeros_like(acc_ref)

    acc_ref[...] += jnp.dot(x_ref[...].astype(jnp.bfloat16), w_ref[...],
                            preferred_element_type=jnp.float32)

    @pl.when(k == pl.num_programs(2) - 1)
    def _():
        o_ref[...] = acc_ref[...] + b_ref[...]


def linear(x, w, b, *, max_tm=512, max_tn=512, max_tk=1024):
    """x (M,K) f32, w (K,N) bf16, b (1,N) f32  ->  (M,N) f32."""
    M, K = x.shape
    K2, N = w.shape
    assert K == K2 and b.shape == (1, N)
    tm = _choose_tile(M, max_tm, 8)
    tn = _choose_tile(N, max_tn, 128)
    tk = _choose_tile(K, max_tk, 128)
    grid = (N // tn, M // tm, K // tk)          # N outer, M inner, K reduction
    return pl.pallas_call(
        linear_kernel,
        out_shape=jax.ShapeDtypeStruct((M, N), jnp.float32),
        grid_spec=pltpu.PrefetchScalarGridSpec(
            num_scalar_prefetch=0,
            grid=grid,
            in_specs=[
                pl.BlockSpec((tm, tk), lambda j, i, k: (i, k)),
                pl.BlockSpec((tk, tn), lambda j, i, k: (k, j)),   # resident across i
                pl.BlockSpec((1, tn), lambda j, i, k: (0, j)),
            ],
            out_specs=pl.BlockSpec((tm, tn), lambda j, i, k: (i, j)),
            scratch_shapes=[pltpu.VMEM((tm, tn), jnp.float32)],
        ),
        compiler_params=pltpu.CompilerParams(
            dimension_semantics=("parallel", "parallel", "arbitrary"),
            vmem_limit_bytes=_VMEM_LIMIT),
    )(x, w, b)


# ----------------------------------------------------------------------------
# GRU recurrence kernel, pipelined over (batch blocks, time blocks).
# PyTorch nn.GRU semantics, gate order (r, z, n):
#   r = sigmoid(xp_r + h W_hr)            xp_r = x W_ir + b_ir + b_hr (+ctx)
#   z = sigmoid(xp_z + h W_hz)            xp_z = x W_iz + b_iz + b_hz (+ctx)
#   n = tanh   (xp_n + r * (h W_hn + b_hn))   xp_n = x W_in + b_in (+ctx)
#   h' = (1 - z) * n + z * h
# xproj (T, Bp, 3Hp) is the pre-computed input projection; the decoder's
# time-invariant context projection (Bp, 3Hp) is added as a constant inside the
# recurrence; the encoder path omits it entirely (has_ctx=False).
# The hidden state is carried across time blocks in a VMEM scratch and within a
# block as a fori_loop value (no per-step scratch round trip).
# ----------------------------------------------------------------------------
def gru_kernel(*refs, has_ctx):
    if has_ctx:
        xproj_ref, ctx_ref, h0_ref, whh_ref, bhn_ref, out_ref, h_scr = refs
    else:
        xproj_ref, h0_ref, whh_ref, bhn_ref, out_ref, h_scr = refs
        ctx_ref = None

    t_blk_idx = pl.program_id(1)

    @pl.when(t_blk_idx == 0)            # new batch block: reset the carry
    def _():
        h_scr[...] = h0_ref[...]

    T_blk = xproj_ref.shape[0]
    Hp = h0_ref.shape[-1]
    whh = whh_ref[...]                  # bf16 (Hp, 3Hp)
    bhn = bhn_ref[...]                  # f32  (1, Hp)
    ctx = ctx_ref[...] if has_ctx else None

    def step(t, h):
        gh = jnp.dot(h.astype(jnp.bfloat16), whh,
                     preferred_element_type=jnp.float32)      # (Bblk, 3Hp)
        xp = xproj_ref[t]
        if has_ctx:
            xp = xp + ctx
        # Gate slices are 128-lane aligned (Hp is a multiple of 128).
        rz = jax.nn.sigmoid(xp[:, :2 * Hp] + gh[:, :2 * Hp])
        r = rz[:, :Hp]
        z = rz[:, Hp:]
        n = jnp.tanh(xp[:, 2 * Hp:] + r * (gh[:, 2 * Hp:] + bhn))
        h_new = (1.0 - z) * n + z * h
        out_ref[t] = h_new
        return h_new

    # Short fixed chunk: full unroll gives the LLO scheduler visibility without
    # exploding code size over the whole sequence.
    h = lax.fori_loop(0, T_blk, step, h_scr[...], unroll=True)
    h_scr[...] = h                      # carry to the next time block


def gru_recurrence(xproj, ctx, h0, w_hh, b_hn, *, t_blk=4):
    """xproj (T,Bp,3Hp) f32, ctx (Bp,3Hp) f32 or None, h0 (Bp,Hp) f32,
    w_hh (Hp,3Hp) bf16, b_hn (1,Hp) f32  ->  (T,Bp,Hp) f32."""
    T, Bp, threeHp = xproj.shape
    Hp = h0.shape[-1]
    has_ctx = ctx is not None

    t_blk = min(t_blk, T)
    while T % t_blk:
        t_blk -= 1
    # Split the batch across the two v7x TensorCores when it is big enough.
    b_blk = Bp // 2 if (Bp >= 16 and Bp % 16 == 0) else Bp
    grid = (Bp // b_blk, T // t_blk)

    in_specs = [pl.BlockSpec((t_blk, b_blk, threeHp), lambda b, t: (t, b, 0))]
    inputs = [xproj]
    if has_ctx:
        in_specs.append(pl.BlockSpec((b_blk, threeHp), lambda b, t: (b, 0)))
        inputs.append(ctx)
    in_specs += [
        pl.BlockSpec((b_blk, Hp), lambda b, t: (b, 0)),        # h0
        pl.BlockSpec((Hp, threeHp), lambda b, t: (0, 0)),      # W_hh (resident)
        pl.BlockSpec((1, Hp), lambda b, t: (0, 0)),            # b_hn
    ]
    inputs += [h0, w_hh, b_hn]

    return pl.pallas_call(
        functools.partial(gru_kernel, has_ctx=has_ctx),
        out_shape=jax.ShapeDtypeStruct((T, Bp, Hp), jnp.float32),
        grid_spec=pltpu.PrefetchScalarGridSpec(
            num_scalar_prefetch=0,
            grid=grid,
            in_specs=in_specs,
            out_specs=pl.BlockSpec((t_blk, b_blk, Hp), lambda b, t: (t, b, 0)),
            scratch_shapes=[pltpu.VMEM((b_blk, Hp), jnp.float32)],
        ),
        compiler_params=pltpu.CompilerParams(
            dimension_semantics=("parallel", "arbitrary"),
            vmem_limit_bytes=_VMEM_LIMIT),
    )(*inputs)


# ----------------------------------------------------------------------------
# Parameter construction (deterministic).  Raw parameters follow the PyTorch
# layout (gate order r, z, n); they are then fused/padded into the kernel
# layout: gates stacked along the lane axis, H padded to Hp, V padded to a
# multiple of 512 (so the dense tile never degenerates to 128 lanes).  Padded
# weight rows/cols and bias lanes are zero, so padded hidden lanes stay exactly
# zero through the recurrence and the math matches the unpadded model.
# Fused weights are stored in bf16 (MXU-native); biases stay f32.
# ----------------------------------------------------------------------------
def init_params(key, vocab_src, vocab_tgt, embed, hidden):
    H = hidden
    Hp = _round_up(H, 128)
    Vp = _round_up(vocab_tgt, 512)

    def u(k, shape, scale=0.1):
        return jax.random.uniform(k, shape, jnp.float32, -scale, scale)

    ks = jax.random.split(key, 12)
    enc_emb = u(ks[0], (vocab_src, embed))
    enc_w_ih = u(ks[1], (3, embed, H))
    enc_w_hh = u(ks[2], (3, H, H))
    enc_b_ih = u(ks[3], (3, H))
    enc_b_hh = u(ks[4], (3, H))
    dec_emb = u(ks[5], (vocab_tgt, embed))
    dec_w_ih = u(ks[6], (3, embed + H, H))      # GRU input = concat(emb, context)
    dec_w_hh = u(ks[7], (3, H, H))
    dec_b_ih = u(ks[8], (3, H))
    dec_b_hh = u(ks[9], (3, H))
    dense_w = u(ks[10], (H, vocab_tgt))
    dense_b = u(ks[11], (1, vocab_tgt))

    def fuse_w(w3, kp):
        # (3, K, H) -> (kp, 3*Hp) bf16: gates stacked on the lane axis, zero padded.
        _, k, _ = w3.shape
        w3 = jnp.pad(w3, ((0, 0), (0, kp - k), (0, Hp - H)))
        return jnp.transpose(w3, (1, 0, 2)).reshape(kp, 3 * Hp).astype(jnp.bfloat16)

    def fuse_b(b3):
        return jnp.pad(b3, ((0, 0), (0, Hp - H))).reshape(1, 3 * Hp)

    zero_h = jnp.zeros((H,), jnp.float32)
    # Pre-add b_ih + b_hh for the r and z gates; b_hn stays separate.
    enc_bias_x = fuse_b(enc_b_ih + jnp.stack([enc_b_hh[0], enc_b_hh[1], zero_h]))
    dec_bias_x = fuse_b(dec_b_ih + jnp.stack([dec_b_hh[0], dec_b_hh[1], zero_h]))

    return {
        "enc_emb": enc_emb,
        "enc_w_ih": fuse_w(enc_w_ih, embed),                   # (E, 3Hp)  bf16
        "enc_w_hh": fuse_w(enc_w_hh, Hp),                      # (Hp, 3Hp) bf16
        "enc_bias_x": enc_bias_x,                              # (1, 3Hp)  f32
        "enc_b_hn": jnp.pad(enc_b_hh[2:3], ((0, 0), (0, Hp - H))),  # (1, Hp)
        "dec_emb": dec_emb,
        "dec_w_ih_x": fuse_w(dec_w_ih[:, :embed, :], embed),   # (E, 3Hp)  bf16
        "dec_w_ih_c": fuse_w(dec_w_ih[:, embed:, :], Hp),      # (Hp, 3Hp) bf16
        "dec_w_hh": fuse_w(dec_w_hh, Hp),                      # (Hp, 3Hp) bf16
        "dec_bias_x": dec_bias_x,                              # (1, 3Hp)  f32
        "dec_b_hn": jnp.pad(dec_b_hh[2:3], ((0, 0), (0, Hp - H))),  # (1, Hp)
        "dense_w": jnp.pad(dense_w, ((0, Hp - H), (0, Vp - vocab_tgt))
                           ).astype(jnp.bfloat16),             # (Hp, Vp) bf16
        "dense_b": jnp.pad(dense_b, ((0, 0), (0, Vp - vocab_tgt))),  # (1, Vp)
    }


# ----------------------------------------------------------------------------
# EncoderDecoder forward
# ----------------------------------------------------------------------------
def _embed_time_major(emb_table, tokens_bt, Bp):
    """(B, T) int32 -> (T, Bp, E) f32, gathered directly in time-major order."""
    # TODO(synk): the embedding gather itself stays in XLA (jnp.take); a Pallas
    # row-gather via pl.Element BlockSpecs is possible but not the hot path.
    B, T = tokens_bt.shape
    emb = jnp.take(emb_table, tokens_bt.T, axis=0)             # (T, B, E)
    return jnp.pad(emb, ((0, 0), (0, Bp - B), (0, 0)))         # (T, Bp, E)


def encoder_forward(params, enc_X):
    B, T = enc_X.shape
    Bp = _round_up(max(B, 8), 8)
    Hp = params["enc_w_hh"].shape[0]
    E = params["enc_emb"].shape[1]

    x_tbe = _embed_time_major(params["enc_emb"], enc_X, Bp)

    # Hoisted input projection: one big (T*Bp, E) @ (E, 3Hp) matmul.
    xproj = linear(x_tbe.reshape(T * Bp, E),
                   params["enc_w_ih"], params["enc_bias_x"]).reshape(T, Bp, 3 * Hp)

    h0 = jnp.zeros((Bp, Hp), jnp.float32)
    outs = gru_recurrence(xproj, None, h0,
                          params["enc_w_hh"], params["enc_b_hn"])
    return outs, outs[-1]                                      # ((T,Bp,Hp), (Bp,Hp))


def decoder_init_state(enc_outputs):
    # d2l Seq2SeqDecoder.init_state: the encoder's final hidden state.
    return enc_outputs[1]                                      # (Bp, Hp)


def decoder_forward(params, dec_X, state, *, hidden, vocab_tgt):
    B, T = dec_X.shape
    Bp, Hp = state.shape
    E = params["dec_emb"].shape[1]

    x_tbe = _embed_time_major(params["dec_emb"], dec_X, Bp)

    xproj = linear(x_tbe.reshape(T * Bp, E),
                   params["dec_w_ih_x"], params["dec_bias_x"]).reshape(T, Bp, 3 * Hp)

    # The d2l decoder concatenates the (time-invariant) context every step;
    # algebraically that is a constant term in the input projection — compute
    # it once instead of T times.
    zero_b = jnp.zeros((1, 3 * Hp), jnp.float32)
    ctx_proj = linear(state, params["dec_w_ih_c"], zero_b)     # (Bp, 3Hp)

    outs = gru_recurrence(xproj, ctx_proj, state,
                          params["dec_w_hh"], params["dec_b_hn"])   # (T, Bp, Hp)

    # Batch-major BEFORE the vocab-sized dense: transposing the (T,Bp,Hp)
    # hidden states is ~V/Hp fewer bytes than transposing (T,B,V) logits after,
    # and the dense output then reshapes straight to (B, T, V).
    outs_bm = jnp.transpose(outs, (1, 0, 2))                   # (Bp, T, Hp)
    logits = linear(outs_bm.reshape(Bp * T, Hp),
                    params["dense_w"], params["dense_b"])
    logits = logits.reshape(Bp, T, -1)[:B, :, :vocab_tgt]      # (B, T, V)
    new_state = outs[-1][:B, :hidden][None]                    # (1, B, H)
    return logits, new_state


@functools.partial(jax.jit, static_argnames=("hidden", "vocab_tgt"))
def encoder_decoder_forward(params, enc_X, dec_X, *, hidden, vocab_tgt):
    enc_outputs = encoder_forward(params, enc_X)
    dec_state = decoder_init_state(enc_outputs)
    return decoder_forward(params, dec_X, dec_state,
                           hidden=hidden, vocab_tgt=vocab_tgt)


# ----------------------------------------------------------------------------
if __name__ == "__main__":
    B, T_enc, T_dec = 2, 8, 8
    VOCAB_SRC, VOCAB_TGT = 16, 16
    EMBED, HIDDEN = 16, 32

    key = jax.random.PRNGKey(0)
    k_params, k_enc, k_dec = jax.random.split(key, 3)

    params = init_params(k_params, VOCAB_SRC, VOCAB_TGT, EMBED, HIDDEN)
    enc_X = jax.random.randint(k_enc, (B, T_enc), 0, VOCAB_SRC, dtype=jnp.int32)
    dec_X = jax.random.randint(k_dec, (B, T_dec), 0, VOCAB_TGT, dtype=jnp.int32)

    output, state = encoder_decoder_forward(params, enc_X, dec_X,
                                            hidden=HIDDEN, vocab_tgt=VOCAB_TGT)
    jax.block_until_ready((output, state))

    assert output.shape == (B, T_dec, VOCAB_TGT), output.shape
    assert state.shape == (1, B, HIDDEN), state.shape
    assert bool(jnp.all(jnp.isfinite(output))) and bool(jnp.all(jnp.isfinite(state)))
    print("KERNEL_OK")
</pallas_src>

<mosaic_0001>
module attributes {stable_mosaic.version = 11 : i64} {
  func.func @linear_kernel(%arg0: i32, %arg1: i32, %arg2: i32, %arg3: memref<64x16xf32, #tpu.memory_space<vmem>>, %arg4: memref<16x384xbf16, #tpu.memory_space<vmem>>, %arg5: memref<1x384xf32, #tpu.memory_space<vmem>>, %arg6: memref<64x384xf32, #tpu.memory_space<vmem>>, %arg7: memref<64x384xf32, #tpu.memory_space<vmem>>) attributes {dimension_semantics = [#tpu.dimension_semantics<parallel>, #tpu.dimension_semantics<parallel>, #tpu.dimension_semantics<arbitrary>], iteration_bounds = array<i64: 1, 1, 1>, scalar_prefetch = 0 : i64, scratch_operands = 1 : i64, tpu.core_type = #tpu.core_type<tc>, window_params = [{transform_indices = @transform_0, window_bounds = array<i64: 64, 16>}, {transform_indices = @transform_1, window_bounds = array<i64: 16, 384>}, {transform_indices = @transform_2, window_bounds = array<i64: 1, 384>}, {transform_indices = @transform_3, window_bounds = array<i64: 64, 384>}]} {
    %c0_i32 = arith.constant 0 : i32
    %0 = arith.cmpi eq, %arg2, %c0_i32 : i32
    %1 = arith.extui %0 : i1 to i32
    %c0_i32_0 = arith.constant 0 : i32
    %2 = arith.cmpi ne, %1, %c0_i32_0 : i32
    scf.if %2 {
      %cst_10 = arith.constant 0.000000e+00 : f32
      %13 = vector.broadcast %cst_10 : f32 to vector<64x384xf32>
      %c0_11 = arith.constant 0 : index
      %c0_12 = arith.constant 0 : index
      %14 = vector.load %arg7[%c0_11, %c0_12] : memref<64x384xf32, #tpu.memory_space<vmem>>, vector<64x384xf32>
      tpu.vector_store %arg7[%c0_11, %c0_12], %13 {strides = array<i32>} : memref<64x384xf32, #tpu.memory_space<vmem>>, vector<64x384xf32>,
    } else {
    }
    %c0 = arith.constant 0 : index
    %c0_1 = arith.constant 0 : index
    %3 = vector.load %arg7[%c0, %c0_1] : memref<64x384xf32, #tpu.memory_space<vmem>>, vector<64x384xf32>
    %c0_2 = arith.constant 0 : index
    %c0_3 = arith.constant 0 : index
    %4 = vector.load %arg3[%c0_2, %c0_3] : memref<64x16xf32, #tpu.memory_space<vmem>>, vector<64x16xf32>
    %5 = arith.truncf %4 : vector<64x16xf32> to vector<64x16xbf16>
    %c0_4 = arith.constant 0 : index
    %c0_5 = arith.constant 0 : index
    %6 = vector.load %arg4[%c0_4, %c0_5] : memref<16x384xbf16, #tpu.memory_space<vmem>>, vector<16x384xbf16>
    %cst = arith.constant dense<0.000000e+00> : vector<64x384xf32>
    %7 = tpu.matmul %5, %6, %cst {dimension_numbers = #tpu.dot_dimension_numbers<[1], [0], [0], [1], [0, 0, 1, 1], [], []>} : vector<64x16xbf16>, vector<16x384xbf16>, vector<64x384xf32> -> vector<64x384xf32>
    %8 = arith.addf %3, %7 : vector<64x384xf32>
    %c0_6 = arith.constant 0 : index
    %c0_7 = arith.constant 0 : index
    %9 = vector.load %arg7[%c0_6, %c0_7] : memref<64x384xf32, #tpu.memory_space<vmem>>, vector<64x384xf32>
    tpu.vector_store %arg7[%c0_6, %c0_7], %8 {strides = array<i32>} : memref<64x384xf32, #tpu.memory_space<vmem>>, vector<64x384xf32>,
    %c0_i32_8 = arith.constant 0 : i32
    %10 = arith.cmpi eq, %arg2, %c0_i32_8 : i32
    %11 = arith.extui %10 : i1 to i32
    %c0_i32_9 = arith.constant 0 : i32
    %12 = arith.cmpi ne, %11, %c0_i32_9 : i32
    scf.if %12 {
      %c0_10 = arith.constant 0 : index
      %c0_11 = arith.constant 0 : index
      %13 = vector.load %arg7[%c0_10, %c0_11] : memref<64x384xf32, #tpu.memory_space<vmem>>, vector<64x384xf32>
      %c0_12 = arith.constant 0 : index
      %c0_13 = arith.constant 0 : index
      %14 = vector.load %arg5[%c0_12, %c0_13] : memref<1x384xf32, #tpu.memory_space<vmem>>, vector<1x384xf32>
      %15 = vector.broadcast %14 : vector<1x384xf32> to vector<64x384xf32>
      %16 = arith.addf %13, %15 : vector<64x384xf32>
      %c0_14 = arith.constant 0 : index
      %c0_15 = arith.constant 0 : index
      %17 = vector.load %arg6[%c0_14, %c0_15] : memref<64x384xf32, #tpu.memory_space<vmem>>, vector<64x384xf32>
      tpu.vector_store %arg6[%c0_14, %c0_15], %16 {strides = array<i32>} : memref<64x384xf32, #tpu.memory_space<vmem>>, vector<64x384xf32>,
    } else {
    }
    return
  }
  func.func @transform_0(%arg0: i32, %arg1: i32, %arg2: i32) -> (i32, i32) {
    %c0_i32 = arith.constant 0 : i32
    return %arg1, %arg2 : i32, i32
  }
  func.func @transform_1(%arg0: i32, %arg1: i32, %arg2: i32) -> (i32, i32) {
    %c0_i32 = arith.constant 0 : i32
    return %arg2, %arg0 : i32, i32
  }
  func.func @transform_2(%arg0: i32, %arg1: i32, %arg2: i32) -> (i32, i32) {
    %c0_i32 = arith.constant 0 : i32
    %c0_i32_0 = arith.constant 0 : i32
    return %c0_i32, %arg0 : i32, i32
  }
  func.func @transform_3(%arg0: i32, %arg1: i32, %arg2: i32) -> (i32, i32) {
    %c0_i32 = arith.constant 0 : i32
    return %arg1, %arg0 : i32, i32
  }
}

module attributes {stable_mosaic.version = 11 : i64} {
  func.func @linear_kernel(%arg0: i32, %arg1: i32, %arg2: i32, %arg3: memref<8x128xf32, #tpu.memory_space<vmem>>, %arg4: memref<128x384xbf16, #tpu.memory_space<vmem>>, %arg5: memref<1x384xf32, #tpu.memory_space<vmem>>, %arg6: memref<8x384xf32, #tpu.memory_space<vmem>>, %arg7: memref<8x384xf32, #tpu.memory_space<vmem>>) attributes {dimension_semantics = [#tpu.dimension_semantics<parallel>, #tpu.dimension_semantics<parallel>, #tpu.dimension_semantics<arbitrary>], iteration_bounds = array<i64: 1, 1, 1>, scalar_prefetch = 0 : i64, scratch_operands = 1 : i64, tpu.core_type = #tpu.core_type<tc>, window_params = [{transform_indices = @transform_0, window_bounds = array<i64: 8, 128>}, {transform_indices = @transform_1, window_bounds = array<i64: 128, 384>}, {transform_indices = @transform_2, window_bounds = array<i64: 1, 384>}, {transform_indices = @transform_3, window_bounds = array<i64: 8, 384>}]} {
    %c0_i32 = arith.constant 0 : i32
    %0 = arith.cmpi eq, %arg2, %c0_i32 : i32
    %1 = arith.extui %0 : i1 to i32
    %c0_i32_0 = arith.constant 0 : i32
    %2 = arith.cmpi ne, %1, %c0_i32_0 : i32
    scf.if %2 {
      %cst_10 = arith.constant 0.000000e+00 : f32
      %13 = vector.broadcast %cst_10 : f32 to vector<8x384xf32>
      %c0_11 = arith.constant 0 : index
      %c0_12 = arith.constant 0 : index
      %14 = vector.load %arg7[%c0_11, %c0_12] : memref<8x384xf32, #tpu.memory_space<vmem>>, vector<8x384xf32>
      tpu.vector_store %arg7[%c0_11, %c0_12], %13 {strides = array<i32>} : memref<8x384xf32, #tpu.memory_space<vmem>>, vector<8x384xf32>,
    } else {
    }
    %c0 = arith.constant 0 : index
    %c0_1 = arith.constant 0 : index
    %3 = vector.load %arg7[%c0, %c0_1] : memref<8x384xf32, #tpu.memory_space<vmem>>, vector<8x384xf32>
    %c0_2 = arith.constant 0 : index
    %c0_3 = arith.constant 0 : index
    %4 = vector.load %arg3[%c0_2, %c0_3] : memref<8x128xf32, #tpu.memory_space<vmem>>, vector<8x128xf32>
    %5 = arith.truncf %4 : vector<8x128xf32> to vector<8x128xbf16>
    %c0_4 = arith.constant 0 : index
    %c0_5 = arith.constant 0 : index
    %6 = vector.load %arg4[%c0_4, %c0_5] : memref<128x384xbf16, #tpu.memory_space<vmem>>, vector<128x384xbf16>
    %cst = arith.constant dense<0.000000e+00> : vector<8x384xf32>
    %7 = tpu.matmul %5, %6, %cst {dimension_numbers = #tpu.dot_dimension_numbers<[1], [0], [0], [1], [0, 0, 1, 1], [], []>} : vector<8x128xbf16>, vector<128x384xbf16>, vector<8x384xf32> -> vector<8x384xf32>
    %8 = arith.addf %3, %7 : vector<8x384xf32>
    %c0_6 = arith.constant 0 : index
    %c0_7 = arith.constant 0 : index
    %9 = vector.load %arg7[%c0_6, %c0_7] : memref<8x384xf32, #tpu.memory_space<vmem>>, vector<8x384xf32>
    tpu.vector_store %arg7[%c0_6, %c0_7], %8 {strides = array<i32>} : memref<8x384xf32, #tpu.memory_space<vmem>>, vector<8x384xf32>,
    %c0_i32_8 = arith.constant 0 : i32
    %10 = arith.cmpi eq, %arg2, %c0_i32_8 : i32
    %11 = arith.extui %10 : i1 to i32
    %c0_i32_9 = arith.constant 0 : i32
    %12 = arith.cmpi ne, %11, %c0_i32_9 : i32
    scf.if %12 {
      %c0_10 = arith.constant 0 : index
      %c0_11 = arith.constant 0 : index
      %13 = vector.load %arg7[%c0_10, %c0_11] : memref<8x384xf32, #tpu.memory_space<vmem>>, vector<8x384xf32>
      %c0_12 = arith.constant 0 : index
      %c0_13 = arith.constant 0 : index
      %14 = vector.load %arg5[%c0_12, %c0_13] : memref<1x384xf32, #tpu.memory_space<vmem>>, vector<1x384xf32>
      %15 = vector.broadcast %14 : vector<1x384xf32> to vector<8x384xf32>
      %16 = arith.addf %13, %15 : vector<8x384xf32>
      %c0_14 = arith.constant 0 : index
      %c0_15 = arith.constant 0 : index
      %17 = vector.load %arg6[%c0_14, %c0_15] : memref<8x384xf32, #tpu.memory_space<vmem>>, vector<8x384xf32>
      tpu.vector_store %arg6[%c0_14, %c0_15], %16 {strides = array<i32>} : memref<8x384xf32, #tpu.memory_space<vmem>>, vector<8x384xf32>,
    } else {
    }
    return
  }
  func.func @transform_0(%arg0: i32, %arg1: i32, %arg2: i32) -> (i32, i32) {
    %c0_i32 = arith.constant 0 : i32
    return %arg1, %arg2 : i32, i32
  }
  func.func @transform_1(%arg0: i32, %arg1: i32, %arg2: i32) -> (i32, i32) {
    %c0_i32 = arith.constant 0 : i32
    return %arg2, %arg0 : i32, i32
  }
  func.func @transform_2(%arg0: i32, %arg1: i32, %arg2: i32) -> (i32, i32) {
    %c0_i32 = arith.constant 0 : i32
    %c0_i32_0 = arith.constant 0 : i32
    return %c0_i32, %arg0 : i32, i32
  }
  func.func @transform_3(%arg0: i32, %arg1: i32, %arg2: i32) -> (i32, i32) {
    %c0_i32 = arith.constant 0 : i32
    return %arg1, %arg0 : i32, i32
  }
}

module attributes {stable_mosaic.version = 11 : i64} {
  func.func @gru_kernel(%arg0: i32, %arg1: i32, %arg2: memref<4x8x384xf32, #tpu.memory_space<vmem>>, %arg3: memref<8x128xf32, #tpu.memory_space<vmem>>, %arg4: memref<128x384xbf16, #tpu.memory_space<vmem>>, %arg5: memref<1x128xf32, #tpu.memory_space<vmem>>, %arg6: memref<4x8x128xf32, #tpu.memory_space<vmem>>, %arg7: memref<8x128xf32, #tpu.memory_space<vmem>>) attributes {dimension_semantics = [#tpu.dimension_semantics<parallel>, #tpu.dimension_semantics<arbitrary>], iteration_bounds = array<i64: 1, 2>, scalar_prefetch = 0 : i64, scratch_operands = 1 : i64, tpu.core_type = #tpu.core_type<tc>, window_params = [{transform_indices = @transform_0, window_bounds = array<i64: 4, 8, 384>}, {transform_indices = @transform_1, window_bounds = array<i64: 8, 128>}, {pipeline_mode = #tpu.pipeline_mode<synchronous>, transform_indices = @transform_2, window_bounds = array<i64: 128, 384>}, {pipeline_mode = #tpu.pipeline_mode<synchronous>, transform_indices = @transform_3, window_bounds = array<i64: 1, 128>}, {transform_indices = @transform_4, window_bounds = array<i64: 4, 8, 128>}]} {
    %c0_i32 = arith.constant 0 : i32
    %0 = arith.cmpi eq, %arg1, %c0_i32 : i32
    %1 = arith.extui %0 : i1 to i32
    %c0_i32_0 = arith.constant 0 : i32
    %2 = arith.cmpi ne, %1, %c0_i32_0 : i32
    scf.if %2 {
      %c0_36 = arith.constant 0 : index
      %c0_37 = arith.constant 0 : index
      %131 = vector.load %arg3[%c0_36, %c0_37] : memref<8x128xf32, #tpu.memory_space<vmem>>, vector<8x128xf32>
      %c0_38 = arith.constant 0 : index
      %c0_39 = arith.constant 0 : index
      %132 = vector.load %arg7[%c0_38, %c0_39] : memref<8x128xf32, #tpu.memory_space<vmem>>, vector<8x128xf32>
      tpu.vector_store %arg7[%c0_38, %c0_39], %131 {strides = array<i32>} : memref<8x128xf32, #tpu.memory_space<vmem>>, vector<8x128xf32>,
    } else {
    }
    %c0 = arith.constant 0 : index
    %c0_1 = arith.constant 0 : index
    %3 = vector.load %arg4[%c0, %c0_1] : memref<128x384xbf16, #tpu.memory_space<vmem>>, vector<128x384xbf16>
    %c0_2 = arith.constant 0 : index
    %c0_3 = arith.constant 0 : index
    %4 = vector.load %arg5[%c0_2, %c0_3] : memref<1x128xf32, #tpu.memory_space<vmem>>, vector<1x128xf32>
    %c0_4 = arith.constant 0 : index
    %c0_5 = arith.constant 0 : index
    %5 = vector.load %arg7[%c0_4, %c0_5] : memref<8x128xf32, #tpu.memory_space<vmem>>, vector<8x128xf32>
    %c0_i32_6 = arith.constant 0 : i32
    %6 = arith.truncf %5 : vector<8x128xf32> to vector<8x128xbf16>
    %cst = arith.constant dense<0.000000e+00> : vector<8x384xf32>
    %7 = tpu.matmul %6, %3, %cst {dimension_numbers = #tpu.dot_dimension_numbers<[1], [0], [0], [1], [0, 0, 1, 1], [], []>} : vector<8x128xbf16>, vector<128x384xbf16>, vector<8x384xf32> -> vector<8x384xf32>
    %8 = arith.index_cast %c0_i32_6 : i32 to index
    %c0_7 = arith.constant 0 : index
    %c0_8 = arith.constant 0 : index
    %9 = vector.load %arg2[%8, %c0_7, %c0_8] : memref<4x8x384xf32, #tpu.memory_space<vmem>>, vector<1x8x384xf32>
    %10 = vector.shape_cast %9 : vector<1x8x384xf32> to vector<8x384xf32>
    %11 = vector.extract_strided_slice %10 {offsets = [0, 0], sizes = [8, 256], strides = [1, 1]} : vector<8x384xf32> to vector<8x256xf32>
    %12 = vector.extract_strided_slice %7 {offsets = [0, 0], sizes = [8, 256], strides = [1, 1]} : vector<8x384xf32> to vector<8x256xf32>
    %13 = arith.addf %11, %12 : vector<8x256xf32>
    %14 = arith.negf %13 : vector<8x256xf32>
    %15 = math.exp %14 : vector<8x256xf32>
    %cst_9 = arith.constant 1.000000e+00 : f32
    %16 = vector.broadcast %cst_9 : f32 to vector<8x256xf32>
    %17 = arith.addf %16, %15 : vector<8x256xf32>
    %18 = arith.divf %16, %17 : vector<8x256xf32>
    %19 = vector.extract_strided_slice %18 {offsets = [0, 0], sizes = [8, 128], strides = [1, 1]} : vector<8x256xf32> to vector<8x128xf32>
    %20 = vector.extract_strided_slice %18 {offsets = [0, 128], sizes = [8, 128], strides = [1, 1]} : vector<8x256xf32> to vector<8x128xf32>
    %21 = vector.extract_strided_slice %10 {offsets = [0, 256], sizes = [8, 128], strides = [1, 1]} : vector<8x384xf32> to vector<8x128xf32>
    %22 = vector.extract_strided_slice %7 {offsets = [0, 256], sizes = [8, 128], strides = [1, 1]} : vector<8x384xf32> to vector<8x128xf32>
    %23 = vector.broadcast %4 : vector<1x128xf32> to vector<8x128xf32>
    %24 = arith.addf %22, %23 : vector<8x128xf32>
    %25 = arith.mulf %19, %24 : vector<8x128xf32>
    %26 = arith.addf %21, %25 : vector<8x128xf32>
    %27 = math.tanh %26 : vector<8x128xf32>
    %cst_10 = arith.constant 1.000000e+00 : f32
    %28 = vector.broadcast %cst_10 : f32 to vector<8x128xf32>
    %29 = arith.subf %28, %20 : vector<8x128xf32>
    %30 = arith.mulf %29, %27 : vector<8x128xf32>
    %31 = arith.mulf %20, %5 : vector<8x128xf32>
    %32 = arith.addf %30, %31 : vector<8x128xf32>
    %33 = arith.index_cast %c0_i32_6 : i32 to index
    %c0_11 = arith.constant 0 : index
    %c0_12 = arith.constant 0 : index
    %34 = vector.load %arg6[%33, %c0_11, %c0_12] : memref<4x8x128xf32, #tpu.memory_space<vmem>>, vector<1x8x128xf32>
    %35 = vector.shape_cast %34 : vector<1x8x128xf32> to vector<8x128xf32>
    %36 = vector.shape_cast %32 : vector<8x128xf32> to vector<1x8x128xf32>
    tpu.vector_store %arg6[%33, %c0_11, %c0_12], %36 {strides = array<i32>} : memref<4x8x128xf32, #tpu.memory_space<vmem>>, vector<1x8x128xf32>,
    %c1_i32 = arith.constant 1 : i32
    %37 = arith.truncf %32 : vector<8x128xf32> to vector<8x128xbf16>
    %cst_13 = arith.constant dense<0.000000e+00> : vector<8x384xf32>
    %38 = tpu.matmul %37, %3, %cst_13 {dimension_numbers = #tpu.dot_dimension_numbers<[1], [0], [0], [1], [0, 0, 1, 1], [], []>} : vector<8x128xbf16>, vector<128x384xbf16>, vector<8x384xf32> -> vector<8x384xf32>
    %39 = arith.index_cast %c1_i32 : i32 to index
    %c0_14 = arith.constant 0 : index
    %c0_15 = arith.constant 0 : index
    %40 = vector.load %arg2[%39, %c0_14, %c0_15] : memref<4x8x384xf32, #tpu.memory_space<vmem>>, vector<1x8x384xf32>
    %41 = vector.shape_cast %40 : vector<1x8x384xf32> to vector<8x384xf32>
    %42 = vector.extract_strided_slice %41 {offsets = [0, 0], sizes = [8, 256], strides = [1, 1]} : vector<8x384xf32> to vector<8x256xf32>
    %43 = vector.extract_strided_slice %38 {offsets = [0, 0], sizes = [8, 256], strides = [1, 1]} : vector<8x384xf32> to vector<8x256xf32>
    %44 = arith.addf %42, %43 : vector<8x256xf32>
    %45 = arith.negf %44 : vector<8x256xf32>
    %46 = math.exp %45 : vector<8x256xf32>
    %cst_16 = arith.constant 1.000000e+00 : f32
    %47 = vector.broadcast %cst_16 : f32 to vector<8x256xf32>
    %48 = arith.addf %47, %46 : vector<8x256xf32>
    %49 = arith.divf %47, %48 : vector<8x256xf32>
    %50 = vector.extract_strided_slice %49 {offsets = [0, 0], sizes = [8, 128], strides = [1, 1]} : vector<8x256xf32> to vector<8x128xf32>
    %51 = vector.extract_strided_slice %49 {offsets = [0, 128], sizes = [8, 128], strides = [1, 1]} : vector<8x256xf32> to vector<8x128xf32>
    %52 = vector.extract_strided_slice %41 {offsets = [0, 256], sizes = [8, 128], strides = [1, 1]} : vector<8x384xf32> to vector<8x128xf32>
    %53 = vector.extract_strided_slice %38 {offsets = [0, 256], sizes = [8, 128], strides = [1, 1]} : vector<8x384xf32> to vector<8x128xf32>
    %54 = vector.broadcast %4 : vector<1x128xf32> to vector<8x128xf32>
    %55 = arith.addf %53, %54 : vector<8x128xf32>
    %56 = arith.mulf %50, %55 : vector<8x128xf32>
    %57 = arith.addf %52, %56 : vector<8x128xf32>
    %58 = math.tanh %57 : vector<8x128xf32>
    %cst_17 = arith.constant 1.000000e+00 : f32
    %59 = vector.broadcast %cst_17 : f32 to vector<8x128xf32>
    %60 = arith.subf %59, %51 : vector<8x128xf32>
    %61 = arith.mulf %60, %58 : vector<8x128xf32>
    %62 = arith.mulf %51, %32 : vector<8x128xf32>
    %63 = arith.addf %61, %62 : vector<8x128xf32>
    %64 = arith.index_cast %c1_i32 : i32 to index
    %c0_18 = arith.constant 0 : index
    %c0_19 = arith.constant 0 : index
    %65 = vector.load %arg6[%64, %c0_18, %c0_19] : memref<4x8x128xf32, #tpu.memory_space<vmem>>, vector<1x8x128xf32>
    %66 = vector.shape_cast %65 : vector<1x8x128xf32> to vector<8x128xf32>
    %67 = vector.shape_cast %63 : vector<8x128xf32> to vector<1x8x128xf32>
    tpu.vector_store %arg6[%64, %c0_18, %c0_19], %67 {strides = array<i32>} : memref<4x8x128xf32, #tpu.memory_space<vmem>>, vector<1x8x128xf32>,
    %c2_i32 = arith.constant 2 : i32
    %68 = arith.truncf %63 : vector<8x128xf32> to vector<8x128xbf16>
    %cst_20 = arith.constant dense<0.000000e+00> : vector<8x384xf32>
    %69 = tpu.matmul %68, %3, %cst_20 {dimension_numbers = #tpu.dot_dimension_numbers<[1], [0], [0], [1], [0, 0, 1, 1], [], []>} : vector<8x128xbf16>, vector<128x384xbf16>, vector<8x384xf32> -> vector<8x384xf32>
    %70 = arith.index_cast %c2_i32 : i32 to index
    %c0_21 = arith.constant 0 : index
    %c0_22 = arith.constant 0 : index
    %71 = vector.load %arg2[%70, %c0_21, %c0_22] : memref<4x8x384xf32, #tpu.memory_space<vmem>>, vector<1x8x384xf32>
    %72 = vector.shape_cast %71 : vector<1x8x384xf32> to vector<8x384xf32>
    %73 = vector.extract_strided_slice %72 {offsets = [0, 0], sizes = [8, 256], strides = [1, 1]} : vector<8x384xf32> to vector<8x256xf32>
    %74 = vector.extract_strided_slice %69 {offsets = [0, 0], sizes = [8, 256], strides = [1, 1]} : vector<8x384xf32> to vector<8x256xf32>
    %75 = arith.addf %73, %74 : vector<8x256xf32>
    %76 = arith.negf %75 : vector<8x256xf32>
    %77 = math.exp %76 : vector<8x256xf32>
    %cst_23 = arith.constant 1.000000e+00 : f32
    %78 = vector.broadcast %cst_23 : f32 to vector<8x256xf32>
    %79 = arith.addf %78, %77 : vector<8x256xf32>
    %80 = arith.divf %78, %79 : vector<8x256xf32>
    %81 = vector.extract_strided_slice %80 {offsets = [0, 0], sizes = [8, 128], strides = [1, 1]} : vector<8x256xf32> to vector<8x128xf32>
    %82 = vector.extract_strided_slice %80 {offsets = [0, 128], sizes = [8, 128], strides = [1, 1]} : vector<8x256xf32> to vector<8x128xf32>
    %83 = vector.extract_strided_slice %72 {offsets = [0, 256], sizes = [8, 128], strides = [1, 1]} : vector<8x384xf32> to vector<8x128xf32>
    %84 = vector.extract_strided_slice %69 {offsets = [0, 256], sizes = [8, 128], strides = [1, 1]} : vector<8x384xf32> to vector<8x128xf32>
    %85 = vector.broadcast %4 : vector<1x128xf32> to vector<8x128xf32>
    %86 = arith.addf %84, %85 : vector<8x128xf32>
    %87 = arith.mulf %81, %86 : vector<8x128xf32>
    %88 = arith.addf %83, %87 : vector<8x128xf32>
    %89 = math.tanh %88 : vector<8x128xf32>
    %cst_24 = arith.constant 1.000000e+00 : f32
    %90 = vector.broadcast %cst_24 : f32 to vector<8x128xf32>
    %91 = arith.subf %90, %82 : vector<8x128xf32>
    %92 = arith.mulf %91, %89 : vector<8x128xf32>
    %93 = arith.mulf %82, %63 : vector<8x128xf32>
    %94 = arith.addf %92, %93 : vector<8x128xf32>
    %95 = arith.index_cast %c2_i32 : i32 to index
    %c0_25 = arith.constant 0 : index
    %c0_26 = arith.constant 0 : index
    %96 = vector.load %arg6[%95, %c0_25, %c0_26] : memref<4x8x128xf32, #tpu.memory_space<vmem>>, vector<1x8x128xf32>
    %97 = vector.shape_cast %96 : vector<1x8x128xf32> to vector<8x128xf32>
    %98 = vector.shape_cast %94 : vector<8x128xf32> to vector<1x8x128xf32>
    tpu.vector_store %arg6[%95, %c0_25, %c0_26], %98 {strides = array<i32>} : memref<4x8x128xf32, #tpu.memory_space<vmem>>, vector<1x8x128xf32>,
    %c3_i32 = arith.constant 3 : i32
    %99 = arith.truncf %94 : vector<8x128xf32> to vector<8x128xbf16>
    %cst_27 = arith.constant dense<0.000000e+00> : vector<8x384xf32>
    %100 = tpu.matmul %99, %3, %cst_27 {dimension_numbers = #tpu.dot_dimension_numbers<[1], [0], [0], [1], [0, 0, 1, 1], [], []>} : vector<8x128xbf16>, vector<128x384xbf16>, vector<8x384xf32> -> vector<8x384xf32>
    %101 = arith.index_cast %c3_i32 : i32 to index
    %c0_28 = arith.constant 0 : index
    %c0_29 = arith.constant 0 : index
    %102 = vector.load %arg2[%101, %c0_28, %c0_29] : memref<4x8x384xf32, #tpu.memory_space<vmem>>, vector<1x8x384xf32>
    %103 = vector.shape_cast %102 : vector<1x8x384xf32> to vector<8x384xf32>
    %104 = vector.extract_strided_slice %103 {offsets = [0, 0], sizes = [8, 256], strides = [1, 1]} : vector<8x384xf32> to vector<8x256xf32>
    %105 = vector.extract_strided_slice %100 {offsets = [0, 0], sizes = [8, 256], strides = [1, 1]} : vector<8x384xf32> to vector<8x256xf32>
    %106 = arith.addf %104, %105 : vector<8x256xf32>
    %107 = arith.negf %106 : vector<8x256xf32>
    %108 = math.exp %107 : vector<8x256xf32>
    %cst_30 = arith.constant 1.000000e+00 : f32
    %109 = vector.broadcast %cst_30 : f32 to vector<8x256xf32>
    %110 = arith.addf %109, %108 : vector<8x256xf32>
    %111 = arith.divf %109, %110 : vector<8x256xf32>
    %112 = vector.extract_strided_slice %111 {offsets = [0, 0], sizes = [8, 128], strides = [1, 1]} : vector<8x256xf32> to vector<8x128xf32>
    %113 = vector.extract_strided_slice %111 {offsets = [0, 128], sizes = [8, 128], strides = [1, 1]} : vector<8x256xf32> to vector<8x128xf32>
    %114 = vector.extract_strided_slice %103 {offsets = [0, 256], sizes = [8, 128], strides = [1, 1]} : vector<8x384xf32> to vector<8x128xf32>
    %115 = vector.extract_strided_slice %100 {offsets = [0, 256], sizes = [8, 128], strides = [1, 1]} : vector<8x384xf32> to vector<8x128xf32>
    %116 = vector.broadcast %4 : vector<1x128xf32> to vector<8x128xf32>
    %117 = arith.addf %115, %116 : vector<8x128xf32>
    %118 = arith.mulf %112, %117 : vector<8x128xf32>
    %119 = arith.addf %114, %118 : vector<8x128xf32>
    %120 = math.tanh %119 : vector<8x128xf32>
    %cst_31 = arith.constant 1.000000e+00 : f32
    %121 = vector.broadcast %cst_31 : f32 to vector<8x128xf32>
    %122 = arith.subf %121, %113 : vector<8x128xf32>
    %123 = arith.mulf %122, %120 : vector<8x128xf32>
    %124 = arith.mulf %113, %94 : vector<8x128xf32>
    %125 = arith.addf %123, %124 : vector<8x128xf32>
    %126 = arith.index_cast %c3_i32 : i32 to index
    %c0_32 = arith.constant 0 : index
    %c0_33 = arith.constant 0 : index
    %127 = vector.load %arg6[%126, %c0_32, %c0_33] : memref<4x8x128xf32, #tpu.memory_space<vmem>>, vector<1x8x128xf32>
    %128 = vector.shape_cast %127 : vector<1x8x128xf32> to vector<8x128xf32>
    %129 = vector.shape_cast %125 : vector<8x128xf32> to vector<1x8x128xf32>
    tpu.vector_store %arg6[%126, %c0_32, %c0_33], %129 {strides = array<i32>} : memref<4x8x128xf32, #tpu.memory_space<vmem>>, vector<1x8x128xf32>,
    %c4_i32 = arith.constant 4 : i32
    %c0_34 = arith.constant 0 : index
    %c0_35 = arith.constant 0 : index
    %130 = vector.load %arg7[%c0_34, %c0_35] : memref<8x128xf32, #tpu.memory_space<vmem>>, vector<8x128xf32>
    tpu.vector_store %arg7[%c0_34, %c0_35], %125 {strides = array<i32>} : memref<8x128xf32, #tpu.memory_space<vmem>>, vector<8x128xf32>,
    return
  }
  func.func @transform_0(%arg0: i32, %arg1: i32) -> (i32, i32, i32) {
    %c0_i32 = arith.constant 0 : i32
    %c0_i32_0 = arith.constant 0 : i32
    return %arg1, %arg0, %c0_i32 : i32, i32, i32
  }
  func.func @transform_1(%arg0: i32, %arg1: i32) -> (i32, i32) {
    %c0_i32 = arith.constant 0 : i32
    %c0_i32_0 = arith.constant 0 : i32
    return %arg0, %c0_i32 : i32, i32
  }
  func.func @transform_2(%arg0: i32, %arg1: i32) -> (i32, i32) {
    %c0_i32 = arith.constant 0 : i32
    %c0_i32_0 = arith.constant 0 : i32
    %c0_i32_1 = arith.constant 0 : i32
    return %c0_i32, %c0_i32_0 : i32, i32
  }
  func.func @transform_3(%arg0: i32, %arg1: i32) -> (i32, i32) {
    %c0_i32 = arith.constant 0 : i32
    %c0_i32_0 = arith.constant 0 : i32
    %c0_i32_1 = arith.constant 0 : i32
    return %c0_i32, %c0_i32_0 : i32, i32
  }
  func.func @transform_4(%arg0: i32, %arg1: i32) -> (i32, i32, i32) {
    %c0_i32 = arith.constant 0 : i32
    %c0_i32_0 = arith.constant 0 : i32
    return %arg1, %arg0, %c0_i32 : i32, i32, i32
  }
}

module attributes {stable_mosaic.version = 11 : i64} {
  func.func @gru_kernel(%arg0: i32, %arg1: i32, %arg2: memref<4x8x384xf32, #tpu.memory_space<vmem>>, %arg3: memref<8x384xf32, #tpu.memory_space<vmem>>, %arg4: memref<8x128xf32, #tpu.memory_space<vmem>>, %arg5: memref<128x384xbf16, #tpu.memory_space<vmem>>, %arg6: memref<1x128xf32, #tpu.memory_space<vmem>>, %arg7: memref<4x8x128xf32, #tpu.memory_space<vmem>>, %arg8: memref<8x128xf32, #tpu.memory_space<vmem>>) attributes {dimension_semantics = [#tpu.dimension_semantics<parallel>, #tpu.dimension_semantics<arbitrary>], iteration_bounds = array<i64: 1, 2>, scalar_prefetch = 0 : i64, scratch_operands = 1 : i64, tpu.core_type = #tpu.core_type<tc>, window_params = [{transform_indices = @transform_0, window_bounds = array<i64: 4, 8, 384>}, {transform_indices = @transform_1, window_bounds = array<i64: 8, 384>}, {transform_indices = @transform_2, window_bounds = array<i64: 8, 128>}, {pipeline_mode = #tpu.pipeline_mode<synchronous>, transform_indices = @transform_3, window_bounds = array<i64: 128, 384>}, {pipeline_mode = #tpu.pipeline_mode<synchronous>, transform_indices = @transform_4, window_bounds = array<i64: 1, 128>}, {transform_indices = @transform_5, window_bounds = array<i64: 4, 8, 128>}]} {
    %c0_i32 = arith.constant 0 : i32
    %0 = arith.cmpi eq, %arg1, %c0_i32 : i32
    %1 = arith.extui %0 : i1 to i32
    %c0_i32_0 = arith.constant 0 : i32
    %2 = arith.cmpi ne, %1, %c0_i32_0 : i32
    scf.if %2 {
      %c0_38 = arith.constant 0 : index
      %c0_39 = arith.constant 0 : index
      %136 = vector.load %arg4[%c0_38, %c0_39] : memref<8x128xf32, #tpu.memory_space<vmem>>, vector<8x128xf32>
      %c0_40 = arith.constant 0 : index
      %c0_41 = arith.constant 0 : index
      %137 = vector.load %arg8[%c0_40, %c0_41] : memref<8x128xf32, #tpu.memory_space<vmem>>, vector<8x128xf32>
      tpu.vector_store %arg8[%c0_40, %c0_41], %136 {strides = array<i32>} : memref<8x128xf32, #tpu.memory_space<vmem>>, vector<8x128xf32>,
    } else {
    }
    %c0 = arith.constant 0 : index
    %c0_1 = arith.constant 0 : index
    %3 = vector.load %arg5[%c0, %c0_1] : memref<128x384xbf16, #tpu.memory_space<vmem>>, vector<128x384xbf16>
    %c0_2 = arith.constant 0 : index
    %c0_3 = arith.constant 0 : index
    %4 = vector.load %arg6[%c0_2, %c0_3] : memref<1x128xf32, #tpu.memory_space<vmem>>, vector<1x128xf32>
    %c0_4 = arith.constant 0 : index
    %c0_5 = arith.constant 0 : index
    %5 = vector.load %arg3[%c0_4, %c0_5] : memref<8x384xf32, #tpu.memory_space<vmem>>, vector<8x384xf32>
    %c0_6 = arith.constant 0 : index
    %c0_7 = arith.constant 0 : index
    %6 = vector.load %arg8[%c0_6, %c0_7] : memref<8x128xf32, #tpu.memory_space<vmem>>, vector<8x128xf32>
    %c0_i32_8 = arith.constant 0 : i32
    %7 = arith.truncf %6 : vector<8x128xf32> to vector<8x128xbf16>
    %cst = arith.constant dense<0.000000e+00> : vector<8x384xf32>
    %8 = tpu.matmul %7, %3, %cst {dimension_numbers = #tpu.dot_dimension_numbers<[1], [0], [0], [1], [0, 0, 1, 1], [], []>} : vector<8x128xbf16>, vector<128x384xbf16>, vector<8x384xf32> -> vector<8x384xf32>
    %9 = arith.index_cast %c0_i32_8 : i32 to index
    %c0_9 = arith.constant 0 : index
    %c0_10 = arith.constant 0 : index
    %10 = vector.load %arg2[%9, %c0_9, %c0_10] : memref<4x8x384xf32, #tpu.memory_space<vmem>>, vector<1x8x384xf32>
    %11 = vector.shape_cast %10 : vector<1x8x384xf32> to vector<8x384xf32>
    %12 = arith.addf %11, %5 : vector<8x384xf32>
    %13 = vector.extract_strided_slice %12 {offsets = [0, 0], sizes = [8, 256], strides = [1, 1]} : vector<8x384xf32> to vector<8x256xf32>
    %14 = vector.extract_strided_slice %8 {offsets = [0, 0], sizes = [8, 256], strides = [1, 1]} : vector<8x384xf32> to vector<8x256xf32>
    %15 = arith.addf %13, %14 : vector<8x256xf32>
    %16 = arith.negf %15 : vector<8x256xf32>
    %17 = math.exp %16 : vector<8x256xf32>
    %cst_11 = arith.constant 1.000000e+00 : f32
    %18 = vector.broadcast %cst_11 : f32 to vector<8x256xf32>
    %19 = arith.addf %18, %17 : vector<8x256xf32>
    %20 = arith.divf %18, %19 : vector<8x256xf32>
    %21 = vector.extract_strided_slice %20 {offsets = [0, 0], sizes = [8, 128], strides = [1, 1]} : vector<8x256xf32> to vector<8x128xf32>
    %22 = vector.extract_strided_slice %20 {offsets = [0, 128], sizes = [8, 128], strides = [1, 1]} : vector<8x256xf32> to vector<8x128xf32>
    %23 = vector.extract_strided_slice %12 {offsets = [0, 256], sizes = [8, 128], strides = [1, 1]} : vector<8x384xf32> to vector<8x128xf32>
    %24 = vector.extract_strided_slice %8 {offsets = [0, 256], sizes = [8, 128], strides = [1, 1]} : vector<8x384xf32> to vector<8x128xf32>
    %25 = vector.broadcast %4 : vector<1x128xf32> to vector<8x128xf32>
    %26 = arith.addf %24, %25 : vector<8x128xf32>
    %27 = arith.mulf %21, %26 : vector<8x128xf32>
    %28 = arith.addf %23, %27 : vector<8x128xf32>
    %29 = math.tanh %28 : vector<8x128xf32>
    %cst_12 = arith.constant 1.000000e+00 : f32
    %30 = vector.broadcast %cst_12 : f32 to vector<8x128xf32>
    %31 = arith.subf %30, %22 : vector<8x128xf32>
    %32 = arith.mulf %31, %29 : vector<8x128xf32>
    %33 = arith.mulf %22, %6 : vector<8x128xf32>
    %34 = arith.addf %32, %33 : vector<8x128xf32>
    %35 = arith.index_cast %c0_i32_8 : i32 to index
    %c0_13 = arith.constant 0 : index
    %c0_14 = arith.constant 0 : index
    %36 = vector.load %arg7[%35, %c0_13, %c0_14] : memref<4x8x128xf32, #tpu.memory_space<vmem>>, vector<1x8x128xf32>
    %37 = vector.shape_cast %36 : vector<1x8x128xf32> to vector<8x128xf32>
    %38 = vector.shape_cast %34 : vector<8x128xf32> to vector<1x8x128xf32>
    tpu.vector_store %arg7[%35, %c0_13, %c0_14], %38 {strides = array<i32>} : memref<4x8x128xf32, #tpu.memory_space<vmem>>, vector<1x8x128xf32>,
    %c1_i32 = arith.constant 1 : i32
    %39 = arith.truncf %34 : vector<8x128xf32> to vector<8x128xbf16>
    %cst_15 = arith.constant dense<0.000000e+00> : vector<8x384xf32>
    %40 = tpu.matmul %39, %3, %cst_15 {dimension_numbers = #tpu.dot_dimension_numbers<[1], [0], [0], [1], [0, 0, 1, 1], [], []>} : vector<8x128xbf16>, vector<128x384xbf16>, vector<8x384xf32> -> vector<8x384xf32>
    %41 = arith.index_cast %c1_i32 : i32 to index
    %c0_16 = arith.constant 0 : index
    %c0_17 = arith.constant 0 : index
    %42 = vector.load %arg2[%41, %c0_16, %c0_17] : memref<4x8x384xf32, #tpu.memory_space<vmem>>, vector<1x8x384xf32>
    %43 = vector.shape_cast %42 : vector<1x8x384xf32> to vector<8x384xf32>
    %44 = arith.addf %43, %5 : vector<8x384xf32>
    %45 = vector.extract_strided_slice %44 {offsets = [0, 0], sizes = [8, 256], strides = [1, 1]} : vector<8x384xf32> to vector<8x256xf32>
    %46 = vector.extract_strided_slice %40 {offsets = [0, 0], sizes = [8, 256], strides = [1, 1]} : vector<8x384xf32> to vector<8x256xf32>
    %47 = arith.addf %45, %46 : vector<8x256xf32>
    %48 = arith.negf %47 : vector<8x256xf32>
    %49 = math.exp %48 : vector<8x256xf32>
    %cst_18 = arith.constant 1.000000e+00 : f32
    %50 = vector.broadcast %cst_18 : f32 to vector<8x256xf32>
    %51 = arith.addf %50, %49 : vector<8x256xf32>
    %52 = arith.divf %50, %51 : vector<8x256xf32>
    %53 = vector.extract_strided_slice %52 {offsets = [0, 0], sizes = [8, 128], strides = [1, 1]} : vector<8x256xf32> to vector<8x128xf32>
    %54 = vector.extract_strided_slice %52 {offsets = [0, 128], sizes = [8, 128], strides = [1, 1]} : vector<8x256xf32> to vector<8x128xf32>
    %55 = vector.extract_strided_slice %44 {offsets = [0, 256], sizes = [8, 128], strides = [1, 1]} : vector<8x384xf32> to vector<8x128xf32>
    %56 = vector.extract_strided_slice %40 {offsets = [0, 256], sizes = [8, 128], strides = [1, 1]} : vector<8x384xf32> to vector<8x128xf32>
    %57 = vector.broadcast %4 : vector<1x128xf32> to vector<8x128xf32>
    %58 = arith.addf %56, %57 : vector<8x128xf32>
    %59 = arith.mulf %53, %58 : vector<8x128xf32>
    %60 = arith.addf %55, %59 : vector<8x128xf32>
    %61 = math.tanh %60 : vector<8x128xf32>
    %cst_19 = arith.constant 1.000000e+00 : f32
    %62 = vector.broadcast %cst_19 : f32 to vector<8x128xf32>
    %63 = arith.subf %62, %54 : vector<8x128xf32>
    %64 = arith.mulf %63, %61 : vector<8x128xf32>
    %65 = arith.mulf %54, %34 : vector<8x128xf32>
    %66 = arith.addf %64, %65 : vector<8x128xf32>
    %67 = arith.index_cast %c1_i32 : i32 to index
    %c0_20 = arith.constant 0 : index
    %c0_21 = arith.constant 0 : index
    %68 = vector.load %arg7[%67, %c0_20, %c0_21] : memref<4x8x128xf32, #tpu.memory_space<vmem>>, vector<1x8x128xf32>
    %69 = vector.shape_cast %68 : vector<1x8x128xf32> to vector<8x128xf32>
    %70 = vector.shape_cast %66 : vector<8x128xf32> to vector<1x8x128xf32>
    tpu.vector_store %arg7[%67, %c0_20, %c0_21], %70 {strides = array<i32>} : memref<4x8x128xf32, #tpu.memory_space<vmem>>, vector<1x8x128xf32>,
    %c2_i32 = arith.constant 2 : i32
    %71 = arith.truncf %66 : vector<8x128xf32> to vector<8x128xbf16>
    %cst_22 = arith.constant dense<0.000000e+00> : vector<8x384xf32>
    %72 = tpu.matmul %71, %3, %cst_22 {dimension_numbers = #tpu.dot_dimension_numbers<[1], [0], [0], [1], [0, 0, 1, 1], [], []>} : vector<8x128xbf16>, vector<128x384xbf16>, vector<8x384xf32> -> vector<8x384xf32>
    %73 = arith.index_cast %c2_i32 : i32 to index
    %c0_23 = arith.constant 0 : index
    %c0_24 = arith.constant 0 : index
    %74 = vector.load %arg2[%73, %c0_23, %c0_24] : memref<4x8x384xf32, #tpu.memory_space<vmem>>, vector<1x8x384xf32>
    %75 = vector.shape_cast %74 : vector<1x8x384xf32> to vector<8x384xf32>
    %76 = arith.addf %75, %5 : vector<8x384xf32>
    %77 = vector.extract_strided_slice %76 {offsets = [0, 0], sizes = [8, 256], strides = [1, 1]} : vector<8x384xf32> to vector<8x256xf32>
    %78 = vector.extract_strided_slice %72 {offsets = [0, 0], sizes = [8, 256], strides = [1, 1]} : vector<8x384xf32> to vector<8x256xf32>
    %79 = arith.addf %77, %78 : vector<8x256xf32>
    %80 = arith.negf %79 : vector<8x256xf32>
    %81 = math.exp %80 : vector<8x256xf32>
    %cst_25 = arith.constant 1.000000e+00 : f32
    %82 = vector.broadcast %cst_25 : f32 to vector<8x256xf32>
    %83 = arith.addf %82, %81 : vector<8x256xf32>
    %84 = arith.divf %82, %83 : vector<8x256xf32>
    %85 = vector.extract_strided_slice %84 {offsets = [0, 0], sizes = [8, 128], strides = [1, 1]} : vector<8x256xf32> to vector<8x128xf32>
    %86 = vector.extract_strided_slice %84 {offsets = [0, 128], sizes = [8, 128], strides = [1, 1]} : vector<8x256xf32> to vector<8x128xf32>
    %87 = vector.extract_strided_slice %76 {offsets = [0, 256], sizes = [8, 128], strides = [1, 1]} : vector<8x384xf32> to vector<8x128xf32>
    %88 = vector.extract_strided_slice %72 {offsets = [0, 256], sizes = [8, 128], strides = [1, 1]} : vector<8x384xf32> to vector<8x128xf32>
    %89 = vector.broadcast %4 : vector<1x128xf32> to vector<8x128xf32>
    %90 = arith.addf %88, %89 : vector<8x128xf32>
    %91 = arith.mulf %85, %90 : vector<8x128xf32>
    %92 = arith.addf %87, %91 : vector<8x128xf32>
    %93 = math.tanh %92 : vector<8x128xf32>
    %cst_26 = arith.constant 1.000000e+00 : f32
    %94 = vector.broadcast %cst_26 : f32 to vector<8x128xf32>
    %95 = arith.subf %94, %86 : vector<8x128xf32>
    %96 = arith.mulf %95, %93 : vector<8x128xf32>
    %97 = arith.mulf %86, %66 : vector<8x128xf32>
    %98 = arith.addf %96, %97 : vector<8x128xf32>
    %99 = arith.index_cast %c2_i32 : i32 to index
    %c0_27 = arith.constant 0 : index
    %c0_28 = arith.constant 0 : index
    %100 = vector.load %arg7[%99, %c0_27, %c0_28] : memref<4x8x128xf32, #tpu.memory_space<vmem>>, vector<1x8x128xf32>
    %101 = vector.shape_cast %100 : vector<1x8x128xf32> to vector<8x128xf32>
    %102 = vector.shape_cast %98 : vector<8x128xf32> to vector<1x8x128xf32>
    tpu.vector_store %arg7[%99, %c0_27, %c0_28], %102 {strides = array<i32>} : memref<4x8x128xf32, #tpu.memory_space<vmem>>, vector<1x8x128xf32>,
    %c3_i32 = arith.constant 3 : i32
    %103 = arith.truncf %98 : vector<8x128xf32> to vector<8x128xbf16>
    %cst_29 = arith.constant dense<0.000000e+00> : vector<8x384xf32>
    %104 = tpu.matmul %103, %3, %cst_29 {dimension_numbers = #tpu.dot_dimension_numbers<[1], [0], [0], [1], [0, 0, 1, 1], [], []>} : vector<8x128xbf16>, vector<128x384xbf16>, vector<8x384xf32> -> vector<8x384xf32>
    %105 = arith.index_cast %c3_i32 : i32 to index
    %c0_30 = arith.constant 0 : index
    %c0_31 = arith.constant 0 : index
    %106 = vector.load %arg2[%105, %c0_30, %c0_31] : memref<4x8x384xf32, #tpu.memory_space<vmem>>, vector<1x8x384xf32>
    %107 = vector.shape_cast %106 : vector<1x8x384xf32> to vector<8x384xf32>
    %108 = arith.addf %107, %5 : vector<8x384xf32>
    %109 = vector.extract_strided_slice %108 {offsets = [0, 0], sizes = [8, 256], strides = [1, 1]} : vector<8x384xf32> to vector<8x256xf32>
    %110 = vector.extract_strided_slice %104 {offsets = [0, 0], sizes = [8, 256], strides = [1, 1]} : vector<8x384xf32> to vector<8x256xf32>
    %111 = arith.addf %109, %110 : vector<8x256xf32>
    %112 = arith.negf %111 : vector<8x256xf32>
    %113 = math.exp %112 : vector<8x256xf32>
    %cst_32 = arith.constant 1.000000e+00 : f32
    %114 = vector.broadcast %cst_32 : f32 to vector<8x256xf32>
    %115 = arith.addf %114, %113 : vector<8x256xf32>
    %116 = arith.divf %114, %115 : vector<8x256xf32>
    %117 = vector.extract_strided_slice %116 {offsets = [0, 0], sizes = [8, 128], strides = [1, 1]} : vector<8x256xf32> to vector<8x128xf32>
    %118 = vector.extract_strided_slice %116 {offsets = [0, 128], sizes = [8, 128], strides = [1, 1]} : vector<8x256xf32> to vector<8x128xf32>
    %119 = vector.extract_strided_slice %108 {offsets = [0, 256], sizes = [8, 128], strides = [1, 1]} : vector<8x384xf32> to vector<8x128xf32>
    %120 = vector.extract_strided_slice %104 {offsets = [0, 256], sizes = [8, 128], strides = [1, 1]} : vector<8x384xf32> to vector<8x128xf32>
    %121 = vector.broadcast %4 : vector<1x128xf32> to vector<8x128xf32>
    %122 = arith.addf %120, %121 : vector<8x128xf32>
    %123 = arith.mulf %117, %122 : vector<8x128xf32>
    %124 = arith.addf %119, %123 : vector<8x128xf32>
    %125 = math.tanh %124 : vector<8x128xf32>
    %cst_33 = arith.constant 1.000000e+00 : f32
    %126 = vector.broadcast %cst_33 : f32 to vector<8x128xf32>
    %127 = arith.subf %126, %118 : vector<8x128xf32>
    %128 = arith.mulf %127, %125 : vector<8x128xf32>
    %129 = arith.mulf %118, %98 : vector<8x128xf32>
    %130 = arith.addf %128, %129 : vector<8x128xf32>
    %131 = arith.index_cast %c3_i32 : i32 to index
    %c0_34 = arith.constant 0 : index
    %c0_35 = arith.constant 0 : index
    %132 = vector.load %arg7[%131, %c0_34, %c0_35] : memref<4x8x128xf32, #tpu.memory_space<vmem>>, vector<1x8x128xf32>
    %133 = vector.shape_cast %132 : vector<1x8x128xf32> to vector<8x128xf32>
    %134 = vector.shape_cast %130 : vector<8x128xf32> to vector<1x8x128xf32>
    tpu.vector_store %arg7[%131, %c0_34, %c0_35], %134 {strides = array<i32>} : memref<4x8x128xf32, #tpu.memory_space<vmem>>, vector<1x8x128xf32>,
    %c4_i32 = arith.constant 4 : i32
    %c0_36 = arith.constant 0 : index
    %c0_37 = arith.constant 0 : index
    %135 = vector.load %arg8[%c0_36, %c0_37] : memref<8x128xf32, #tpu.memory_space<vmem>>, vector<8x128xf32>
    tpu.vector_store %arg8[%c0_36, %c0_37], %130 {strides = array<i32>} : memref<8x128xf32, #tpu.memory_space<vmem>>, vector<8x128xf32>,
    return
  }
  func.func @transform_0(%arg0: i32, %arg1: i32) -> (i32, i32, i32) {
    %c0_i32 = arith.constant 0 : i32
    %c0_i32_0 = arith.constant 0 : i32
    return %arg1, %arg0, %c0_i32 : i32, i32, i32
  }
  func.func @transform_1(%arg0: i32, %arg1: i32) -> (i32, i32) {
    %c0_i32 = arith.constant 0 : i32
    %c0_i32_0 = arith.constant 0 : i32
    return %arg0, %c0_i32 : i32, i32
  }
  func.func @transform_2(%arg0: i32, %arg1: i32) -> (i32, i32) {
    %c0_i32 = arith.constant 0 : i32
    %c0_i32_0 = arith.constant 0 : i32
    return %arg0, %c0_i32 : i32, i32
  }
  func.func @transform_3(%arg0: i32, %arg1: i32) -> (i32, i32) {
    %c0_i32 = arith.constant 0 : i32
    %c0_i32_0 = arith.constant 0 : i32
    %c0_i32_1 = arith.constant 0 : i32
    return %c0_i32, %c0_i32_0 : i32, i32
  }
  func.func @transform_4(%arg0: i32, %arg1: i32) -> (i32, i32) {
    %c0_i32 = arith.constant 0 : i32
    %c0_i32_0 = arith.constant 0 : i32
    %c0_i32_1 = arith.constant 0 : i32
    return %c0_i32, %c0_i32_0 : i32, i32
  }
  func.func @transform_5(%arg0: i32, %arg1: i32) -> (i32, i32, i32) {
    %c0_i32 = arith.constant 0 : i32
    %c0_i32_0 = arith.constant 0 : i32
    return %arg1, %arg0, %c0_i32 : i32, i32, i32
  }
}

module attributes {stable_mosaic.version = 11 : i64} {
  func.func @linear_kernel(%arg0: i32, %arg1: i32, %arg2: i32, %arg3: memref<64x128xf32, #tpu.memory_space<vmem>>, %arg4: memref<128x512xbf16, #tpu.memory_space<vmem>>, %arg5: memref<1x512xf32, #tpu.memory_space<vmem>>, %arg6: memref<64x512xf32, #tpu.memory_space<vmem>>, %arg7: memref<64x512xf32, #tpu.memory_space<vmem>>) attributes {dimension_semantics = [#tpu.dimension_semantics<parallel>, #tpu.dimension_semantics<parallel>, #tpu.dimension_semantics<arbitrary>], iteration_bounds = array<i64: 1, 1, 1>, scalar_prefetch = 0 : i64, scratch_operands = 1 : i64, tpu.core_type = #tpu.core_type<tc>, window_params = [{transform_indices = @transform_0, window_bounds = array<i64: 64, 128>}, {transform_indices = @transform_1, window_bounds = array<i64: 128, 512>}, {transform_indices = @transform_2, window_bounds = array<i64: 1, 512>}, {transform_indices = @transform_3, window_bounds = array<i64: 64, 512>}]} {
    %c0_i32 = arith.constant 0 : i32
    %0 = arith.cmpi eq, %arg2, %c0_i32 : i32
    %1 = arith.extui %0 : i1 to i32
    %c0_i32_0 = arith.constant 0 : i32
    %2 = arith.cmpi ne, %1, %c0_i32_0 : i32
    scf.if %2 {
      %cst_10 = arith.constant 0.000000e+00 : f32
      %13 = vector.broadcast %cst_10 : f32 to vector<64x512xf32>
      %c0_11 = arith.constant 0 : index
      %c0_12 = arith.constant 0 : index
      %14 = vector.load %arg7[%c0_11, %c0_12] : memref<64x512xf32, #tpu.memory_space<vmem>>, vector<64x512xf32>
      tpu.vector_store %arg7[%c0_11, %c0_12], %13 {strides = array<i32>} : memref<64x512xf32, #tpu.memory_space<vmem>>, vector<64x512xf32>,
    } else {
    }
    %c0 = arith.constant 0 : index
    %c0_1 = arith.constant 0 : index
    %3 = vector.load %arg7[%c0, %c0_1] : memref<64x512xf32, #tpu.memory_space<vmem>>, vector<64x512xf32>
    %c0_2 = arith.constant 0 : index
    %c0_3 = arith.constant 0 : index
    %4 = vector.load %arg3[%c0_2, %c0_3] : memref<64x128xf32, #tpu.memory_space<vmem>>, vector<64x128xf32>
    %5 = arith.truncf %4 : vector<64x128xf32> to vector<64x128xbf16>
    %c0_4 = arith.constant 0 : index
    %c0_5 = arith.constant 0 : index
    %6 = vector.load %arg4[%c0_4, %c0_5] : memref<128x512xbf16, #tpu.memory_space<vmem>>, vector<128x512xbf16>
    %cst = arith.constant dense<0.000000e+00> : vector<64x512xf32>
    %7 = tpu.matmul %5, %6, %cst {dimension_numbers = #tpu.dot_dimension_numbers<[1], [0], [0], [1], [0, 0, 1, 1], [], []>} : vector<64x128xbf16>, vector<128x512xbf16>, vector<64x512xf32> -> vector<64x512xf32>
    %8 = arith.addf %3, %7 : vector<64x512xf32>
    %c0_6 = arith.constant 0 : index
    %c0_7 = arith.constant 0 : index
    %9 = vector.load %arg7[%c0_6, %c0_7] : memref<64x512xf32, #tpu.memory_space<vmem>>, vector<64x512xf32>
    tpu.vector_store %arg7[%c0_6, %c0_7], %8 {strides = array<i32>} : memref<64x512xf32, #tpu.memory_space<vmem>>, vector<64x512xf32>,
    %c0_i32_8 = arith.constant 0 : i32
    %10 = arith.cmpi eq, %arg2, %c0_i32_8 : i32
    %11 = arith.extui %10 : i1 to i32
    %c0_i32_9 = arith.constant 0 : i32
    %12 = arith.cmpi ne, %11, %c0_i32_9 : i32
    scf.if %12 {
      %c0_10 = arith.constant 0 : index
      %c0_11 = arith.constant 0 : index
      %13 = vector.load %arg7[%c0_10, %c0_11] : memref<64x512xf32, #tpu.memory_space<vmem>>, vector<64x512xf32>
      %c0_12 = arith.constant 0 : index
      %c0_13 = arith.constant 0 : index
      %14 = vector.load %arg5[%c0_12, %c0_13] : memref<1x512xf32, #tpu.memory_space<vmem>>, vector<1x512xf32>
      %15 = vector.broadcast %14 : vector<1x512xf32> to vector<64x512xf32>
      %16 = arith.addf %13, %15 : vector<64x512xf32>
      %c0_14 = arith.constant 0 : index
      %c0_15 = arith.constant 0 : index
      %17 = vector.load %arg6[%c0_14, %c0_15] : memref<64x512xf32, #tpu.memory_space<vmem>>, vector<64x512xf32>
      tpu.vector_store %arg6[%c0_14, %c0_15], %16 {strides = array<i32>} : memref<64x512xf32, #tpu.memory_space<vmem>>, vector<64x512xf32>,
    } else {
    }
    return
  }
  func.func @transform_0(%arg0: i32, %arg1: i32, %arg2: i32) -> (i32, i32) {
    %c0_i32 = arith.constant 0 : i32
    return %arg1, %arg2 : i32, i32
  }
  func.func @transform_1(%arg0: i32, %arg1: i32, %arg2: i32) -> (i32, i32) {
    %c0_i32 = arith.constant 0 : i32
    return %arg2, %arg0 : i32, i32
  }
  func.func @transform_2(%arg0: i32, %arg1: i32, %arg2: i32) -> (i32, i32) {
    %c0_i32 = arith.constant 0 : i32
    %c0_i32_0 = arith.constant 0 : i32
    return %c0_i32, %arg0 : i32, i32
  }
  func.func @transform_3(%arg0: i32, %arg1: i32, %arg2: i32) -> (i32, i32) {
    %c0_i32 = arith.constant 0 : i32
    return %arg1, %arg0 : i32, i32
  }
}

</mosaic_0001>

<bundles_post_ra>
// kernel: encoder_decoder_forward.9
= control target key start
LH: loop header
LB: loop body
LE: loop exit
PB: predicated region body
PF: predicated region fallthrough
CT: control target
= control target key end

     0   :  { %8 = vsyncpa [#allocation4], 0  ;;  %s421_s15 = smov [#allocation3]   ;;  %s422_s17 = smov 192   ;;  %s462_s0 = inlined_call_operand.vmem [shape: f32[8,128], index: 0, kind: input, shape index: {}]   ;;  %s463_s1 = inlined_call_operand.hbm [shape: bf16[128,384], index: 1, kind: input, shape index: {}]   ;;  %s464_s2 = inlined_call_operand.vmem [shape: f32[1,384], index: 2, kind: input, shape index: {}]   ;;  %s465_s3 = inlined_call_operand.vmem [shape: f32[8,384], index: 3, kind: output, shape index: {}]  }
   0x1   :  { %s15_s14 = sshll.u32 %s463_s1, 4  ;;  %s17_s16 = sshll.u32 %s421_s15, 4  ;;  %s16_s14 = int_to_ptr.hbm [resolvable:$true] %s15_s14  ;;  %s18_s16 = int_to_ptr.vmem [resolvable:$true] %s17_s16 }
   0x2   :  { %s423_s18 = smov 12  }
   0x3   :  { %23 = dma.hbm_to_vmem [thread:$0]  %s16_s14, 3072, %s18_s16, [#allocation4], %s422_s17, %s422_s17, %s423_s18  }
   0x4   :  { %419 = dma.done.wait [#allocation4], 3072  }
   0x5   :  { %420 = vsyncadd [#allocation4], 4294964224  ;;  %v358_v0 = vld [vmem:[#allocation3 + $0xa8] sm:$0xf]  ;;  %v390_v1 = vld [vmem:[#allocation3 + $0xb0] sm:$0xf0] }
   0x6   :  { %v389_v2 = vld [vmem:[#allocation3 + $0xac] sm:$0xf]  ;;  %v359_v3 = vor.u32 %v390_v1, %v358_v0  ;;  %v360_v4 = vld [vmem:[#allocation3 + $0xb4] sm:$0xf0]  ;;  %v366_v5 = vld [vmem:[#allocation3 + $0xb0] sm:$0xf] }
   0x7   :  { %v391_v6 = vld [vmem:[#allocation3 + $0xb8] sm:$0xf0]  ;;  %v363_v7 = vor.u32 %v389_v2, %v360_v4  ;;  %v346_v9 = vld [vmem:[#allocation3 + $0x90] sm:$0xf]  ;;  %v386_v11 = vld [vmem:[#allocation3 + $0x94] sm:$0xf] }
   0x8   :  { %v367_v8 = vor.u32 %v391_v6, %v366_v5  ;;  %v387_v10 = vld [vmem:[#allocation3 + $0x98] sm:$0xf0]  ;;  %202 = vmatpush.bf16.msra.mxu0 %v359_v3  ;;  %v348_v13 = vld [vmem:[#allocation3 + $0x9c] sm:$0xf0]  ;;  %v354_v14 = vld [vmem:[#allocation3 + $0x98] sm:$0xf] }
   0x9   :  { %v347_v12 = vor.u32 %v387_v10, %v346_v9  ;;  %v388_v15 = vld [vmem:[#allocation3 + $0xa0] sm:$0xf0]  ;;  %215 = vmatpush.bf16.msra.mxu1 %v363_v7  ;;  %v351_v16 = vor.u32 %v386_v11, %v348_v13  ;;  %v334_v18 = vld [vmem:[#allocation3 + $0x78] sm:$0xf]  ;;  %v383_v20 = vld [vmem:[#allocation3 + $0x7c] sm:$0xf] }
   0xa   :  { %228 = vmatpush.bf16.msra.mxu2 %v367_v8  ;;  %v355_v17 = vor.u32 %v388_v15, %v354_v14  ;;  %v384_v19 = vld [vmem:[#allocation3 + $0x80] sm:$0xf0]  ;;  %v336_v21 = vld [vmem:[#allocation3 + $0x84] sm:$0xf0]  ;;  %v342_v22 = vld [vmem:[#allocation3 + $0x80] sm:$0xf] }
   0xb   :  { %v385_v23 = vld [vmem:[#allocation3 + $0x88] sm:$0xf0]  ;;  %v335_v24 = vor.u32 %v384_v19, %v334_v18  ;;  %v339_v25 = vor.u32 %v383_v20, %v336_v21  ;;  %v322_v27 = vld [vmem:[#allocation3 + $0x60] sm:$0xf]  ;;  %v380_v29 = vld [vmem:[#allocation3 + $0x64] sm:$0xf] }
   0xc   :  { %203 = vmatpush.bf16.msra.mxu0 %v347_v12  ;;  %v343_v26 = vor.u32 %v385_v23, %v342_v22  ;;  %v381_v28 = vld [vmem:[#allocation3 + $0x68] sm:$0xf0]  ;;  %v324_v30 = vld [vmem:[#allocation3 + $0x6c] sm:$0xf0]  ;;  %v330_v31 = vld [vmem:[#allocation3 + $0x68] sm:$0xf] }
   0xd   :  { %216 = vmatpush.bf16.msra.mxu1 %v351_v16  ;;  %v382_v32 = vld [vmem:[#allocation3 + $0x70] sm:$0xf0]  ;;  %v323_v33 = vor.u32 %v381_v28, %v322_v27  ;;  %v327_v34 = vor.u32 %v380_v29, %v324_v30  ;;  %v310_v36 = vld [vmem:[#allocation3 + $0x48] sm:$0xf]  ;;  %v377_v38 = vld [vmem:[#allocation3 + $0x4c] sm:$0xf] }
   0xe   :  { %229 = vmatpush.bf16.msra.mxu2 %v355_v17  ;;  %v331_v35 = vor.u32 %v382_v32, %v330_v31  ;;  %v378_v37 = vld [vmem:[#allocation3 + $0x50] sm:$0xf0]  ;;  %v312_v39 = vld [vmem:[#allocation3 + $0x54] sm:$0xf0]  ;;  %v318_v40 = vld [vmem:[#allocation3 + $0x50] sm:$0xf] }
   0xf   :  { %v379_v41 = vld [vmem:[#allocation3 + $0x58] sm:$0xf0]  ;;  %v311_v42 = vor.u32 %v378_v37, %v310_v36  ;;  %v315_v43 = vor.u32 %v377_v38, %v312_v39  ;;  %v298_v45 = vld [vmem:[#allocation3 + $0x30] sm:$0xf]  ;;  %v374_v47 = vld [vmem:[#allocation3 + $0x34] sm:$0xf] }
  0x10   :  { %204 = vmatpush.bf16.msra.mxu0 %v335_v24  ;;  %v319_v44 = vor.u32 %v379_v41, %v318_v40  ;;  %v375_v46 = vld [vmem:[#allocation3 + $0x38] sm:$0xf0]  ;;  %v300_v48 = vld [vmem:[#allocation3 + $0x3c] sm:$0xf0]  ;;  %v306_v49 = vld [vmem:[#allocation3 + $0x38] sm:$0xf] }
  0x11   :  { %217 = vmatpush.bf16.msra.mxu1 %v339_v25  ;;  %v376_v50 = vld [vmem:[#allocation3 + $0x40] sm:$0xf0]  ;;  %v299_v51 = vor.u32 %v375_v46, %v298_v45  ;;  %v303_v52 = vor.u32 %v374_v47, %v300_v48  ;;  %v286_v54 = vld [vmem:[#allocation3 + $0x18] sm:$0xf]  ;;  %v371_v56 = vld [vmem:[#allocation3 + $0x1c] sm:$0xf] }
  0x12   :  { %230 = vmatpush.bf16.msra.mxu2 %v343_v26  ;;  %v307_v53 = vor.u32 %v376_v50, %v306_v49  ;;  %v372_v55 = vld [vmem:[#allocation3 + $0x20] sm:$0xf0]  ;;  %v288_v57 = vld [vmem:[#allocation3 + $0x24] sm:$0xf0]  ;;  %v294_v58 = vld [vmem:[#allocation3 + $0x20] sm:$0xf] }
  0x13   :  { %v373_v59 = vld [vmem:[#allocation3 + $0x28] sm:$0xf0]  ;;  %v287_v60 = vor.u32 %v372_v55, %v286_v54  ;;  %v291_v61 = vor.u32 %v371_v56, %v288_v57  ;;  %v274_v63 = vld [vmem:[#allocation3] sm:$0xf]  ;;  %v368_v1 = vld [vmem:[#allocation3 + $0x4] sm:$0xf] }
  0x14   :  { %205 = vmatpush.bf16.msra.mxu0 %v323_v33  ;;  %v295_v62 = vor.u32 %v373_v59, %v294_v58  ;;  %v369_v0 = vld [vmem:[#allocation3 + $0x8] sm:$0xf0]  ;;  %v276_v2 = vld [vmem:[#allocation3 + $0xc] sm:$0xf0]  ;;  %v282_v3 = vld [vmem:[#allocation3 + $0x8] sm:$0xf] }
  0x15   :  { %218 = vmatpush.bf16.msra.mxu1 %v327_v34  ;;  %v370_v4 = vld [vmem:[#allocation3 + $0x10] sm:$0xf0]  ;;  %v275_v5 = vor.u32 %v369_v0, %v274_v63  ;;  %v40_v6 = vld [vmem:[%s462_s0] sm:$0xff]  ;;  %v279_v7 = vor.u32 %v368_v1, %v276_v2 }
  0x16   :  { %231 = vmatpush.bf16.msra.mxu2 %v331_v35  ;;  %v283_v8 = vor.u32 %v370_v4, %v282_v3  ;;  %v41_v9 = vpack.c.bf16 %v40_v6, %v40_v6  ;;  %v253_v10 = vld [vmem:[%s464_s2] sm:$0x7] }
  0x17   :  { %v255_v11 = vperm.slane %v253_v10, 0  ;;  %v256_v12 = vperm.slane %v253_v10, 1  ;;  %v257_v17 = vperm.slane %v253_v10, 2 }
  0x18   :  { %206 = vmatpush.bf16.msra.mxu0 %v311_v42 }
  0x19   :  { %219 = vmatpush.bf16.msra.mxu1 %v315_v43 }
  0x1a   :  { %232 = vmatpush.bf16.msra.mxu2 %v319_v44 }
  0x1c   :  { %207 = vmatpush.bf16.msra.mxu0 %v299_v51 }
  0x1d   :  { %220 = vmatpush.bf16.msra.mxu1 %v303_v52 }
  0x1e   :  { %233 = vmatpush.bf16.msra.mxu2 %v307_v53 }
  0x20   :  { %208 = vmatpush.bf16.msra.mxu0 %v287_v60 }
  0x21   :  { %221 = vmatpush.bf16.msra.mxu1 %v291_v61 }
  0x22   :  { %234 = vmatpush.bf16.msra.mxu2 %v295_v62 }
  0x24   :  { %209 = vmatpush.bf16.msra.mxu0 %v275_v5 }
  0x25   :  { %222 = vmatpush.bf16.msra.mxu1 %v279_v7 }
  0x26   :  { %235 = vmatpush.bf16.msra.mxu2 %v283_v8 }
  0x27   :  { %210 = vmatmul.bf16.vlgmr.msra.gmra.mxu0 %v41_v9 }
  0x28   :  { %223 = vmatmul.bf16.vlgmr.msra.gmra.mxu1 %v41_v9 }
  0x29   :  { %236 = vmatmul.bf16.vlgmr.msra.gmra.mxu2 %v41_v9 }
  0xa4   :  { %v211_v13 = vpop.f32.mrf.mxu0 }
  0xa5   :  { %v261_v14 = vadd.f32 %v255_v11, %v211_v13  ;;  %v224_v15 = vpop.f32.mrf.mxu1 }
  0xa6   :  { %v262_v16 = vadd.f32 %v256_v12, %v224_v15 }
  0xa7   :  { %264 = vst [vmem:[%s465_s3] sm:$0xff] %v261_v14 }
  0xa8   :  { %265 = vst [vmem:[%s465_s3 + $0x8] sm:$0xff] %v262_v16 }
  0xac   :  { %v237_v18 = vpop.f32.mrf.mxu2  ;;  %v213_v20 = vpop.f32.mrf.mxu0 }
  0xad   :  { %v263_v19 = vadd.f32 %v257_v17, %v237_v18  ;;  %v226_v21 = vpop.f32.mrf.mxu1 }
  0xaf   :  { %266 = vst [vmem:[%s465_s3 + $0x10] sm:$0xff] %v263_v19 }
  0xb4   :  { %v239_v22 = vpop.f32.mrf.mxu2 }
  0xb5   :  { %271 = vsyncpa [#allocation4], 1 }

// kernel: encoder_decoder_forward.10
= control target key start
LH: loop header
LB: loop body
LE: loop exit
PB: predicated region body
PF: predicated region fallthrough
CT: control target
= control target key end

     0   :  { %s1251_s18 = smov 0   ;;  %s1253_s19 = smov 0   ;;  %s1654_s0 = inlined_call_operand.vmem [shape: f32[8,8,384], index: 0, kind: input, shape index: {}]   ;;  %s1655_s1 = inlined_call_operand.vmem [shape: f32[8,384], index: 1, kind: input, shape index: {}]   ;;  %s1656_s2 = inlined_call_operand.vmem [shape: f32[8,128], index: 2, kind: input, shape index: {}]   ;;  %s1657_s3 = inlined_call_operand.vmem [shape: bf16[128,384], index: 3, kind: input, shape index: {}]   ;;  %s1658_s4 = inlined_call_operand.vmem [shape: f32[1,128], index: 4, kind: input, shape index: {}]   ;;  %s1659_s5 = inlined_call_operand.vmem [shape: f32[8,8,128], index: 5, kind: output, shape index: {}]  }
   0x1   :  { %s1255_s20 = smov 0  }
   0x2 LB: > { %s24_s21 = sadd.s32 1, %s1215_s19  ;;  %p983_p0 = scmp.ge.s32.totalorder %s1219_s20, 1  ;;  %s1219_s20 = sphi %s1255_s20, %s15_s20   ;;  %s1215_s19 = sphi %s1253_s19, %s1661_s19   ;;  %s1211_s18 = sphi %s1251_s18, %s1660_s18  }
   0x3   : > { %p25_p1 = scmp.ge.s32.totalorder %s24_s21, 2  ;;  %p228_p2 = scmp.lt.s32.totalorder %s1219_s20, 3 }
   0x5   : > { %s1663_s21 = smov (%p25_p1, %s24_s21), 0  ;;  %p229_p3 = pnand %p983_p0, %p228_p2 }
   0x6   : > { %s984_s22 = sshll.u32 (!%p229_p3), %s1211_s18, 2  ;;  %p988_p5 = scmp.ne.s32.totalorder (!%p229_p3), %s1211_s18, 0 }
   0x7   : > { %232 = sbr.rel (%p229_p3) target bundleno = 757 (0x2f5), region = 40  ;;  %p274_p4 = scmp.lt.s32.totalorder (!%p229_p3), %s984_s22, 7 }
   0xc   : > { %s1665_s22 = smov (!%p274_p4, %s984_s22), 7  ;;  %305 = sbr.rel (%p988_p5) target bundleno = 19 (0x13), region = 44 }
   0xd   : > { %s1131_s23 = smul.u32 24, %s1665_s22  ;;  %s987_s24 = sshll.u32 %s1665_s22, 3 }
   0xe   : > { %s1272_s27 = scalar_lea.vmem %s1659_s5, %s987_s24 }
   0xf   : > { %s1277_s30 = scalar_lea.vmem %s1654_s0, %s1131_s23 }
  0x11   : > { %v306_v0 = vld [vmem:[%s1656_s2] sm:$0xff] }
  0x12   : > { %307 = vst [vmem:[#allocation2] sm:$0xff] %v306_v0 }
  0x13 PF: > { %v1075_v1 = vld [vmem:[%s1657_s3 + $0xa8] sm:$0xf]  ;;  %v1129_v2 = vld [vmem:[%s1657_s3 + $0xb0] sm:$0xf0]  ;;  %v1128_v3 = vld [vmem:[%s1657_s3 + $0xac] sm:$0xf] }
  0x14   : > { %v1291_v4 = vor.u32 %v1129_v2, %v1075_v1  ;;  %v1077_v5 = vld [vmem:[%s1657_s3 + $0xb4] sm:$0xf0]  ;;  %v1063_v6 = vld [vmem:[%s1657_s3 + $0x90] sm:$0xf]  ;;  %v1126_v7 = vld [vmem:[%s1657_s3 + $0x98] sm:$0xf0] }
  0x15   : > { %v1302_v8 = vor.u32 %v1128_v3, %v1077_v5  ;;  %v1125_v9 = vld [vmem:[%s1657_s3 + $0x94] sm:$0xf]  ;;  %v1065_v10 = vld [vmem:[%s1657_s3 + $0x9c] sm:$0xf0]  ;;  %v1311_v11 = vor.u32 %v1126_v7, %v1063_v6  ;;  %v1051_v13 = vld [vmem:[%s1657_s3 + $0x78] sm:$0xf] }
  0x16   : > { %474 = vmatpush.bf16.msra.mxu0 %v1291_v4  ;;  %572 = vmatpush.bf16.msra.mxu3 %v1291_v4  ;;  %v1315_v12 = vor.u32 %v1125_v9, %v1065_v10  ;;  %v1123_v14 = vld [vmem:[%s1657_s3 + $0x80] sm:$0xf0]  ;;  %v1122_v15 = vld [vmem:[%s1657_s3 + $0x7c] sm:$0xf]  ;;  %v1053_v16 = vld [vmem:[%s1657_s3 + $0x84] sm:$0xf0] }
  0x17   : > { %487 = vmatpush.bf16.msra.mxu1 %v1302_v8  ;;  %v1083_v17 = vld [vmem:[%s1657_s3 + $0xb0] sm:$0xf]  ;;  %v1130_v18 = vld [vmem:[%s1657_s3 + $0xb8] sm:$0xf0]  ;;  %v1338_v20 = vor.u32 %v1123_v14, %v1051_v13  ;;  %v1071_v21 = vld [vmem:[%s1657_s3 + $0x98] sm:$0xf]  ;;  %v1348_v23 = vor.u32 %v1122_v15, %v1053_v16 }
  0x18   : > { %v1335_v19 = vor.u32 %v1130_v18, %v1083_v17  ;;  %v1127_v22 = vld [vmem:[%s1657_s3 + $0xa0] sm:$0xf0]  ;;  %v1039_v24 = vld [vmem:[%s1657_s3 + $0x60] sm:$0xf]  ;;  %v1120_v25 = vld [vmem:[%s1657_s3 + $0x68] sm:$0xf0] }
  0x19   : > { %v1119_v26 = vld [vmem:[%s1657_s3 + $0x64] sm:$0xf]  ;;  %v1360_v27 = vor.u32 %v1127_v22, %v1071_v21  ;;  %v1041_v28 = vld [vmem:[%s1657_s3 + $0x6c] sm:$0xf0]  ;;  %v1059_v29 = vld [vmem:[%s1657_s3 + $0x80] sm:$0xf]  ;;  %v1372_v31 = vor.u32 %v1120_v25, %v1039_v24 }
  0x1a   : > { %475 = vmatpush.bf16.msra.mxu0 %v1311_v11  ;;  %573 = vmatpush.bf16.msra.mxu3 %v1311_v11  ;;  %v1124_v30 = vld [vmem:[%s1657_s3 + $0x88] sm:$0xf0]  ;;  %v1376_v32 = vor.u32 %v1119_v26, %v1041_v28  ;;  %v1027_v33 = vld [vmem:[%s1657_s3 + $0x48] sm:$0xf]  ;;  %v1117_v34 = vld [vmem:[%s1657_s3 + $0x50] sm:$0xf0] }
  0x1b   : > { %488 = vmatpush.bf16.msra.mxu1 %v1315_v12  ;;  %500 = vmatpush.bf16.msra.mxu2 %v1335_v19  ;;  %v1116_v35 = vld [vmem:[%s1657_s3 + $0x4c] sm:$0xf]  ;;  %v1388_v36 = vor.u32 %v1124_v30, %v1059_v29  ;;  %v1029_v37 = vld [vmem:[%s1657_s3 + $0x54] sm:$0xf0]  ;;  %v1047_v38 = vld [vmem:[%s1657_s3 + $0x68] sm:$0xf]  ;;  %v1400_v40 = vor.u32 %v1117_v34, %v1027_v33 }
  0x1c   : > { %v1121_v39 = vld [vmem:[%s1657_s3 + $0x70] sm:$0xf0]  ;;  %v1015_v41 = vld [vmem:[%s1657_s3 + $0x30] sm:$0xf]  ;;  %v1407_v42 = vor.u32 %v1116_v35, %v1029_v37  ;;  %v1114_v43 = vld [vmem:[%s1657_s3 + $0x38] sm:$0xf0] }
  0x1d   : > { %v1113_v44 = vld [vmem:[%s1657_s3 + $0x34] sm:$0xf]  ;;  %v1416_v45 = vor.u32 %v1121_v39, %v1047_v38  ;;  %v1017_v46 = vld [vmem:[%s1657_s3 + $0x3c] sm:$0xf0]  ;;  %v1035_v47 = vld [vmem:[%s1657_s3 + $0x50] sm:$0xf]  ;;  %v1428_v49 = vor.u32 %v1114_v43, %v1015_v41 }
  0x1e   : > { %476 = vmatpush.bf16.msra.mxu0 %v1338_v20  ;;  %574 = vmatpush.bf16.msra.mxu3 %v1338_v20  ;;  %v1118_v48 = vld [vmem:[%s1657_s3 + $0x58] sm:$0xf0]  ;;  %v1432_v50 = vor.u32 %v1113_v44, %v1017_v46  ;;  %v1003_v51 = vld [vmem:[%s1657_s3 + $0x18] sm:$0xf]  ;;  %v1111_v52 = vld [vmem:[%s1657_s3 + $0x20] sm:$0xf0] }
  0x1f   : > { %489 = vmatpush.bf16.msra.mxu1 %v1348_v23  ;;  %501 = vmatpush.bf16.msra.mxu2 %v1360_v27  ;;  %v1110_v53 = vld [vmem:[%s1657_s3 + $0x1c] sm:$0xf]  ;;  %v1444_v54 = vor.u32 %v1118_v48, %v1035_v47  ;;  %v1005_v55 = vld [vmem:[%s1657_s3 + $0x24] sm:$0xf0]  ;;  %v1023_v56 = vld [vmem:[%s1657_s3 + $0x38] sm:$0xf]  ;;  %v1456_v58 = vor.u32 %v1111_v52, %v1003_v51 }
  0x20   : > { %v1115_v57 = vld [vmem:[%s1657_s3 + $0x40] sm:$0xf0]  ;;  %v1460_v59 = vor.u32 %v1110_v53, %v1005_v55  ;;  %v991_v60 = vld [vmem:[%s1657_s3] sm:$0xf]  ;;  %v1108_v61 = vld [vmem:[%s1657_s3 + $0x8] sm:$0xf0] }
  0x21   : > { %v1107_v62 = vld [vmem:[%s1657_s3 + $0x4] sm:$0xf]  ;;  %v1472_v63 = vor.u32 %v1115_v57, %v1023_v56  ;;  %v993_v0 = vld [vmem:[%s1657_s3 + $0xc] sm:$0xf0]  ;;  %v1011_v1 = vld [vmem:[%s1657_s3 + $0x20] sm:$0xf]  ;;  %v1484_v3 = vor.u32 %v1108_v61, %v991_v60 }
  0x22   : > { %477 = vmatpush.bf16.msra.mxu0 %v1372_v31  ;;  %575 = vmatpush.bf16.msra.mxu3 %v1372_v31  ;;  %v1112_v2 = vld [vmem:[%s1657_s3 + $0x28] sm:$0xf0]  ;;  %v1486_v5 = vld [vmem:[#allocation2] sm:$0xff]  ;;  %v1490_v6 = vor.u32 %v1107_v62, %v993_v0  ;;  %v999_v9 = vld [vmem:[%s1657_s3 + $0x8] sm:$0xf] }
  0x23   : > { %490 = vmatpush.bf16.msra.mxu1 %v1376_v32  ;;  %502 = vmatpush.bf16.msra.mxu2 %v1388_v36  ;;  %v1493_v7 = vor.u32 %v1112_v2, %v1011_v1  ;;  %v1109_v10 = vld [vmem:[%s1657_s3 + $0x10] sm:$0xf0]  ;;  %v345_v13 = vpack.c.bf16 %v1486_v5, %v1486_v5  ;;  %v1583_v39 = vld [vmem:[%s1658_s4] ss:$0 sm:$0xff] }
  0x24   : > { %v1507_v14 = vor.u32 %v1109_v10, %v999_v9  ;;  %v1588_v46 = vld [vmem:[%s1655_s1 + $0x10] sm:$0xff] }
  0x25   : > { %v515_v47 = vld [vmem:[%s1277_s30 + $0x10] sm:$0xff] }
  0x26   : > { %478 = vmatpush.bf16.msra.mxu0 %v1400_v40  ;;  %576 = vmatpush.bf16.msra.mxu3 %v1400_v40  ;;  %v518_v51 = vadd.f32 %v515_v47, %v1588_v46 }
  0x27   : > { %491 = vmatpush.bf16.msra.mxu1 %v1407_v42  ;;  %503 = vmatpush.bf16.msra.mxu2 %v1416_v45 }
  0x2a   : > { %479 = vmatpush.bf16.msra.mxu0 %v1428_v49  ;;  %577 = vmatpush.bf16.msra.mxu3 %v1428_v49 }
  0x2b   : > { %492 = vmatpush.bf16.msra.mxu1 %v1432_v50  ;;  %504 = vmatpush.bf16.msra.mxu2 %v1444_v54 }
  0x2e   : > { %480 = vmatpush.bf16.msra.mxu0 %v1456_v58  ;;  %578 = vmatpush.bf16.msra.mxu3 %v1456_v58 }
  0x2f   : > { %493 = vmatpush.bf16.msra.mxu1 %v1460_v59  ;;  %505 = vmatpush.bf16.msra.mxu2 %v1472_v63 }
  0x32   : > { %481 = vmatpush.bf16.msra.mxu0 %v1484_v3  ;;  %579 = vmatpush.bf16.msra.mxu3 %v1484_v3 }
  0x33   : > { %494 = vmatpush.bf16.msra.mxu1 %v1490_v6  ;;  %506 = vmatpush.bf16.msra.mxu2 %v1493_v7 }
  0x35   : > { %482 = vmatmul.bf16.vlgmr.msra.gmra.mxu0 %v345_v13 }
  0x36   : > { %585 = vmatpush.bf16.msrb.mxu0 %v1302_v8  ;;  %682 = vmatpush.bf16.msrb.mxu3 %v1302_v8 }
  0x37   : > { %598 = vmatpush.bf16.msrb.mxu1 %v1335_v19  ;;  %507 = vmatpush.bf16.msra.mxu2 %v1507_v14 }
  0x38   : > { %495 = vmatmul.bf16.vlgmr.msra.gmra.mxu1 %v345_v13 }
  0x3a   : > { %586 = vmatpush.bf16.msrb.mxu0 %v1315_v12  ;;  %683 = vmatpush.bf16.msrb.mxu3 %v1315_v12 }
  0x3b   : > { %599 = vmatpush.bf16.msrb.mxu1 %v1360_v27  ;;  %669 = vmatpush.bf16.msrb.mxu2 %v1291_v4 }
  0x3c   : > { %508 = vmatmul.bf16.vlgmr.msra.gmra.mxu2 %v345_v13 }
  0x3e   : > { %587 = vmatpush.bf16.msrb.mxu0 %v1348_v23  ;;  %684 = vmatpush.bf16.msrb.mxu3 %v1348_v23 }
  0x3f   : > { %600 = vmatpush.bf16.msrb.mxu1 %v1388_v36  ;;  %670 = vmatpush.bf16.msrb.mxu2 %v1311_v11 }
  0x42   : > { %588 = vmatpush.bf16.msrb.mxu0 %v1376_v32  ;;  %685 = vmatpush.bf16.msrb.mxu3 %v1376_v32 }
  0x43   : > { %601 = vmatpush.bf16.msrb.mxu1 %v1416_v45  ;;  %671 = vmatpush.bf16.msrb.mxu2 %v1338_v20 }
  0x46   : > { %589 = vmatpush.bf16.msrb.mxu0 %v1407_v42  ;;  %686 = vmatpush.bf16.msrb.mxu3 %v1407_v42 }
  0x47   : > { %602 = vmatpush.bf16.msrb.mxu1 %v1444_v54  ;;  %672 = vmatpush.bf16.msrb.mxu2 %v1372_v31 }
  0x4a   : > { %590 = vmatpush.bf16.msrb.mxu0 %v1432_v50  ;;  %687 = vmatpush.bf16.msrb.mxu3 %v1432_v50 }
  0x4b   : > { %603 = vmatpush.bf16.msrb.mxu1 %v1472_v63  ;;  %673 = vmatpush.bf16.msrb.mxu2 %v1400_v40 }
  0x4e   : > { %591 = vmatpush.bf16.msrb.mxu0 %v1460_v59  ;;  %688 = vmatpush.bf16.msrb.mxu3 %v1460_v59 }
  0x4f   : > { %604 = vmatpush.bf16.msrb.mxu1 %v1493_v7  ;;  %674 = vmatpush.bf16.msrb.mxu2 %v1428_v49 }
  0x52   : > { %592 = vmatpush.bf16.msrb.mxu0 %v1490_v6  ;;  %689 = vmatpush.bf16.msrb.mxu3 %v1490_v6 }
  0x53   : > { %605 = vmatpush.bf16.msrb.mxu1 %v1507_v14  ;;  %675 = vmatpush.bf16.msrb.mxu2 %v1456_v58 }
  0x56   : > { %695 = vmatpush.bf16.msra.mxu0 %v1335_v19 }
  0x57   : > { %766 = vmatpush.bf16.msra.mxu1 %v1291_v4  ;;  %676 = vmatpush.bf16.msrb.mxu2 %v1484_v3  ;;  %v1569_v4 = vld [vmem:[%s1655_s1] sm:$0xff] }
  0x5a   : > { %696 = vmatpush.bf16.msra.mxu0 %v1360_v27 }
  0x5b   : > { %779 = vmatpush.bf16.msra.mxu2 %v1302_v8  ;;  %767 = vmatpush.bf16.msra.mxu1 %v1311_v11  ;;  %v513_v8 = vld [vmem:[%s1277_s30] sm:$0xff]  ;;  %v1575_v11 = vld [vmem:[%s1655_s1 + $0x8] sm:$0xff] }
  0x5c   : > { %v516_v15 = vadd.f32 %v513_v8, %v1569_v4  ;;  %v1087_v8 = vld [vmem:[%s1277_s30 + $0x18] sm:$0xff] }
  0x5e   : > { %697 = vmatpush.bf16.msra.mxu0 %v1388_v36 }
  0x5f   : > { %780 = vmatpush.bf16.msra.mxu2 %v1315_v12  ;;  %768 = vmatpush.bf16.msra.mxu1 %v1338_v20  ;;  %v514_v12 = vld [vmem:[%s1277_s30 + $0x8] sm:$0xff] }
  0x60   : > { %v517_v16 = vadd.f32 %v514_v12, %v1575_v11 }
  0x62   : > { %698 = vmatpush.bf16.msra.mxu0 %v1416_v45 }
  0x63   : > { %781 = vmatpush.bf16.msra.mxu2 %v1348_v23  ;;  %769 = vmatpush.bf16.msra.mxu1 %v1372_v31 }
  0x66   : > { %699 = vmatpush.bf16.msra.mxu0 %v1444_v54 }
  0x67   : > { %782 = vmatpush.bf16.msra.mxu2 %v1376_v32  ;;  %770 = vmatpush.bf16.msra.mxu1 %v1400_v40 }
  0x6a   : > { %700 = vmatpush.bf16.msra.mxu0 %v1472_v63 }
  0x6b   : > { %783 = vmatpush.bf16.msra.mxu2 %v1407_v42  ;;  %771 = vmatpush.bf16.msra.mxu1 %v1428_v49 }
  0x6e   : > { %701 = vmatpush.bf16.msra.mxu0 %v1493_v7 }
  0x6f   : > { %784 = vmatpush.bf16.msra.mxu2 %v1432_v50  ;;  %772 = vmatpush.bf16.msra.mxu1 %v1456_v58 }
  0x72   : > { %702 = vmatpush.bf16.msra.mxu0 %v1507_v14 }
  0x73   : > { %785 = vmatpush.bf16.msra.mxu2 %v1460_v59  ;;  %773 = vmatpush.bf16.msra.mxu1 %v1484_v3 }
  0x77   : > { %786 = vmatpush.bf16.msra.mxu2 %v1490_v6 }
  0xb2   : > { %v483_v17 = vpop.f32.mrf.mxu0 }
  0xb3   : > { %v519_v18 = vadd.f32 %v516_v15, %v483_v17 }
  0xb5   : > { %v496_v20 = vpop.f32.mrf.mxu1  ;;  %v1085_v22 = vmul.f32 -1.442695, %v519_v18 }
  0xb6   : > { %v520_v21 = vadd.f32 %v517_v16, %v496_v20 }
  0xb7   : > { %1157 = vpow2.f32 %v1085_v22 }
  0xb8   : > { %v1086_v23 = vmul.f32 -1.442695, %v520_v21 }
  0xba   : > { %1159 = vpow2.f32 %v1086_v23  ;;  %v485_v24 = vpop.f32.mrf.mxu0 }
  0xbd   : > { %v498_v25 = vpop.f32.mrf.mxu1  ;;  %v1158_v26 = vpop.eup %1157 }
  0xbe   : > { %v527_v30 = vadd.f32 1.0, %v1158_v26 }
  0xbf   : > { %v509_v28 = vpop.f32.mrf.mxu2 }
  0xc0   : > { %v1160_v29 = vpop.eup %1159  ;;  %1161 = vrcp.f32 %v527_v30  ;;  %v540_v41 = vand.u32 2147483648, %v527_v30  ;;  %v538_v43 = vand.u32 2147483647, %v527_v30  ;;  %vm534_vm1 = vweird.f32 %v527_v30 }
  0xc1   : > { %v528_v31 = vadd.f32 1.0, %v1160_v29  ;;  %v562_v49 = vadd.f32 %v1583_v39, %v509_v28 }
  0xc2   : > { %v541_v50 = vor.u32 1.1754944e-38, %v540_v41  ;;  %vm539_vm3 = vcmp.eq.f32.partialorder %v538_v43, 8.507059e+37 }
  0xc3   : > { %1163 = vrcp.f32 %v528_v31  ;;  %vm549_vm4 = vweird.f32 %v528_v31  ;;  %v555_v56 = vand.u32 2147483648, %v528_v31  ;;  %v553_v58 = vand.u32 2147483647, %v528_v31 }
  0xc5   : > { %v556_v61 = vor.u32 1.1754944e-38, %v555_v56  ;;  %vm554_vm7 = vcmp.eq.f32.partialorder %v553_v58, 8.507059e+37  ;;  %v1093_v58 = vld [vmem:[%s1277_s30 + $0x30] sm:$0xff] }
  0xc6   : > { %v1162_v33 = vpop.eup %1161 }
  0xc7   : > { %v511_v32 = vpop.f32.mrf.mxu2  ;;  %v530_v35 = vmul.f32 %v1162_v33, %v527_v30  ;;  %vm535_vm0 = vweird.f32 %v1162_v33 }
  0xc8   : > { %vm536_vm2 = vmor %vm534_vm1, %vm535_vm0 }
  0xc9   : > { %v1164_v34 = vpop.eup %1163  ;;  %v531_v38 = vsub.f32 1.0, %v530_v35 }
  0xca   : > { %v545_v37 = vmul.f32 %v1164_v34, %v528_v31  ;;  %vm550_vm5 = vweird.f32 %v1164_v34  ;;  %v1089_v31 = vld [vmem:[%s1277_s30 + $0x28] sm:$0xff] }
  0xcb   : > { %v532_v42 = vmul.f32 %v1162_v33, %v531_v38  ;;  %vm551_vm6 = vmor %vm549_vm4, %vm550_vm5  ;;  %v617_v35 = vadd.f32 %v1089_v31, %v1588_v46 }
  0xcc   : > { %v546_v40 = vsub.f32 1.0, %v545_v37 }
  0xcd   : > { %v533_v48 = vadd.f32 %v1162_v33, %v532_v42 }
  0xce   : > { %v547_v44 = vmul.f32 %v1164_v34, %v546_v40 }
  0xcf   : > { %v537_v52 = vsel %vm536_vm2, %v1162_v33, %v533_v48 }
  0xd0   : > { %v542_v53 = vsel %vm539_vm3, %v541_v50, %v537_v52  ;;  %v548_v55 = vadd.f32 %v1164_v34, %v547_v44 }
  0xd1   : > { %v563_v57 = vmul.f32 %v562_v49, %v542_v53 }
  0xd2   : > { %v552_v60 = vsel %vm551_vm6, %v1164_v34, %v548_v55 }
  0xd3   : > { %v564_v59 = vadd.f32 %v563_v57, %v518_v51  ;;  %v557_v62 = vsel %vm554_vm7, %v556_v61, %v552_v60  ;;  %v712_v61 = vadd.f32 %v1093_v58, %v1569_v4 }
  0xd4   : > { %v566_v0 = vsub.f32 1.0, %v557_v62  ;;  %v568_v3 = vmul.f32 %v557_v62, %v1486_v5  ;;  %v1088_v5 = vld [vmem:[%s1277_s30 + $0x20] sm:$0xff] }
  0xd5   : > { %1165 = vtanh.f32 %v564_v59  ;;  %v616_v10 = vadd.f32 %v1088_v5, %v1575_v11  ;;  %v1094_v59 = vld [vmem:[%s1277_s30 + $0x38] sm:$0xff] }
  0xd6   : > { %v713_v62 = vadd.f32 %v1094_v59, %v1575_v11 }
  0xdb   : > { %v1166_v1 = vpop.eup %1165 }
  0xdc   : > { %v567_v2 = vmul.f32 %v1166_v1, %v566_v0 }
  0xde   : > { %v1594_v6 = vadd.f32 %v568_v3, %v567_v2 }
  0xe0   : > { %570 = vst [vmem:[%s1272_s27] sm:$0xff] %v1594_v6  ;;  %v571_v9 = vpack.c.bf16 %v1594_v6, %v1594_v6 }
  0xe2   : > { %580 = vmatmul.bf16.vlgmr.msra.gmra.mxu3 %v571_v9  ;;  %593 = vmatmul.bf16.vlgmr.msrb.gmra.mxu0 %v571_v9 }
  0xe3   : > { %606 = vmatmul.bf16.vlgmr.msrb.gmra.mxu1 %v571_v9  ;;  %792 = vmatpush.bf16.msra.mxu3 %v1335_v19 }
  0xe7   : > { %793 = vmatpush.bf16.msra.mxu3 %v1360_v27 }
  0xeb   : > { %794 = vmatpush.bf16.msra.mxu3 %v1388_v36  ;;  %v615_v36 = vadd.f32 %v1087_v8, %v1569_v4 }
  0xef   : > { %795 = vmatpush.bf16.msra.mxu3 %v1416_v45 }
  0xf3   : > { %796 = vmatpush.bf16.msra.mxu3 %v1444_v54 }
  0xf7   : > { %797 = vmatpush.bf16.msra.mxu3 %v1472_v63 }
  0xfb   : > { %798 = vmatpush.bf16.msra.mxu3 %v1493_v7 }
  0xff   : > { %799 = vmatpush.bf16.msra.mxu3 %v1507_v14 }
 0x15f   : > { %v594_v13 = vpop.f32.mrf.mxu0 }
 0x160   : > { %v619_v19 = vadd.f32 %v616_v10, %v594_v13  ;;  %v607_v12 = vpop.f32.mrf.mxu1 }
 0x161   : > { %v658_v37 = vadd.f32 %v1583_v39, %v607_v12 }
 0x162   : > { %v1091_v27 = vmul.f32 -1.442695, %v619_v19 }
 0x164   : > { %1167 = vpow2.f32 %v1091_v27 }
 0x165   : > { %v581_v45 = vpop.f32.mrf.mxu3 }
 0x166   : > { %v618_v15 = vadd.f32 %v615_v36, %v581_v45 }
 0x167   : > { %v596_v54 = vpop.f32.mrf.mxu0 }
 0x168   : > { %v1090_v16 = vmul.f32 -1.442695, %v618_v15  ;;  %v609_v63 = vpop.f32.mrf.mxu1 }
 0x16a   : > { %v1168_v17 = vpop.eup %1167  ;;  %1169 = vpow2.f32 %v1090_v16 }
 0x16b   : > { %v627_v7 = vadd.f32 1.0, %v1168_v17 }
 0x16d   : > { %v583_v14 = vpop.f32.mrf.mxu3  ;;  %1171 = vrcp.f32 %v627_v7  ;;  %v654_v42 = vand.u32 2147483648, %v627_v7  ;;  %vm648_vm13 = vweird.f32 %v627_v7  ;;  %v652_v44 = vand.u32 2147483647, %v627_v7 }
 0x16f   : > { %v655_v49 = vor.u32 1.1754944e-38, %v654_v42  ;;  %vm653_vm15 = vcmp.eq.f32.partialorder %v652_v44, 8.507059e+37  ;;  %v1099_v44 = vld [vmem:[%s1277_s30 + $0x48] sm:$0xff] }
 0x170   : > { %v1170_v18 = vpop.eup %1169 }
 0x171   : > { %v626_v20 = vadd.f32 1.0, %v1170_v18  ;;  %v1095_v18 = vld [vmem:[%s1277_s30 + $0x40] sm:$0xff] }
 0x173   : > { %1173 = vrcp.f32 %v626_v20  ;;  %v1172_v21 = vpop.eup %1171  ;;  %v639_v28 = vand.u32 2147483648, %v626_v20  ;;  %v637_v30 = vand.u32 2147483647, %v626_v20  ;;  %vm633_vm9 = vweird.f32 %v626_v20 }
 0x174   : > { %v644_v22 = vmul.f32 %v1172_v21, %v627_v7  ;;  %vm649_vm12 = vweird.f32 %v1172_v21 }
 0x175   : > { %v640_v34 = vor.u32 1.1754944e-38, %v639_v28  ;;  %vm638_vm11 = vcmp.eq.f32.partialorder %v637_v30, 8.507059e+37  ;;  %vm650_vm14 = vmor %vm648_vm13, %vm649_vm12 }
 0x176   : > { %v645_v25 = vsub.f32 1.0, %v644_v22 }
 0x178   : > { %v646_v32 = vmul.f32 %v1172_v21, %v645_v25 }
 0x179   : > { %v1174_v23 = vpop.eup %1173 }
 0x17a   : > { %v629_v24 = vmul.f32 %v1174_v23, %v626_v20  ;;  %vm634_vm8 = vweird.f32 %v1174_v23  ;;  %v647_v41 = vadd.f32 %v1172_v21, %v646_v32 }
 0x17b   : > { %vm635_vm10 = vmor %vm633_vm9, %vm634_vm8 }
 0x17c   : > { %v630_v26 = vsub.f32 1.0, %v629_v24  ;;  %v651_v48 = vsel %vm650_vm14, %v1172_v21, %v647_v41 }
 0x17d   : > { %v656_v50 = vsel %vm653_vm15, %v655_v49, %v651_v48  ;;  %v1100_v49 = vld [vmem:[%s1277_s30 + $0x50] sm:$0xff] }
 0x17e   : > { %v631_v29 = vmul.f32 %v1174_v23, %v630_v26  ;;  %v662_v51 = vsub.f32 1.0, %v656_v50  ;;  %v664_v55 = vmul.f32 %v656_v50, %v1594_v6 }
 0x180   : > { %v632_v33 = vadd.f32 %v1174_v23, %v631_v29 }
 0x182   : > { %v636_v38 = vsel %vm635_vm10, %v1174_v23, %v632_v33  ;;  %v714_v23 = vadd.f32 %v1095_v18, %v1588_v46 }
 0x183   : > { %v641_v40 = vsel %vm638_vm11, %v640_v34, %v636_v38 }
 0x184   : > { %v659_v43 = vmul.f32 %v658_v37, %v641_v40 }
 0x186   : > { %v660_v47 = vadd.f32 %v659_v43, %v617_v35 }
 0x188   : > { %1175 = vtanh.f32 %v660_v47  ;;  %v809_v47 = vadd.f32 %v1099_v44, %v1569_v4 }
 0x18e   : > { %v1176_v52 = vpop.eup %1175 }
 0x18f   : > { %v663_v53 = vmul.f32 %v1176_v52, %v662_v51  ;;  %v810_v52 = vadd.f32 %v1100_v49, %v1575_v11 }
 0x191   : > { %v1616_v56 = vadd.f32 %v664_v55, %v663_v53 }
 0x193   : > { %1092 = vst [vmem:[%s1272_s27 + $0x8] sm:$0xff] %v1616_v56  ;;  %v668_v57 = vpack.c.bf16 %v1616_v56, %v1616_v56 }
 0x195   : > { %677 = vmatmul.bf16.vlgmr.msrb.gmra.mxu2 %v668_v57  ;;  %690 = vmatmul.bf16.vlgmr.msrb.gmra.mxu3 %v668_v57 }
 0x196   : > { %703 = vmatmul.bf16.vlgmr.msra.gmra.mxu0 %v668_v57 }
 0x213   : > { %v704_v60 = vpop.f32.mrf.mxu0 }
 0x214   : > { %v755_v24 = vadd.f32 %v1583_v39, %v704_v60 }
 0x218   : > { %v678_v0 = vpop.f32.mrf.mxu2  ;;  %v691_v1 = vpop.f32.mrf.mxu3 }
 0x219   : > { %v715_v2 = vadd.f32 %v712_v61, %v678_v0  ;;  %v716_v3 = vadd.f32 %v713_v62, %v691_v1 }
 0x21b   : > { %v1096_v6 = vmul.f32 -1.442695, %v715_v2  ;;  %v1097_v9 = vmul.f32 -1.442695, %v716_v3  ;;  %v706_v5 = vpop.f32.mrf.mxu0 }
 0x21d   : > { %1177 = vpow2.f32 %v1096_v6  ;;  %v1101_v6 = vld [vmem:[%s1277_s30 + $0x58] sm:$0xff] }
 0x21e   : > { %1179 = vpow2.f32 %v1097_v9 }
 0x220   : > { %v680_v10 = vpop.f32.mrf.mxu2  ;;  %v693_v13 = vpop.f32.mrf.mxu3 }
 0x223   : > { %v1178_v8 = vpop.eup %1177 }
 0x224   : > { %v1180_v19 = vpop.eup %1179  ;;  %v723_v12 = vadd.f32 1.0, %v1178_v8 }
 0x225   : > { %v724_v27 = vadd.f32 1.0, %v1180_v19  ;;  %v811_v19 = vadd.f32 %v1101_v6, %v1588_v46 }
 0x226   : > { %1181 = vrcp.f32 %v723_v12  ;;  %v736_v63 = vand.u32 2147483648, %v723_v12  ;;  %v734_v14 = vand.u32 2147483647, %v723_v12  ;;  %vm730_vm1 = vweird.f32 %v723_v12 }
 0x227   : > { %1183 = vrcp.f32 %v724_v27  ;;  %v751_v30 = vand.u32 2147483648, %v724_v27  ;;  %vm745_vm5 = vweird.f32 %v724_v27  ;;  %v749_v31 = vand.u32 2147483647, %v724_v27 }
 0x228   : > { %v737_v22 = vor.u32 1.1754944e-38, %v736_v63  ;;  %vm735_vm3 = vcmp.eq.f32.partialorder %v734_v14, 8.507059e+37 }
 0x229   : > { %v752_v34 = vor.u32 1.1754944e-38, %v751_v30  ;;  %vm750_vm7 = vcmp.eq.f32.partialorder %v749_v31, 8.507059e+37 }
 0x22c   : > { %v1182_v36 = vpop.eup %1181 }
 0x22d   : > { %v1184_v45 = vpop.eup %1183  ;;  %v726_v15 = vmul.f32 %v1182_v36, %v723_v12  ;;  %vm731_vm0 = vweird.f32 %v1182_v36 }
 0x22e   : > { %v741_v54 = vmul.f32 %v1184_v45, %v724_v27  ;;  %vm732_vm2 = vmor %vm730_vm1, %vm731_vm0  ;;  %vm746_vm4 = vweird.f32 %v1184_v45 }
 0x22f   : > { %v727_v16 = vsub.f32 1.0, %v726_v15  ;;  %vm747_vm6 = vmor %vm745_vm5, %vm746_vm4 }
 0x230   : > { %v742_v17 = vsub.f32 1.0, %v741_v54 }
 0x231   : > { %v728_v7 = vmul.f32 %v1182_v36, %v727_v16 }
 0x232   : > { %v743_v20 = vmul.f32 %v1184_v45, %v742_v17 }
 0x233   : > { %v729_v21 = vadd.f32 %v1182_v36, %v728_v7 }
 0x234   : > { %v744_v28 = vadd.f32 %v1184_v45, %v743_v20 }
 0x235   : > { %v733_v25 = vsel %vm732_vm2, %v1182_v36, %v729_v21 }
 0x236   : > { %v738_v26 = vsel %vm735_vm3, %v737_v22, %v733_v25  ;;  %v748_v33 = vsel %vm747_vm6, %v1184_v45, %v744_v28 }
 0x237   : > { %v756_v29 = vmul.f32 %v755_v24, %v738_v26  ;;  %v753_v35 = vsel %vm750_vm7, %v752_v34, %v748_v33 }
 0x238   : > { %v759_v37 = vsub.f32 1.0, %v753_v35  ;;  %v761_v41 = vmul.f32 %v753_v35, %v1616_v56 }
 0x239   : > { %v757_v32 = vadd.f32 %v756_v29, %v714_v23 }
 0x23b   : > { %1185 = vtanh.f32 %v757_v32 }
 0x241   : > { %v1186_v38 = vpop.eup %1185 }
 0x242   : > { %v760_v40 = vmul.f32 %v1186_v38, %v759_v37 }
 0x244   : > { %v1630_v42 = vadd.f32 %v761_v41, %v760_v40 }
 0x246   : > { %1098 = vst [vmem:[%s1272_s27 + $0x10] sm:$0xff] %v1630_v42  ;;  %v765_v43 = vpack.c.bf16 %v1630_v42, %v1630_v42 }
 0x248   : > { %774 = vmatmul.bf16.vlgmr.msra.gmra.mxu1 %v765_v43  ;;  %787 = vmatmul.bf16.vlgmr.msra.gmra.mxu2 %v765_v43 }
 0x249   : > { %800 = vmatmul.bf16.vlgmr.msra.gmra.mxu3 %v765_v43 }
 0x2c5   : > { %v775_v48 = vpop.f32.mrf.mxu1 }
 0x2c6   : > { %v812_v50 = vadd.f32 %v809_v47, %v775_v48 }
 0x2c8   : > { %v1102_v51 = vmul.f32 -1.442695, %v812_v50 }
 0x2ca   : > { %1187 = vpow2.f32 %v1102_v51 }
 0x2cb   : > { %v788_v53 = vpop.f32.mrf.mxu2 }
 0x2cc   : > { %v813_v55 = vadd.f32 %v810_v52, %v788_v53  ;;  %v801_v56 = vpop.f32.mrf.mxu3 }
 0x2cd   : > { %v777_v57 = vpop.f32.mrf.mxu1  ;;  %v852_v45 = vadd.f32 %v1583_v39, %v801_v56 }
 0x2ce   : > { %v1103_v58 = vmul.f32 -1.442695, %v813_v55 }
 0x2d0   : > { %v1188_v59 = vpop.eup %1187  ;;  %1189 = vpow2.f32 %v1103_v58 }
 0x2d1   : > { %v820_v60 = vadd.f32 1.0, %v1188_v59 }
 0x2d3   : > { %1191 = vrcp.f32 %v820_v60  ;;  %v790_v61 = vpop.f32.mrf.mxu2  ;;  %v833_v11 = vand.u32 2147483648, %v820_v60  ;;  %v831_v5 = vand.u32 2147483647, %v820_v60  ;;  %vm827_vm9 = vweird.f32 %v820_v60 }
 0x2d4   : > { %v803_v62 = vpop.f32.mrf.mxu3 }
 0x2d5   : > { %v834_v12 = vor.u32 1.1754944e-38, %v833_v11  ;;  %vm832_vm11 = vcmp.eq.f32.partialorder %v831_v5, 8.507059e+37 }
 0x2d6   : > { %v1190_v4 = vpop.eup %1189 }
 0x2d7   : > { %v821_v0 = vadd.f32 1.0, %v1190_v4 }
 0x2d9   : > { %v1192_v1 = vpop.eup %1191  ;;  %1193 = vrcp.f32 %v821_v0  ;;  %v848_v16 = vand.u32 2147483648, %v821_v0  ;;  %v846_v17 = vand.u32 2147483647, %v821_v0  ;;  %vm842_vm13 = vweird.f32 %v821_v0 }
 0x2da   : > { %v823_v2 = vmul.f32 %v1192_v1, %v820_v60  ;;  %vm828_vm8 = vweird.f32 %v1192_v1 }
 0x2db   : > { %vm829_vm10 = vmor %vm827_vm9, %vm828_vm8  ;;  %v849_v18 = vor.u32 1.1754944e-38, %v848_v16  ;;  %vm847_vm15 = vcmp.eq.f32.partialorder %v846_v17, 8.507059e+37 }
 0x2dc   : > { %v824_v3 = vsub.f32 1.0, %v823_v2 }
 0x2de   : > { %v825_v9 = vmul.f32 %v1192_v1, %v824_v3 }
 0x2df   : > { %v1194_v10 = vpop.eup %1193 }
 0x2e0   : > { %v838_v13 = vmul.f32 %v1194_v10, %v821_v0  ;;  %v826_v8 = vadd.f32 %v1192_v1, %v825_v9  ;;  %vm843_vm12 = vweird.f32 %v1194_v10 }
 0x2e1   : > { %vm844_vm14 = vmor %vm842_vm13, %vm843_vm12 }
 0x2e2   : > { %v839_v27 = vsub.f32 1.0, %v838_v13  ;;  %v830_v36 = vsel %vm829_vm10, %v1192_v1, %v826_v8 }
 0x2e3   : > { %v835_v15 = vsel %vm832_vm11, %v834_v12, %v830_v36 }
 0x2e4   : > { %v840_v54 = vmul.f32 %v1194_v10, %v839_v27  ;;  %v853_v63 = vmul.f32 %v852_v45, %v835_v15 }
 0x2e6   : > { %v841_v7 = vadd.f32 %v1194_v10, %v840_v54  ;;  %v854_v14 = vadd.f32 %v853_v63, %v811_v19 }
 0x2e8   : > { %v845_v46 = vsel %vm844_vm14, %v1194_v10, %v841_v7  ;;  %1195 = vtanh.f32 %v854_v14 }
 0x2e9   : > { %v850_v20 = vsel %vm847_vm15, %v849_v18, %v845_v46 }
 0x2ea   : > { %v856_v21 = vsub.f32 1.0, %v850_v20  ;;  %v858_v39 = vmul.f32 %v850_v20, %v1630_v42 }
 0x2ee   : > { %v1196_v22 = vpop.eup %1195 }
 0x2ef   : > { %v857_v23 = vmul.f32 %v1196_v22, %v856_v21 }
 0x2f1   : > { %v859_v24 = vadd.f32 %v858_v39, %v857_v23 }
 0x2f3   : > { %1104 = vst [vmem:[%s1272_s27 + $0x18] sm:$0xff] %v859_v24 }
 0x2f4   : > { %862 = vst [vmem:[#allocation2] sm:$0xff] %v859_v24 }
 0x2f5 PF: > { %s15_s20 = sadd.s32 1, %s1219_s20   ;;  %s1660_s18 = smov %s1215_s19 }
 0x2f6   : > { %p12_p6 = scmp.ge.s32.totalorder %s15_s20, 4   ;;  %s1661_s19 = smov %s1663_s21 }
 0x2f8   :  { %14 = sbr.rel (!%p12_p6) target bundleno = 2 (0x2), region = 86 }

// kernel: encoder_decoder_forward.7
= control target key start
LH: loop header
LB: loop body
LE: loop exit
PB: predicated region body
PF: predicated region fallthrough
CT: control target
= control target key end

     0   :  { %9 = vsyncpa [#allocation4], 0  ;;  %s1249_s15 = smov 0   ;;  %s1251_s16 = smov 0   ;;  %s1477_s0 = inlined_call_operand.vmem [shape: f32[8,8,384], index: 0, kind: input, shape index: {}]   ;;  %s1478_s1 = inlined_call_operand.vmem [shape: f32[8,128], index: 1, kind: input, shape index: {}]   ;;  %s1479_s2 = inlined_call_operand.hbm [shape: bf16[128,384], index: 2, kind: input, shape index: {}]   ;;  %s1480_s3 = inlined_call_operand.vmem [shape: f32[1,128], index: 3, kind: input, shape index: {}]   ;;  %s1481_s4 = inlined_call_operand.vmem [shape: f32[8,8,128], index: 4, kind: output, shape index: {}]  }
   0x1   :  { %s1253_s17 = smov 0  }
   0x2 LB: > { %s929_s18 = sadd.s32 4294967295, %s1219_s17   ;;  %s24_s19 = sadd.s32 1, %s1215_s16  ;;  %s1219_s17 = sphi %s1253_s17, %s15_s17   ;;  %s1215_s16 = sphi %s1251_s16, %s1483_s16   ;;  %s1211_s15 = sphi %s1249_s15, %s1482_s15  }
   0x3   : > { %p25_p0 = scmp.ge.s32.totalorder %s24_s19, 2  ;;  %p931_p1 = scmp.ge.s32.totalorder %s1219_s17, 1 }
   0x4   : > { %p156_p2 = scmp.lt.s32.totalorder %s1219_s17, 3  ;;  %p1093_p4 = scmp.eq.s32.totalorder %s929_s18, 0 }
   0x5   : > { %s1485_s19 = smov (%p25_p0, %s24_s19), 0  ;;  %s174_s22 = sshll.u32 %s1479_s2, 4  ;;  %s175_s22 = int_to_ptr.hbm [resolvable:$true] %s174_s22 }
   0x6   : > { %p157_p3 = pnand %p931_p1, %p156_p2  ;;  %s1221_s23 = smov [#allocation3]  }
   0x7   : > { %s176_s24 = sshll.u32 %s1221_s23, 4  ;;  %s1222_s25 = smov 192   ;;  %s177_s24 = int_to_ptr.vmem [resolvable:$true] %s176_s24 }
   0x8   : > { %p1089_p5 = pneg %p157_p3  ;;  %s1223_s26 = smov 12  }
   0x9   : > { %209 = sbr.rel (%p157_p3) target bundleno = 762 (0x2fa), region = 36 }
   0xa   : > { %p1090_p6 = pnand %p1093_p4, %p1089_p5 }
   0xc   : > { %1092 = dma.hbm_to_vmem [thread:$0]  (!%p1090_p6), %s175_s22, 3072, %s177_s24, [#allocation4], %s1222_s25, %s1222_s25, %s1223_s26  }
   0xe   : > { %1206 = dma.done.wait (%p1093_p4), [#allocation4], 3072  }
   0xf   : > { %1208 = vsyncadd (%p1093_p4), [#allocation4], 4294964224  ;;  %s937_s27 = sshll.u32 %s1211_s15, 2  ;;  %p941_p8 = scmp.ne.s32.totalorder %s1211_s15, 0 }
  0x10   : > { %p249_p7 = scmp.lt.s32.totalorder %s937_s27, 7 }
  0x11   : > { %275 = sbr.rel (%p941_p8) target bundleno = 24 (0x18), region = 44 }
  0x12   : > { %s1487_s27 = smov (!%p249_p7, %s937_s27), 7 }
  0x13   : > { %s1084_s28 = smul.u32 24, %s1487_s27  ;;  %s940_s29 = sshll.u32 %s1487_s27, 3 }
  0x14   : > { %s1277_s6 = scalar_lea.vmem %s1481_s4, %s940_s29 }
  0x15   : > { %s1282_s9 = scalar_lea.vmem %s1477_s0, %s1084_s28 }
  0x16   : > { %v276_v0 = vld [vmem:[%s1478_s1] sm:$0xff] }
  0x17   : > { %277 = vst [vmem:[#allocation2] sm:$0xff] %v276_v0 }
  0x18 PF: > { %v1028_v1 = vld [vmem:[#allocation3 + $0xa8] sm:$0xf]  ;;  %v1082_v2 = vld [vmem:[#allocation3 + $0xb0] sm:$0xf0]  ;;  %v1081_v3 = vld [vmem:[#allocation3 + $0xac] sm:$0xf] }
  0x19   : > { %v1288_v4 = vor.u32 %v1082_v2, %v1028_v1  ;;  %v1030_v5 = vld [vmem:[#allocation3 + $0xb4] sm:$0xf0]  ;;  %v1016_v6 = vld [vmem:[#allocation3 + $0x90] sm:$0xf]  ;;  %v1079_v7 = vld [vmem:[#allocation3 + $0x98] sm:$0xf0] }
  0x1a   : > { %v1290_v8 = vor.u32 %v1081_v3, %v1030_v5  ;;  %v1078_v9 = vld [vmem:[#allocation3 + $0x94] sm:$0xf]  ;;  %v1018_v10 = vld [vmem:[#allocation3 + $0x9c] sm:$0xf0]  ;;  %v1293_v11 = vor.u32 %v1079_v7, %v1016_v6  ;;  %v1004_v13 = vld [vmem:[#allocation3 + $0x78] sm:$0xf] }
  0x1b   : > { %441 = vmatpush.bf16.msra.mxu0 %v1288_v4  ;;  %536 = vmatpush.bf16.msra.mxu3 %v1288_v4  ;;  %v1297_v12 = vor.u32 %v1078_v9, %v1018_v10  ;;  %v1076_v14 = vld [vmem:[#allocation3 + $0x80] sm:$0xf0]  ;;  %v1075_v15 = vld [vmem:[#allocation3 + $0x7c] sm:$0xf]  ;;  %v1006_v16 = vld [vmem:[#allocation3 + $0x84] sm:$0xf0] }
  0x1c   : > { %454 = vmatpush.bf16.msra.mxu1 %v1290_v8  ;;  %v1036_v17 = vld [vmem:[#allocation3 + $0xb0] sm:$0xf]  ;;  %v1083_v18 = vld [vmem:[#allocation3 + $0xb8] sm:$0xf0]  ;;  %v1302_v20 = vor.u32 %v1076_v14, %v1004_v13  ;;  %v1024_v21 = vld [vmem:[#allocation3 + $0x98] sm:$0xf]  ;;  %v1306_v23 = vor.u32 %v1075_v15, %v1006_v16 }
  0x1d   : > { %v1299_v19 = vor.u32 %v1083_v18, %v1036_v17  ;;  %v1080_v22 = vld [vmem:[#allocation3 + $0xa0] sm:$0xf0]  ;;  %v992_v24 = vld [vmem:[#allocation3 + $0x60] sm:$0xf]  ;;  %v1073_v25 = vld [vmem:[#allocation3 + $0x68] sm:$0xf0] }
  0x1e   : > { %v1072_v26 = vld [vmem:[#allocation3 + $0x64] sm:$0xf]  ;;  %v1309_v27 = vor.u32 %v1080_v22, %v1024_v21  ;;  %v994_v28 = vld [vmem:[#allocation3 + $0x6c] sm:$0xf0]  ;;  %v1012_v29 = vld [vmem:[#allocation3 + $0x80] sm:$0xf]  ;;  %v1312_v31 = vor.u32 %v1073_v25, %v992_v24 }
  0x1f   : > { %442 = vmatpush.bf16.msra.mxu0 %v1293_v11  ;;  %537 = vmatpush.bf16.msra.mxu3 %v1293_v11  ;;  %v1077_v30 = vld [vmem:[#allocation3 + $0x88] sm:$0xf0]  ;;  %v1316_v32 = vor.u32 %v1072_v26, %v994_v28  ;;  %v980_v33 = vld [vmem:[#allocation3 + $0x48] sm:$0xf]  ;;  %v1070_v34 = vld [vmem:[#allocation3 + $0x50] sm:$0xf0] }
  0x20   : > { %455 = vmatpush.bf16.msra.mxu1 %v1297_v12  ;;  %467 = vmatpush.bf16.msra.mxu2 %v1299_v19  ;;  %v1069_v35 = vld [vmem:[#allocation3 + $0x4c] sm:$0xf]  ;;  %v1319_v36 = vor.u32 %v1077_v30, %v1012_v29  ;;  %v982_v37 = vld [vmem:[#allocation3 + $0x54] sm:$0xf0]  ;;  %v1000_v38 = vld [vmem:[#allocation3 + $0x68] sm:$0xf]  ;;  %v1322_v40 = vor.u32 %v1070_v34, %v980_v33 }
  0x21   : > { %v1074_v39 = vld [vmem:[#allocation3 + $0x70] sm:$0xf0]  ;;  %v968_v41 = vld [vmem:[#allocation3 + $0x30] sm:$0xf]  ;;  %v1326_v42 = vor.u32 %v1069_v35, %v982_v37  ;;  %v1067_v43 = vld [vmem:[#allocation3 + $0x38] sm:$0xf0] }
  0x22   : > { %v1066_v44 = vld [vmem:[#allocation3 + $0x34] sm:$0xf]  ;;  %v1329_v45 = vor.u32 %v1074_v39, %v1000_v38  ;;  %v970_v46 = vld [vmem:[#allocation3 + $0x3c] sm:$0xf0]  ;;  %v988_v47 = vld [vmem:[#allocation3 + $0x50] sm:$0xf]  ;;  %v1332_v49 = vor.u32 %v1067_v43, %v968_v41 }
  0x23   : > { %443 = vmatpush.bf16.msra.mxu0 %v1302_v20  ;;  %538 = vmatpush.bf16.msra.mxu3 %v1302_v20  ;;  %v1071_v48 = vld [vmem:[#allocation3 + $0x58] sm:$0xf0]  ;;  %v1336_v50 = vor.u32 %v1066_v44, %v970_v46  ;;  %v956_v51 = vld [vmem:[#allocation3 + $0x18] sm:$0xf]  ;;  %v1064_v52 = vld [vmem:[#allocation3 + $0x20] sm:$0xf0] }
  0x24   : > { %456 = vmatpush.bf16.msra.mxu1 %v1306_v23  ;;  %468 = vmatpush.bf16.msra.mxu2 %v1309_v27  ;;  %v1063_v53 = vld [vmem:[#allocation3 + $0x1c] sm:$0xf]  ;;  %v1339_v54 = vor.u32 %v1071_v48, %v988_v47  ;;  %v958_v55 = vld [vmem:[#allocation3 + $0x24] sm:$0xf0]  ;;  %v976_v56 = vld [vmem:[#allocation3 + $0x38] sm:$0xf]  ;;  %v1342_v58 = vor.u32 %v1064_v52, %v956_v51 }
  0x25   : > { %v1068_v57 = vld [vmem:[#allocation3 + $0x40] sm:$0xf0]  ;;  %v1346_v59 = vor.u32 %v1063_v53, %v958_v55  ;;  %v944_v60 = vld [vmem:[#allocation3] sm:$0xf]  ;;  %v1061_v61 = vld [vmem:[#allocation3 + $0x8] sm:$0xf0] }
  0x26   : > { %v1060_v62 = vld [vmem:[#allocation3 + $0x4] sm:$0xf]  ;;  %v1349_v63 = vor.u32 %v1068_v57, %v976_v56  ;;  %v946_v0 = vld [vmem:[#allocation3 + $0xc] sm:$0xf0]  ;;  %v964_v1 = vld [vmem:[#allocation3 + $0x20] sm:$0xf]  ;;  %v1352_v3 = vor.u32 %v1061_v61, %v944_v60 }
  0x27   : > { %444 = vmatpush.bf16.msra.mxu0 %v1312_v31  ;;  %539 = vmatpush.bf16.msra.mxu3 %v1312_v31  ;;  %v1065_v2 = vld [vmem:[#allocation3 + $0x28] sm:$0xf0]  ;;  %v1354_v5 = vld [vmem:[#allocation2] sm:$0xff]  ;;  %v1358_v6 = vor.u32 %v1060_v62, %v946_v0  ;;  %v952_v9 = vld [vmem:[#allocation3 + $0x8] sm:$0xf] }
  0x28   : > { %457 = vmatpush.bf16.msra.mxu1 %v1316_v32  ;;  %469 = vmatpush.bf16.msra.mxu2 %v1319_v36  ;;  %v1361_v7 = vor.u32 %v1065_v2, %v964_v1  ;;  %v1062_v10 = vld [vmem:[#allocation3 + $0x10] sm:$0xf0]  ;;  %v312_v13 = vpack.c.bf16 %v1354_v5, %v1354_v5  ;;  %v1433_v34 = vld [vmem:[%s1480_s3] ss:$0 sm:$0xff]  ;;  %v482_v46 = vld [vmem:[%s1282_s9 + $0x10] sm:$0xff] }
  0x29   : > { %v1369_v14 = vor.u32 %v1062_v10, %v952_v9  ;;  %v1041_v0 = vld [vmem:[%s1282_s9 + $0x20] sm:$0xff] }
  0x2b   : > { %445 = vmatpush.bf16.msra.mxu0 %v1322_v40  ;;  %540 = vmatpush.bf16.msra.mxu3 %v1322_v40 }
  0x2c   : > { %458 = vmatpush.bf16.msra.mxu1 %v1326_v42  ;;  %470 = vmatpush.bf16.msra.mxu2 %v1329_v45 }
  0x2f   : > { %446 = vmatpush.bf16.msra.mxu0 %v1332_v49  ;;  %541 = vmatpush.bf16.msra.mxu3 %v1332_v49 }
  0x30   : > { %459 = vmatpush.bf16.msra.mxu1 %v1336_v50  ;;  %471 = vmatpush.bf16.msra.mxu2 %v1339_v54 }
  0x33   : > { %447 = vmatpush.bf16.msra.mxu0 %v1342_v58  ;;  %542 = vmatpush.bf16.msra.mxu3 %v1342_v58 }
  0x34   : > { %460 = vmatpush.bf16.msra.mxu1 %v1346_v59  ;;  %472 = vmatpush.bf16.msra.mxu2 %v1349_v63 }
  0x37   : > { %448 = vmatpush.bf16.msra.mxu0 %v1352_v3  ;;  %543 = vmatpush.bf16.msra.mxu3 %v1352_v3 }
  0x38   : > { %461 = vmatpush.bf16.msra.mxu1 %v1358_v6  ;;  %473 = vmatpush.bf16.msra.mxu2 %v1361_v7 }
  0x3a   : > { %449 = vmatmul.bf16.vlgmr.msra.gmra.mxu0 %v312_v13 }
  0x3b   : > { %549 = vmatpush.bf16.msrb.mxu0 %v1290_v8  ;;  %643 = vmatpush.bf16.msrb.mxu3 %v1290_v8 }
  0x3c   : > { %562 = vmatpush.bf16.msrb.mxu1 %v1299_v19  ;;  %474 = vmatpush.bf16.msra.mxu2 %v1369_v14 }
  0x3d   : > { %462 = vmatmul.bf16.vlgmr.msra.gmra.mxu1 %v312_v13 }
  0x3f   : > { %550 = vmatpush.bf16.msrb.mxu0 %v1297_v12  ;;  %644 = vmatpush.bf16.msrb.mxu3 %v1297_v12 }
  0x40   : > { %563 = vmatpush.bf16.msrb.mxu1 %v1309_v27  ;;  %630 = vmatpush.bf16.msrb.mxu2 %v1288_v4 }
  0x41   : > { %475 = vmatmul.bf16.vlgmr.msra.gmra.mxu2 %v312_v13 }
  0x43   : > { %551 = vmatpush.bf16.msrb.mxu0 %v1306_v23  ;;  %645 = vmatpush.bf16.msrb.mxu3 %v1306_v23 }
  0x44   : > { %564 = vmatpush.bf16.msrb.mxu1 %v1319_v36  ;;  %631 = vmatpush.bf16.msrb.mxu2 %v1293_v11 }
  0x47   : > { %552 = vmatpush.bf16.msrb.mxu0 %v1316_v32  ;;  %646 = vmatpush.bf16.msrb.mxu3 %v1316_v32 }
  0x48   : > { %565 = vmatpush.bf16.msrb.mxu1 %v1329_v45  ;;  %632 = vmatpush.bf16.msrb.mxu2 %v1302_v20 }
  0x4b   : > { %553 = vmatpush.bf16.msrb.mxu0 %v1326_v42  ;;  %647 = vmatpush.bf16.msrb.mxu3 %v1326_v42 }
  0x4c   : > { %566 = vmatpush.bf16.msrb.mxu1 %v1339_v54  ;;  %633 = vmatpush.bf16.msrb.mxu2 %v1312_v31 }
  0x4f   : > { %554 = vmatpush.bf16.msrb.mxu0 %v1336_v50  ;;  %648 = vmatpush.bf16.msrb.mxu3 %v1336_v50 }
  0x50   : > { %567 = vmatpush.bf16.msrb.mxu1 %v1349_v63  ;;  %634 = vmatpush.bf16.msrb.mxu2 %v1322_v40 }
  0x53   : > { %555 = vmatpush.bf16.msrb.mxu0 %v1346_v59  ;;  %649 = vmatpush.bf16.msrb.mxu3 %v1346_v59 }
  0x54   : > { %568 = vmatpush.bf16.msrb.mxu1 %v1361_v7  ;;  %635 = vmatpush.bf16.msrb.mxu2 %v1332_v49 }
  0x57   : > { %556 = vmatpush.bf16.msrb.mxu0 %v1358_v6  ;;  %650 = vmatpush.bf16.msrb.mxu3 %v1358_v6 }
  0x58   : > { %569 = vmatpush.bf16.msrb.mxu1 %v1369_v14  ;;  %636 = vmatpush.bf16.msrb.mxu2 %v1342_v58 }
  0x5b   : > { %656 = vmatpush.bf16.msra.mxu0 %v1299_v19 }
  0x5c   : > { %724 = vmatpush.bf16.msra.mxu1 %v1288_v4  ;;  %637 = vmatpush.bf16.msrb.mxu2 %v1352_v3  ;;  %v480_v4 = vld [vmem:[%s1282_s9] sm:$0xff] }
  0x5f   : > { %657 = vmatpush.bf16.msra.mxu0 %v1309_v27 }
  0x60   : > { %737 = vmatpush.bf16.msra.mxu2 %v1290_v8  ;;  %725 = vmatpush.bf16.msra.mxu1 %v1293_v11  ;;  %v481_v8 = vld [vmem:[%s1282_s9 + $0x8] sm:$0xff] }
  0x63   : > { %658 = vmatpush.bf16.msra.mxu0 %v1319_v36 }
  0x64   : > { %738 = vmatpush.bf16.msra.mxu2 %v1297_v12  ;;  %726 = vmatpush.bf16.msra.mxu1 %v1302_v20 }
  0x67   : > { %659 = vmatpush.bf16.msra.mxu0 %v1329_v45 }
  0x68   : > { %739 = vmatpush.bf16.msra.mxu2 %v1306_v23  ;;  %727 = vmatpush.bf16.msra.mxu1 %v1312_v31 }
  0x6b   : > { %660 = vmatpush.bf16.msra.mxu0 %v1339_v54 }
  0x6c   : > { %740 = vmatpush.bf16.msra.mxu2 %v1316_v32  ;;  %728 = vmatpush.bf16.msra.mxu1 %v1322_v40 }
  0x6f   : > { %661 = vmatpush.bf16.msra.mxu0 %v1349_v63 }
  0x70   : > { %741 = vmatpush.bf16.msra.mxu2 %v1326_v42  ;;  %729 = vmatpush.bf16.msra.mxu1 %v1332_v49 }
  0x73   : > { %662 = vmatpush.bf16.msra.mxu0 %v1361_v7 }
  0x74   : > { %742 = vmatpush.bf16.msra.mxu2 %v1336_v50  ;;  %730 = vmatpush.bf16.msra.mxu1 %v1342_v58 }
  0x77   : > { %663 = vmatpush.bf16.msra.mxu0 %v1369_v14 }
  0x78   : > { %743 = vmatpush.bf16.msra.mxu2 %v1346_v59  ;;  %731 = vmatpush.bf16.msra.mxu1 %v1352_v3 }
  0x7c   : > { %744 = vmatpush.bf16.msra.mxu2 %v1358_v6 }
  0xb7   : > { %v450_v11 = vpop.f32.mrf.mxu0 }
  0xb8   : > { %v483_v12 = vadd.f32 %v480_v4, %v450_v11 }
  0xba   : > { %v463_v15 = vpop.f32.mrf.mxu1  ;;  %v1038_v17 = vmul.f32 -1.442695, %v483_v12 }
  0xbb   : > { %v484_v16 = vadd.f32 %v481_v8, %v463_v15 }
  0xbc   : > { %1123 = vpow2.f32 %v1038_v17 }
  0xbd   : > { %v1039_v18 = vmul.f32 -1.442695, %v484_v16 }
  0xbf   : > { %1125 = vpow2.f32 %v1039_v18  ;;  %v452_v20 = vpop.f32.mrf.mxu0 }
  0xc2   : > { %v465_v21 = vpop.f32.mrf.mxu1  ;;  %v1124_v22 = vpop.eup %1123 }
  0xc3   : > { %v491_v25 = vadd.f32 1.0, %v1124_v22 }
  0xc4   : > { %v476_v23 = vpop.f32.mrf.mxu2 }
  0xc5   : > { %v1126_v24 = vpop.eup %1125  ;;  %1127 = vrcp.f32 %v491_v25  ;;  %v504_v37 = vand.u32 2147483648, %v491_v25  ;;  %v502_v39 = vand.u32 2147483647, %v491_v25  ;;  %vm498_vm1 = vweird.f32 %v491_v25 }
  0xc6   : > { %v492_v26 = vadd.f32 1.0, %v1126_v24  ;;  %v526_v42 = vadd.f32 %v1433_v34, %v476_v23 }
  0xc7   : > { %v505_v43 = vor.u32 1.1754944e-38, %v504_v37  ;;  %vm503_vm3 = vcmp.eq.f32.partialorder %v502_v39, 8.507059e+37 }
  0xc8   : > { %1129 = vrcp.f32 %v492_v26  ;;  %vm513_vm4 = vweird.f32 %v492_v26  ;;  %v519_v49 = vand.u32 2147483648, %v492_v26  ;;  %v517_v51 = vand.u32 2147483647, %v492_v26 }
  0xca   : > { %v520_v55 = vor.u32 1.1754944e-38, %v519_v49  ;;  %vm518_vm7 = vcmp.eq.f32.partialorder %v517_v51, 8.507059e+37 }
  0xcb   : > { %v1128_v29 = vpop.eup %1127 }
  0xcc   : > { %v478_v28 = vpop.f32.mrf.mxu2  ;;  %v494_v31 = vmul.f32 %v1128_v29, %v491_v25  ;;  %vm499_vm0 = vweird.f32 %v1128_v29 }
  0xcd   : > { %vm500_vm2 = vmor %vm498_vm1, %vm499_vm0 }
  0xce   : > { %v1130_v30 = vpop.eup %1129  ;;  %v495_v33 = vsub.f32 1.0, %v494_v31 }
  0xcf   : > { %v509_v32 = vmul.f32 %v1130_v30, %v492_v26  ;;  %vm514_vm5 = vweird.f32 %v1130_v30  ;;  %v1042_v26 = vld [vmem:[%s1282_s9 + $0x28] sm:$0xff] }
  0xd0   : > { %v496_v38 = vmul.f32 %v1128_v29, %v495_v33  ;;  %vm515_vm6 = vmor %vm513_vm4, %vm514_vm5 }
  0xd1   : > { %v510_v35 = vsub.f32 1.0, %v509_v32 }
  0xd2   : > { %v497_v41 = vadd.f32 %v1128_v29, %v496_v38 }
  0xd3   : > { %v511_v40 = vmul.f32 %v1130_v30, %v510_v35 }
  0xd4   : > { %v501_v44 = vsel %vm500_vm2, %v1128_v29, %v497_v41 }
  0xd5   : > { %v506_v47 = vsel %vm503_vm3, %v505_v43, %v501_v44  ;;  %v512_v48 = vadd.f32 %v1130_v30, %v511_v40 }
  0xd6   : > { %v527_v50 = vmul.f32 %v526_v42, %v506_v47  ;;  %v1047_v47 = vld [vmem:[%s1282_s9 + $0x38] sm:$0xff] }
  0xd7   : > { %v516_v53 = vsel %vm515_vm6, %v1130_v30, %v512_v48 }
  0xd8   : > { %v528_v52 = vadd.f32 %v527_v50, %v482_v46  ;;  %v521_v56 = vsel %vm518_vm7, %v520_v55, %v516_v53  ;;  %v1046_v46 = vld [vmem:[%s1282_s9 + $0x30] sm:$0xff] }
  0xd9   : > { %v530_v57 = vsub.f32 1.0, %v521_v56  ;;  %v532_v60 = vmul.f32 %v521_v56, %v1354_v5 }
  0xda   : > { %1131 = vtanh.f32 %v528_v52 }
  0xe0   : > { %v1132_v58 = vpop.eup %1131 }
  0xe1   : > { %v531_v59 = vmul.f32 %v1132_v58, %v530_v57 }
  0xe3   : > { %v1438_v61 = vadd.f32 %v532_v60, %v531_v59 }
  0xe5   : > { %534 = vst [vmem:[%s1277_s6] sm:$0xff] %v1438_v61  ;;  %v535_v62 = vpack.c.bf16 %v1438_v61, %v1438_v61 }
  0xe7   : > { %544 = vmatmul.bf16.vlgmr.msra.gmra.mxu3 %v535_v62  ;;  %557 = vmatmul.bf16.vlgmr.msrb.gmra.mxu0 %v535_v62 }
  0xe8   : > { %570 = vmatmul.bf16.vlgmr.msrb.gmra.mxu1 %v535_v62  ;;  %750 = vmatpush.bf16.msra.mxu3 %v1299_v19  ;;  %v1040_v19 = vld [vmem:[%s1282_s9 + $0x18] sm:$0xff] }
  0xec   : > { %751 = vmatpush.bf16.msra.mxu3 %v1309_v27 }
  0xf0   : > { %752 = vmatpush.bf16.msra.mxu3 %v1319_v36 }
  0xf4   : > { %753 = vmatpush.bf16.msra.mxu3 %v1329_v45 }
  0xf8   : > { %754 = vmatpush.bf16.msra.mxu3 %v1339_v54 }
  0xfc   : > { %755 = vmatpush.bf16.msra.mxu3 %v1349_v63 }
 0x100   : > { %756 = vmatpush.bf16.msra.mxu3 %v1361_v7 }
 0x104   : > { %757 = vmatpush.bf16.msra.mxu3 %v1369_v14 }
 0x164   : > { %v558_v1 = vpop.f32.mrf.mxu0 }
 0x165   : > { %v580_v2 = vadd.f32 %v1041_v0, %v558_v1  ;;  %v571_v3 = vpop.f32.mrf.mxu1 }
 0x166   : > { %v619_v23 = vadd.f32 %v1433_v34, %v571_v3 }
 0x167   : > { %v1044_v5 = vmul.f32 -1.442695, %v580_v2 }
 0x169   : > { %1133 = vpow2.f32 %v1044_v5 }
 0x16a   : > { %v545_v27 = vpop.f32.mrf.mxu3 }
 0x16b   : > { %v579_v6 = vadd.f32 %v1040_v19, %v545_v27 }
 0x16c   : > { %v560_v36 = vpop.f32.mrf.mxu0 }
 0x16d   : > { %v1043_v9 = vmul.f32 -1.442695, %v579_v6  ;;  %v573_v45 = vpop.f32.mrf.mxu1 }
 0x16f   : > { %v1134_v10 = vpop.eup %1133  ;;  %1135 = vpow2.f32 %v1043_v9 }
 0x170   : > { %v588_v54 = vadd.f32 1.0, %v1134_v10 }
 0x172   : > { %v547_v63 = vpop.f32.mrf.mxu3  ;;  %1137 = vrcp.f32 %v588_v54  ;;  %v615_v29 = vand.u32 2147483648, %v588_v54  ;;  %vm609_vm13 = vweird.f32 %v588_v54  ;;  %v613_v31 = vand.u32 2147483647, %v588_v54 }
 0x174   : > { %v616_v35 = vor.u32 1.1754944e-38, %v615_v29  ;;  %vm614_vm15 = vcmp.eq.f32.partialorder %v613_v31, 8.507059e+37  ;;  %v1053_v29 = vld [vmem:[%s1282_s9 + $0x50] sm:$0xff] }
 0x175   : > { %v1136_v7 = vpop.eup %1135 }
 0x176   : > { %v587_v13 = vadd.f32 1.0, %v1136_v7 }
 0x178   : > { %1139 = vrcp.f32 %v587_v13  ;;  %v1138_v14 = vpop.eup %1137  ;;  %v600_v16 = vand.u32 2147483648, %v587_v13  ;;  %v598_v18 = vand.u32 2147483647, %v587_v13  ;;  %vm594_vm9 = vweird.f32 %v587_v13 }
 0x179   : > { %v605_v4 = vmul.f32 %v1138_v14, %v588_v54  ;;  %vm610_vm12 = vweird.f32 %v1138_v14 }
 0x17a   : > { %v601_v22 = vor.u32 1.1754944e-38, %v600_v16  ;;  %vm599_vm11 = vcmp.eq.f32.partialorder %v598_v18, 8.507059e+37  ;;  %vm611_vm14 = vmor %vm609_vm13, %vm610_vm12 }
 0x17b   : > { %v606_v12 = vsub.f32 1.0, %v605_v4 }
 0x17d   : > { %v607_v20 = vmul.f32 %v1138_v14, %v606_v12 }
 0x17e   : > { %v1140_v8 = vpop.eup %1139 }
 0x17f   : > { %v590_v11 = vmul.f32 %v1140_v8, %v587_v13  ;;  %vm595_vm8 = vweird.f32 %v1140_v8  ;;  %v608_v28 = vadd.f32 %v1138_v14, %v607_v20  ;;  %v1048_v13 = vld [vmem:[%s1282_s9 + $0x40] sm:$0xff] }
 0x180   : > { %vm596_vm10 = vmor %vm594_vm9, %vm595_vm8 }
 0x181   : > { %v591_v15 = vsub.f32 1.0, %v590_v11  ;;  %v612_v33 = vsel %vm611_vm14, %v1138_v14, %v608_v28 }
 0x182   : > { %v617_v37 = vsel %vm614_vm15, %v616_v35, %v612_v33 }
 0x183   : > { %v592_v17 = vmul.f32 %v1140_v8, %v591_v15  ;;  %v623_v38 = vsub.f32 1.0, %v617_v37  ;;  %v625_v41 = vmul.f32 %v617_v37, %v1438_v61 }
 0x185   : > { %v593_v21 = vadd.f32 %v1140_v8, %v592_v17 }
 0x187   : > { %v597_v24 = vsel %vm596_vm10, %v1140_v8, %v593_v21 }
 0x188   : > { %v602_v25 = vsel %vm599_vm11, %v601_v22, %v597_v24  ;;  %v1052_v24 = vld [vmem:[%s1282_s9 + $0x48] sm:$0xff] }
 0x189   : > { %v620_v30 = vmul.f32 %v619_v23, %v602_v25 }
 0x18b   : > { %v621_v32 = vadd.f32 %v1042_v26, %v620_v30 }
 0x18d   : > { %1141 = vtanh.f32 %v621_v32 }
 0x193   : > { %v1142_v39 = vpop.eup %1141 }
 0x194   : > { %v624_v40 = vmul.f32 %v1142_v39, %v623_v38 }
 0x196   : > { %v626_v42 = vadd.f32 %v625_v41, %v624_v40 }
 0x198   : > { %1045 = vst [vmem:[%s1277_s6 + $0x8] sm:$0xff] %v626_v42  ;;  %v629_v43 = vpack.c.bf16 %v626_v42, %v626_v42 }
 0x19a   : > { %638 = vmatmul.bf16.vlgmr.msrb.gmra.mxu2 %v629_v43  ;;  %651 = vmatmul.bf16.vlgmr.msrb.gmra.mxu3 %v629_v43 }
 0x19b   : > { %664 = vmatmul.bf16.vlgmr.msra.gmra.mxu0 %v629_v43 }
 0x218   : > { %v665_v44 = vpop.f32.mrf.mxu0 }
 0x219   : > { %v713_v10 = vadd.f32 %v1433_v34, %v665_v44 }
 0x21d   : > { %v639_v48 = vpop.f32.mrf.mxu2  ;;  %v652_v49 = vpop.f32.mrf.mxu3 }
 0x21e   : > { %v673_v50 = vadd.f32 %v1046_v46, %v639_v48  ;;  %v674_v51 = vadd.f32 %v1047_v47, %v652_v49 }
 0x220   : > { %v1049_v52 = vmul.f32 -1.442695, %v673_v50  ;;  %v1050_v53 = vmul.f32 -1.442695, %v674_v51  ;;  %v667_v55 = vpop.f32.mrf.mxu0 }
 0x222   : > { %1143 = vpow2.f32 %v1049_v52 }
 0x223   : > { %1145 = vpow2.f32 %v1050_v53 }
 0x225   : > { %v641_v56 = vpop.f32.mrf.mxu2  ;;  %v654_v57 = vpop.f32.mrf.mxu3 }
 0x228   : > { %v1144_v58 = vpop.eup %1143 }
 0x229   : > { %v1146_v59 = vpop.eup %1145  ;;  %v681_v60 = vadd.f32 1.0, %v1144_v58  ;;  %v1054_v58 = vld [vmem:[%s1282_s9 + $0x58] sm:$0xff] }
 0x22a   : > { %v682_v61 = vadd.f32 1.0, %v1146_v59 }
 0x22b   : > { %1147 = vrcp.f32 %v681_v60  ;;  %v694_v5 = vand.u32 2147483648, %v681_v60  ;;  %v692_v6 = vand.u32 2147483647, %v681_v60  ;;  %vm688_vm1 = vweird.f32 %v681_v60 }
 0x22c   : > { %1149 = vrcp.f32 %v682_v61  ;;  %v709_v4 = vand.u32 2147483648, %v682_v61  ;;  %vm703_vm5 = vweird.f32 %v682_v61  ;;  %v707_v8 = vand.u32 2147483647, %v682_v61 }
 0x22d   : > { %v695_v45 = vor.u32 1.1754944e-38, %v694_v5  ;;  %vm693_vm3 = vcmp.eq.f32.partialorder %v692_v6, 8.507059e+37 }
 0x22e   : > { %v710_v15 = vor.u32 1.1754944e-38, %v709_v4  ;;  %vm708_vm7 = vcmp.eq.f32.partialorder %v707_v8, 8.507059e+37 }
 0x231   : > { %v1148_v62 = vpop.eup %1147 }
 0x232   : > { %v1150_v0 = vpop.eup %1149  ;;  %v684_v1 = vmul.f32 %v1148_v62, %v681_v60  ;;  %vm689_vm0 = vweird.f32 %v1148_v62 }
 0x233   : > { %v699_v2 = vmul.f32 %v1150_v0, %v682_v61  ;;  %vm690_vm2 = vmor %vm688_vm1, %vm689_vm0  ;;  %vm704_vm4 = vweird.f32 %v1150_v0 }
 0x234   : > { %v685_v3 = vsub.f32 1.0, %v684_v1  ;;  %vm705_vm6 = vmor %vm703_vm5, %vm704_vm4 }
 0x235   : > { %v700_v19 = vsub.f32 1.0, %v699_v2 }
 0x236   : > { %v686_v27 = vmul.f32 %v1148_v62, %v685_v3 }
 0x237   : > { %v701_v36 = vmul.f32 %v1150_v0, %v700_v19 }
 0x238   : > { %v687_v9 = vadd.f32 %v1148_v62, %v686_v27 }
 0x239   : > { %v702_v7 = vadd.f32 %v1150_v0, %v701_v36 }
 0x23a   : > { %v691_v54 = vsel %vm690_vm2, %v1148_v62, %v687_v9 }
 0x23b   : > { %v696_v63 = vsel %vm693_vm3, %v695_v45, %v691_v54  ;;  %v706_v12 = vsel %vm705_vm6, %v1150_v0, %v702_v7 }
 0x23c   : > { %v714_v14 = vmul.f32 %v713_v10, %v696_v63  ;;  %v711_v16 = vsel %vm708_vm7, %v710_v15, %v706_v12 }
 0x23d   : > { %v717_v17 = vsub.f32 1.0, %v711_v16  ;;  %v719_v21 = vmul.f32 %v711_v16, %v626_v42 }
 0x23e   : > { %v715_v11 = vadd.f32 %v1048_v13, %v714_v14 }
 0x240   : > { %1151 = vtanh.f32 %v715_v11 }
 0x246   : > { %v1152_v18 = vpop.eup %1151 }
 0x247   : > { %v718_v20 = vmul.f32 %v1152_v18, %v717_v17 }
 0x249   : > { %v720_v22 = vadd.f32 %v719_v21, %v718_v20 }
 0x24b   : > { %1051 = vst [vmem:[%s1277_s6 + $0x10] sm:$0xff] %v720_v22  ;;  %v723_v23 = vpack.c.bf16 %v720_v22, %v720_v22 }
 0x24d   : > { %732 = vmatmul.bf16.vlgmr.msra.gmra.mxu1 %v723_v23  ;;  %745 = vmatmul.bf16.vlgmr.msra.gmra.mxu2 %v723_v23 }
 0x24e   : > { %758 = vmatmul.bf16.vlgmr.msra.gmra.mxu3 %v723_v23 }
 0x2ca   : > { %v733_v25 = vpop.f32.mrf.mxu1 }
 0x2cb   : > { %v767_v26 = vadd.f32 %v1052_v24, %v733_v25 }
 0x2cd   : > { %v1055_v28 = vmul.f32 -1.442695, %v767_v26 }
 0x2cf   : > { %1153 = vpow2.f32 %v1055_v28 }
 0x2d0   : > { %v746_v30 = vpop.f32.mrf.mxu2 }
 0x2d1   : > { %v768_v31 = vadd.f32 %v1053_v29, %v746_v30  ;;  %v759_v32 = vpop.f32.mrf.mxu3 }
 0x2d2   : > { %v735_v33 = vpop.f32.mrf.mxu1  ;;  %v807_v57 = vadd.f32 %v1433_v34, %v759_v32 }
 0x2d3   : > { %v1056_v35 = vmul.f32 -1.442695, %v768_v31 }
 0x2d5   : > { %v1154_v37 = vpop.eup %1153  ;;  %1155 = vpow2.f32 %v1056_v35 }
 0x2d6   : > { %v775_v38 = vadd.f32 1.0, %v1154_v37 }
 0x2d8   : > { %1157 = vrcp.f32 %v775_v38  ;;  %v748_v39 = vpop.f32.mrf.mxu2  ;;  %v788_v47 = vand.u32 2147483648, %v775_v38  ;;  %v786_v49 = vand.u32 2147483647, %v775_v38  ;;  %vm782_vm9 = vweird.f32 %v775_v38 }
 0x2d9   : > { %v761_v40 = vpop.f32.mrf.mxu3 }
 0x2da   : > { %v789_v53 = vor.u32 1.1754944e-38, %v788_v47  ;;  %vm787_vm11 = vcmp.eq.f32.partialorder %v786_v49, 8.507059e+37 }
 0x2db   : > { %v1156_v41 = vpop.eup %1155 }
 0x2dc   : > { %v776_v42 = vadd.f32 1.0, %v1156_v41 }
 0x2de   : > { %v1158_v43 = vpop.eup %1157  ;;  %1159 = vrcp.f32 %v776_v42  ;;  %v803_v61 = vand.u32 2147483648, %v776_v42  ;;  %v801_v0 = vand.u32 2147483647, %v776_v42  ;;  %vm797_vm13 = vweird.f32 %v776_v42 }
 0x2df   : > { %v778_v44 = vmul.f32 %v1158_v43, %v775_v38  ;;  %vm783_vm8 = vweird.f32 %v1158_v43 }
 0x2e0   : > { %vm784_vm10 = vmor %vm782_vm9, %vm783_vm8  ;;  %v804_v3 = vor.u32 1.1754944e-38, %v803_v61  ;;  %vm802_vm15 = vcmp.eq.f32.partialorder %v801_v0, 8.507059e+37 }
 0x2e1   : > { %v779_v46 = vsub.f32 1.0, %v778_v44 }
 0x2e3   : > { %v780_v48 = vmul.f32 %v1158_v43, %v779_v46 }
 0x2e4   : > { %v1160_v50 = vpop.eup %1159 }
 0x2e5   : > { %v793_v51 = vmul.f32 %v1160_v50, %v776_v42  ;;  %v781_v52 = vadd.f32 %v1158_v43, %v780_v48  ;;  %vm798_vm12 = vweird.f32 %v1160_v50 }
 0x2e6   : > { %vm799_vm14 = vmor %vm797_vm13, %vm798_vm12 }
 0x2e7   : > { %v794_v55 = vsub.f32 1.0, %v793_v51  ;;  %v785_v56 = vsel %vm784_vm10, %v1158_v43, %v781_v52 }
 0x2e8   : > { %v790_v59 = vsel %vm787_vm11, %v789_v53, %v785_v56 }
 0x2e9   : > { %v795_v60 = vmul.f32 %v1160_v50, %v794_v55  ;;  %v808_v62 = vmul.f32 %v807_v57, %v790_v59 }
 0x2eb   : > { %v796_v1 = vadd.f32 %v1160_v50, %v795_v60  ;;  %v809_v2 = vadd.f32 %v1054_v58, %v808_v62 }
 0x2ed   : > { %v800_v5 = vsel %vm799_vm14, %v1160_v50, %v796_v1  ;;  %1161 = vtanh.f32 %v809_v2 }
 0x2ee   : > { %v805_v19 = vsel %vm802_vm15, %v804_v3, %v800_v5 }
 0x2ef   : > { %v811_v27 = vsub.f32 1.0, %v805_v19  ;;  %v813_v36 = vmul.f32 %v805_v19, %v720_v22 }
 0x2f3   : > { %v1162_v6 = vpop.eup %1161 }
 0x2f4   : > { %v812_v34 = vmul.f32 %v1162_v6, %v811_v27 }
 0x2f6   : > { %v814_v9 = vadd.f32 %v813_v36, %v812_v34 }
 0x2f8   : > { %1057 = vst [vmem:[%s1277_s6 + $0x18] sm:$0xff] %v814_v9 }
 0x2f9   : > { %817 = vst [vmem:[#allocation2] sm:$0xff] %v814_v9 }
 0x2fa PF: > { %s15_s17 = sadd.s32 1, %s1219_s17   ;;  %s1482_s15 = smov %s1215_s16 }
 0x2fb   : > { %p12_p9 = scmp.ge.s32.totalorder %s15_s17, 4   ;;  %s1483_s16 = smov %s1485_s19 }
 0x2fd   :  { %14 = sbr.rel (!%p12_p9) target bundleno = 2 (0x2), region = 84 }
 0x302   :  { %846 = vsyncpa [#allocation4], 1 }
 0x303   :  { %848 = vsyncpa [#allocation4 + $0x1], 1 }

// kernel: encoder_decoder_forward.6
= control target key start
LH: loop header
LB: loop body
LE: loop exit
PB: predicated region body
PF: predicated region fallthrough
CT: control target
= control target key end

     0   :  { %vm99_vm0 = vcmask 130048   ;;  %s543_s1 = inlined_call_operand.vmem [shape: bf16[16,384], index: 1, kind: input, shape index: {}]   ;;  %s544_s0 = inlined_call_operand.vmem [shape: f32[64,16], index: 0, kind: input, shape index: {}]   ;;  %s545_s2 = inlined_call_operand.vmem [shape: f32[1,384], index: 2, kind: input, shape index: {}]   ;;  %s546_s3 = inlined_call_operand.vmem [shape: f32[64,384], index: 3, kind: output, shape index: {}]  }
   0x1   :  { %v336_v0 = vld [vmem:[%s543_s1] sm:$0xf]  ;;  %v359_v1 = vld [vmem:[%s543_s1 + $0x8] sm:$0xf0]  ;;  %v358_v2 = vld [vmem:[%s543_s1 + $0x4] sm:$0xf] }
   0x2   :  { %v337_v3 = vor.u32 %v359_v1, %v336_v0  ;;  %v338_v4 = vld [vmem:[%s543_s1 + $0xc] sm:$0xf0]  ;;  %v344_v5 = vld [vmem:[%s543_s1 + $0x8] sm:$0xf]  ;;  %v360_v6 = vld [vmem:[%s543_s1 + $0x10] sm:$0xf0] }
   0x3   :  { %v341_v7 = vor.u32 %v358_v2, %v338_v4  ;;  %v345_v8 = vor.u32 %v360_v6, %v344_v5  ;;  %v67_v9 = vld [vmem:[%s544_s0] sm:$0xff]  ;;  %v68_v10 = vld [vmem:[%s544_s0 + $0x8] sm:$0xff]  ;;  %v69_v11 = vld [vmem:[%s544_s0 + $0x10] sm:$0xff] }
   0x4   :  { %119 = vmatpush.bf16.msra.mxu0 %v337_v3  ;;  %361 = vmatpush.bf16.msra.mxu3 %v337_v3  ;;  %v75_v12 = vpack.c.bf16 %v68_v10, %v67_v9  ;;  %v70_v13 = vld [vmem:[%s544_s0 + $0x18] sm:$0xff]  ;;  %v71_v15 = vld [vmem:[%s544_s0 + $0x20] sm:$0xff]  ;;  %v72_v16 = vld [vmem:[%s544_s0 + $0x28] sm:$0xff] }
   0x5   :  { %362 = vmatpush.bf16.msra.mxu1 %v341_v7  ;;  %363 = vmatpush.bf16.msra.mxu2 %v345_v8  ;;  %v76_v14 = vpack.c.bf16 %v70_v13, %v69_v11  ;;  %v77_v17 = vpack.c.bf16 %v72_v16, %v71_v15  ;;  %v73_v18 = vld [vmem:[%s544_s0 + $0x30] sm:$0xff]  ;;  %v74_v19 = vld [vmem:[%s544_s0 + $0x38] sm:$0xff]  ;;  %v274_v21 = vld [vmem:[%s545_s2] sm:$0x7] }
   0x6   :  { %v78_v20 = vpack.c.bf16 %v74_v19, %v73_v18  ;;  %v441_v22 = vperm.slane %v274_v21, 0  ;;  %v443_v23 = vperm.slane %v274_v21, 1  ;;  %v453_v28 = vperm.slane %v274_v21, 2 }
   0x7   :  { %346 = vmatmul.msk.bf16.vlgmr.msra.gmra.mxu0 %vm99_vm0, %v75_v12  ;;  %347 = vmatmul.msk.bf16.vlgmr.msra.gmra.mxu3 %vm99_vm0, %v76_v14 }
   0x8   :  { %148 = vmatpush.bf16.msrb.mxu0 %v341_v7  ;;  %351 = vmatmul.msk.bf16.vlgmr.msra.gmra.mxu1 %vm99_vm0, %v76_v14 }
   0x9   :  { %355 = vmatmul.msk.bf16.vlgmr.msra.gmra.mxu2 %vm99_vm0, %v76_v14 }
   0xc   :  { %177 = vmatpush.bf16.msra.mxu0 %v345_v8 }
  0x17   :  { %348 = vmatmul.msk.bf16.gmra.mxu3 %vm99_vm0, %v77_v17  ;;  %350 = vmatmul.msk.bf16.vlgmr.msrb.gmra.mxu0 %vm99_vm0, %v75_v12 }
  0x18   :  { %352 = vmatmul.msk.bf16.gmra.mxu1 %vm99_vm0, %v77_v17 }
  0x19   :  { %356 = vmatmul.msk.bf16.gmra.mxu2 %vm99_vm0, %v77_v17 }
  0x27   :  { %349 = vmatmul.msk.bf16.gmra.mxu3 %vm99_vm0, %v78_v20  ;;  %354 = vmatmul.msk.bf16.vlgmr.msra.gmra.mxu0 %vm99_vm0, %v75_v12 }
  0x28   :  { %353 = vmatmul.msk.bf16.gmra.mxu1 %vm99_vm0, %v78_v20 }
  0x29   :  { %357 = vmatmul.msk.bf16.gmra.mxu2 %vm99_vm0, %v78_v20 }
  0x84   :  { %v121_v24 = vpop.f32.mrf.mxu0 }
  0x85   :  { %v282_v25 = vadd.f32 %v441_v22, %v121_v24  ;;  %v155_v26 = vpop.f32.mrf.mxu1 }
  0x86   :  { %v289_v27 = vadd.f32 %v443_v23, %v155_v26 }
  0x87   :  { %306 = vst [vmem:[%s546_s3] sm:$0xff] %v282_v25 }
  0x88   :  { %313 = vst [vmem:[%s546_s3 + $0x38] sm:$0xff] %v289_v27 }
  0x8a   :  { %v126_v29 = vpop.f32.mrf.mxu3 }
  0x8b   :  { %v288_v30 = vadd.f32 %v441_v22, %v126_v29 }
  0x8c   :  { %v184_v31 = vpop.f32.mrf.mxu2  ;;  %v123_v33 = vpop.f32.mrf.mxu0 }
  0x8d   :  { %v290_v32 = vadd.f32 %v453_v28, %v184_v31  ;;  %312 = vst [vmem:[%s546_s3 + $0x30] sm:$0xff] %v288_v30  ;;  %v285_v34 = vadd.f32 %v441_v22, %v123_v33  ;;  %v157_v35 = vpop.f32.mrf.mxu1 }
  0x8e   :  { %v292_v36 = vadd.f32 %v443_v23, %v157_v35 }
  0x8f   :  { %314 = vst [vmem:[%s546_s3 + $0x40] sm:$0xff] %v290_v32 }
  0x90   :  { %309 = vst [vmem:[%s546_s3 + $0x18] sm:$0xff] %v285_v34 }
  0x91   :  { %316 = vst [vmem:[%s546_s3 + $0x50] sm:$0xff] %v292_v36 }
  0x92   :  { %v128_v37 = vpop.f32.mrf.mxu3 }
  0x93   :  { %v291_v38 = vadd.f32 %v441_v22, %v128_v37 }
  0x94   :  { %v186_v39 = vpop.f32.mrf.mxu2  ;;  %v150_v41 = vpop.f32.mrf.mxu0 }
  0x95   :  { %v293_v40 = vadd.f32 %v453_v28, %v186_v39  ;;  %315 = vst [vmem:[%s546_s3 + $0x48] sm:$0xff] %v291_v38  ;;  %v283_v42 = vadd.f32 %v443_v23, %v150_v41  ;;  %v160_v43 = vpop.f32.mrf.mxu1 }
  0x96   :  { %v295_v44 = vadd.f32 %v443_v23, %v160_v43 }
  0x97   :  { %317 = vst [vmem:[%s546_s3 + $0x58] sm:$0xff] %v293_v40 }
  0x98   :  { %307 = vst [vmem:[%s546_s3 + $0x8] sm:$0xff] %v283_v42 }
  0x99   :  { %319 = vst [vmem:[%s546_s3 + $0x68] sm:$0xff] %v295_v44 }
  0x9a   :  { %v131_v45 = vpop.f32.mrf.mxu3 }
  0x9b   :  { %v294_v46 = vadd.f32 %v441_v22, %v131_v45 }
  0x9c   :  { %v189_v47 = vpop.f32.mrf.mxu2  ;;  %v152_v49 = vpop.f32.mrf.mxu0 }
  0x9d   :  { %v296_v48 = vadd.f32 %v453_v28, %v189_v47  ;;  %318 = vst [vmem:[%s546_s3 + $0x60] sm:$0xff] %v294_v46  ;;  %v286_v50 = vadd.f32 %v443_v23, %v152_v49  ;;  %v162_v51 = vpop.f32.mrf.mxu1 }
  0x9e   :  { %v298_v52 = vadd.f32 %v443_v23, %v162_v51 }
  0x9f   :  { %320 = vst [vmem:[%s546_s3 + $0x70] sm:$0xff] %v296_v48 }
  0xa0   :  { %310 = vst [vmem:[%s546_s3 + $0x20] sm:$0xff] %v286_v50 }
  0xa1   :  { %322 = vst [vmem:[%s546_s3 + $0x80] sm:$0xff] %v298_v52 }
  0xa2   :  { %v133_v53 = vpop.f32.mrf.mxu3 }
  0xa3   :  { %v297_v54 = vadd.f32 %v441_v22, %v133_v53 }
  0xa4   :  { %v191_v55 = vpop.f32.mrf.mxu2  ;;  %v179_v57 = vpop.f32.mrf.mxu0 }
  0xa5   :  { %v299_v56 = vadd.f32 %v453_v28, %v191_v55  ;;  %321 = vst [vmem:[%s546_s3 + $0x78] sm:$0xff] %v297_v54  ;;  %v165_v58 = vpop.f32.mrf.mxu1  ;;  %v284_v59 = vadd.f32 %v453_v28, %v179_v57 }
  0xa6   :  { %v301_v60 = vadd.f32 %v443_v23, %v165_v58 }
  0xa7   :  { %323 = vst [vmem:[%s546_s3 + $0x88] sm:$0xff] %v299_v56 }
  0xa8   :  { %308 = vst [vmem:[%s546_s3 + $0x10] sm:$0xff] %v284_v59 }
  0xa9   :  { %325 = vst [vmem:[%s546_s3 + $0x98] sm:$0xff] %v301_v60 }
  0xaa   :  { %v136_v61 = vpop.f32.mrf.mxu3 }
  0xab   :  { %v300_v62 = vadd.f32 %v441_v22, %v136_v61 }
  0xac   :  { %v194_v63 = vpop.f32.mrf.mxu2  ;;  %v181_v1 = vpop.f32.mrf.mxu0 }
  0xad   :  { %v302_v0 = vadd.f32 %v453_v28, %v194_v63  ;;  %324 = vst [vmem:[%s546_s3 + $0x90] sm:$0xff] %v300_v62  ;;  %v167_v2 = vpop.f32.mrf.mxu1  ;;  %v287_v3 = vadd.f32 %v453_v28, %v181_v1 }
  0xae   :  { %v304_v4 = vadd.f32 %v443_v23, %v167_v2 }
  0xaf   :  { %326 = vst [vmem:[%s546_s3 + $0xa0] sm:$0xff] %v302_v0 }
  0xb0   :  { %311 = vst [vmem:[%s546_s3 + $0x28] sm:$0xff] %v287_v3 }
  0xb1   :  { %328 = vst [vmem:[%s546_s3 + $0xb0] sm:$0xff] %v304_v4 }
  0xb2   :  { %v138_v5 = vpop.f32.mrf.mxu3 }
  0xb3   :  { %v303_v6 = vadd.f32 %v441_v22, %v138_v5 }
  0xb4   :  { %v196_v7 = vpop.f32.mrf.mxu2 }
  0xb5   :  { %v305_v8 = vadd.f32 %v453_v28, %v196_v7  ;;  %327 = vst [vmem:[%s546_s3 + $0xa8] sm:$0xff] %v303_v6 }
  0xb7   :  { %329 = vst [vmem:[%s546_s3 + $0xb8] sm:$0xff] %v305_v8 }

// kernel: encoder_decoder_forward.11
= control target key start
LH: loop header
LB: loop body
LE: loop exit
PB: predicated region body
PF: predicated region fallthrough
CT: control target
= control target key end

     0   :  { %s1114_s1 = inlined_call_operand.vmem [shape: bf16[128,512], index: 1, kind: input, shape index: {}]   ;;  %s1115_s0 = inlined_call_operand.vmem [shape: f32[64,128], index: 0, kind: input, shape index: {}]   ;;  %s1116_s2 = inlined_call_operand.vmem [shape: f32[1,512], index: 2, kind: input, shape index: {}]   ;;  %s1117_s3 = inlined_call_operand.vmem [shape: f32[64,512], index: 3, kind: output, shape index: {}]  }
   0x1   :  { %v693_v0 = vld [vmem:[%s1114_s1 + $0xe0] sm:$0xf]  ;;  %v737_v1 = vld [vmem:[%s1114_s1 + $0xec] sm:$0xf0]  ;;  %v735_v2 = vld [vmem:[%s1114_s1 + $0xe4] sm:$0xf] }
   0x2   :  { %v694_v3 = vor.u32 %v737_v1, %v693_v0  ;;  %v695_v4 = vld [vmem:[%s1114_s1 + $0xf0] sm:$0xf0]  ;;  %v701_v5 = vld [vmem:[%s1114_s1 + $0xe8] sm:$0xf]  ;;  %v738_v6 = vld [vmem:[%s1114_s1 + $0xf4] sm:$0xf0] }
   0x3   :  { %v698_v7 = vor.u32 %v735_v2, %v695_v4  ;;  %v702_v8 = vor.u32 %v738_v6, %v701_v5  ;;  %v736_v9 = vld [vmem:[%s1114_s1 + $0xec] sm:$0xf]  ;;  %v703_v10 = vld [vmem:[%s1114_s1 + $0xf8] sm:$0xf0]  ;;  %v677_v11 = vld [vmem:[%s1114_s1 + $0xc0] sm:$0xf] }
   0x4   :  { %286 = vmatpush.bf16.msra.mxu0 %v694_v3  ;;  %v706_v12 = vor.u32 %v736_v9, %v703_v10  ;;  %v733_v13 = vld [vmem:[%s1114_s1 + $0xcc] sm:$0xf0]  ;;  %v731_v14 = vld [vmem:[%s1114_s1 + $0xc4] sm:$0xf]  ;;  %v679_v15 = vld [vmem:[%s1114_s1 + $0xd0] sm:$0xf0] }
   0x5   :  { %315 = vmatpush.bf16.msra.mxu1 %v698_v7  ;;  %344 = vmatpush.bf16.msra.mxu2 %v702_v8  ;;  %v678_v16 = vor.u32 %v733_v13, %v677_v11  ;;  %v682_v17 = vor.u32 %v731_v14, %v679_v15  ;;  %v685_v18 = vld [vmem:[%s1114_s1 + $0xc8] sm:$0xf]  ;;  %v734_v19 = vld [vmem:[%s1114_s1 + $0xd4] sm:$0xf0]  ;;  %v732_v20 = vld [vmem:[%s1114_s1 + $0xcc] sm:$0xf] }
   0x6   :  { %373 = vmatpush.bf16.msra.mxu3 %v706_v12  ;;  %v686_v21 = vor.u32 %v734_v19, %v685_v18  ;;  %v687_v22 = vld [vmem:[%s1114_s1 + $0xd8] sm:$0xf0]  ;;  %v661_v23 = vld [vmem:[%s1114_s1 + $0xa0] sm:$0xf]  ;;  %v729_v24 = vld [vmem:[%s1114_s1 + $0xac] sm:$0xf0] }
   0x7   :  { %v690_v25 = vor.u32 %v732_v20, %v687_v22  ;;  %v727_v26 = vld [vmem:[%s1114_s1 + $0xa4] sm:$0xf]  ;;  %v663_v27 = vld [vmem:[%s1114_s1 + $0xb0] sm:$0xf0]  ;;  %v669_v28 = vld [vmem:[%s1114_s1 + $0xa8] sm:$0xf]  ;;  %v662_v29 = vor.u32 %v729_v24, %v661_v23 }
   0x8   :  { %287 = vmatpush.bf16.msra.mxu0 %v678_v16  ;;  %v730_v30 = vld [vmem:[%s1114_s1 + $0xb4] sm:$0xf0]  ;;  %v728_v31 = vld [vmem:[%s1114_s1 + $0xac] sm:$0xf]  ;;  %v671_v32 = vld [vmem:[%s1114_s1 + $0xb8] sm:$0xf0]  ;;  %v666_v33 = vor.u32 %v727_v26, %v663_v27 }
   0x9   :  { %316 = vmatpush.bf16.msra.mxu1 %v682_v17  ;;  %345 = vmatpush.bf16.msra.mxu2 %v686_v21  ;;  %v670_v34 = vor.u32 %v730_v30, %v669_v28  ;;  %v645_v35 = vld [vmem:[%s1114_s1 + $0x80] sm:$0xf]  ;;  %v725_v36 = vld [vmem:[%s1114_s1 + $0x8c] sm:$0xf0]  ;;  %v723_v37 = vld [vmem:[%s1114_s1 + $0x84] sm:$0xf]  ;;  %v674_v38 = vor.u32 %v728_v31, %v671_v32 }
   0xa   :  { %374 = vmatpush.bf16.msra.mxu3 %v690_v25  ;;  %v647_v39 = vld [vmem:[%s1114_s1 + $0x90] sm:$0xf0]  ;;  %v653_v40 = vld [vmem:[%s1114_s1 + $0x88] sm:$0xf]  ;;  %v726_v41 = vld [vmem:[%s1114_s1 + $0x94] sm:$0xf0]  ;;  %v646_v44 = vor.u32 %v725_v36, %v645_v35 }
   0xb   :  { %v724_v42 = vld [vmem:[%s1114_s1 + $0x8c] sm:$0xf]  ;;  %v655_v43 = vld [vmem:[%s1114_s1 + $0x98] sm:$0xf0]  ;;  %v650_v45 = vor.u32 %v723_v37, %v647_v39  ;;  %v654_v46 = vor.u32 %v726_v41, %v653_v40  ;;  %v629_v47 = vld [vmem:[%s1114_s1 + $0x60] sm:$0xf] }
   0xc   :  { %288 = vmatpush.bf16.msra.mxu0 %v662_v29  ;;  %v721_v48 = vld [vmem:[%s1114_s1 + $0x6c] sm:$0xf0]  ;;  %v719_v49 = vld [vmem:[%s1114_s1 + $0x64] sm:$0xf]  ;;  %v658_v50 = vor.u32 %v724_v42, %v655_v43  ;;  %v631_v51 = vld [vmem:[%s1114_s1 + $0x70] sm:$0xf0] }
   0xd   :  { %317 = vmatpush.bf16.msra.mxu1 %v666_v33  ;;  %346 = vmatpush.bf16.msra.mxu2 %v670_v34  ;;  %v637_v52 = vld [vmem:[%s1114_s1 + $0x68] sm:$0xf]  ;;  %v722_v53 = vld [vmem:[%s1114_s1 + $0x74] sm:$0xf0]  ;;  %v720_v54 = vld [vmem:[%s1114_s1 + $0x6c] sm:$0xf]  ;;  %v630_v56 = vor.u32 %v721_v48, %v629_v47  ;;  %v634_v57 = vor.u32 %v719_v49, %v631_v51 }
   0xe   :  { %375 = vmatpush.bf16.msra.mxu3 %v674_v38  ;;  %v639_v55 = vld [vmem:[%s1114_s1 + $0x78] sm:$0xf0]  ;;  %v638_v58 = vor.u32 %v722_v53, %v637_v52  ;;  %v613_v59 = vld [vmem:[%s1114_s1 + $0x40] sm:$0xf]  ;;  %v717_v60 = vld [vmem:[%s1114_s1 + $0x4c] sm:$0xf0] }
   0xf   :  { %v715_v61 = vld [vmem:[%s1114_s1 + $0x44] sm:$0xf]  ;;  %v642_v62 = vor.u32 %v720_v54, %v639_v55  ;;  %v615_v63 = vld [vmem:[%s1114_s1 + $0x50] sm:$0xf0]  ;;  %v621_v0 = vld [vmem:[%s1114_s1 + $0x48] sm:$0xf]  ;;  %v614_v4 = vor.u32 %v717_v60, %v613_v59 }
  0x10   :  { %289 = vmatpush.bf16.msra.mxu0 %v646_v44  ;;  %v718_v1 = vld [vmem:[%s1114_s1 + $0x54] sm:$0xf0]  ;;  %v716_v2 = vld [vmem:[%s1114_s1 + $0x4c] sm:$0xf]  ;;  %v623_v3 = vld [vmem:[%s1114_s1 + $0x58] sm:$0xf0]  ;;  %v618_v5 = vor.u32 %v715_v61, %v615_v63 }
  0x11   :  { %318 = vmatpush.bf16.msra.mxu1 %v650_v45  ;;  %347 = vmatpush.bf16.msra.mxu2 %v654_v46  ;;  %v622_v6 = vor.u32 %v718_v1, %v621_v0  ;;  %v597_v7 = vld [vmem:[%s1114_s1 + $0x20] sm:$0xf]  ;;  %v713_v8 = vld [vmem:[%s1114_s1 + $0x2c] sm:$0xf0]  ;;  %v711_v9 = vld [vmem:[%s1114_s1 + $0x24] sm:$0xf]  ;;  %v626_v10 = vor.u32 %v716_v2, %v623_v3 }
  0x12   :  { %376 = vmatpush.bf16.msra.mxu3 %v658_v50  ;;  %v599_v11 = vld [vmem:[%s1114_s1 + $0x30] sm:$0xf0]  ;;  %v605_v12 = vld [vmem:[%s1114_s1 + $0x28] sm:$0xf]  ;;  %v714_v13 = vld [vmem:[%s1114_s1 + $0x34] sm:$0xf0]  ;;  %v598_v16 = vor.u32 %v713_v8, %v597_v7 }
  0x13   :  { %v712_v14 = vld [vmem:[%s1114_s1 + $0x2c] sm:$0xf]  ;;  %v607_v15 = vld [vmem:[%s1114_s1 + $0x38] sm:$0xf0]  ;;  %v602_v17 = vor.u32 %v711_v9, %v599_v11  ;;  %v606_v18 = vor.u32 %v714_v13, %v605_v12  ;;  %v581_v19 = vld [vmem:[%s1114_s1] sm:$0xf] }
  0x14   :  { %290 = vmatpush.bf16.msra.mxu0 %v630_v56  ;;  %v709_v20 = vld [vmem:[%s1114_s1 + $0xc] sm:$0xf0]  ;;  %v707_v21 = vld [vmem:[%s1114_s1 + $0x4] sm:$0xf]  ;;  %v610_v22 = vor.u32 %v712_v14, %v607_v15  ;;  %v583_v23 = vld [vmem:[%s1114_s1 + $0x10] sm:$0xf0] }
  0x15   :  { %319 = vmatpush.bf16.msra.mxu1 %v634_v57  ;;  %348 = vmatpush.bf16.msra.mxu2 %v638_v58  ;;  %v589_v24 = vld [vmem:[%s1114_s1 + $0x8] sm:$0xf]  ;;  %v710_v25 = vld [vmem:[%s1114_s1 + $0x14] sm:$0xf0]  ;;  %v708_v26 = vld [vmem:[%s1114_s1 + $0xc] sm:$0xf]  ;;  %v582_v28 = vor.u32 %v709_v20, %v581_v19  ;;  %v586_v31 = vor.u32 %v707_v21, %v583_v23 }
  0x16   :  { %377 = vmatpush.bf16.msra.mxu3 %v642_v62  ;;  %v591_v27 = vld [vmem:[%s1114_s1 + $0x18] sm:$0xf0]  ;;  %v82_v29 = vld [vmem:[%s1115_s0] sm:$0xff]  ;;  %v83_v30 = vld [vmem:[%s1115_s0 + $0x8] sm:$0xff]  ;;  %v590_v32 = vor.u32 %v710_v25, %v589_v24 }
  0x17   :  { %v594_v33 = vor.u32 %v708_v26, %v591_v27  ;;  %v90_v34 = vpack.c.bf16 %v83_v30, %v82_v29  ;;  %v84_v35 = vld [vmem:[%s1115_s0 + $0x10] sm:$0xff]  ;;  %v85_v36 = vld [vmem:[%s1115_s0 + $0x18] sm:$0xff]  ;;  %v86_v38 = vld [vmem:[%s1115_s0 + $0x20] sm:$0xff] }
  0x18   :  { %291 = vmatpush.bf16.msra.mxu0 %v614_v4  ;;  %v91_v37 = vpack.c.bf16 %v85_v36, %v84_v35  ;;  %v87_v39 = vld [vmem:[%s1115_s0 + $0x28] sm:$0xff]  ;;  %v88_v41 = vld [vmem:[%s1115_s0 + $0x30] sm:$0xff]  ;;  %v89_v42 = vld [vmem:[%s1115_s0 + $0x38] sm:$0xff] }
  0x19   :  { %320 = vmatpush.bf16.msra.mxu1 %v618_v5  ;;  %349 = vmatpush.bf16.msra.mxu2 %v622_v6  ;;  %v92_v40 = vpack.c.bf16 %v87_v39, %v86_v38  ;;  %v93_v43 = vpack.c.bf16 %v89_v42, %v88_v41  ;;  %v501_v44 = vld [vmem:[%s1116_s2] sm:$0xf] }
  0x1a   :  { %378 = vmatpush.bf16.msra.mxu3 %v626_v10  ;;  %v978_v45 = vperm.slane %v501_v44, 0  ;;  %v980_v46 = vperm.slane %v501_v44, 1  ;;  %v990_v51 = vperm.slane %v501_v44, 2  ;;  %v992_v52 = vperm.slane %v501_v44, 3 }
  0x1c   :  { %292 = vmatpush.bf16.msra.mxu0 %v598_v16 }
  0x1d   :  { %321 = vmatpush.bf16.msra.mxu1 %v602_v17  ;;  %350 = vmatpush.bf16.msra.mxu2 %v606_v18 }
  0x1e   :  { %379 = vmatpush.bf16.msra.mxu3 %v610_v22 }
  0x20   :  { %293 = vmatpush.bf16.msra.mxu0 %v582_v28 }
  0x21   :  { %322 = vmatpush.bf16.msra.mxu1 %v586_v31  ;;  %351 = vmatpush.bf16.msra.mxu2 %v590_v32 }
  0x22   :  { %380 = vmatpush.bf16.msra.mxu3 %v594_v33 }
  0x23   :  { %294 = vmatmul.bf16.vlgmr.msra.gmra.mxu0 %v90_v34 }
  0x24   :  { %323 = vmatmul.bf16.vlgmr.msra.gmra.mxu1 %v90_v34  ;;  %352 = vmatmul.bf16.vlgmr.msra.gmra.mxu2 %v90_v34 }
  0x25   :  { %381 = vmatmul.bf16.vlgmr.msra.gmra.mxu3 %v90_v34 }
  0x33   :  { %299 = vmatmul.bf16.gmra.mxu0 %v91_v37 }
  0x34   :  { %328 = vmatmul.bf16.gmra.mxu1 %v91_v37  ;;  %357 = vmatmul.bf16.gmra.mxu2 %v91_v37 }
  0x35   :  { %386 = vmatmul.bf16.gmra.mxu3 %v91_v37 }
  0x43   :  { %304 = vmatmul.bf16.gmra.mxu0 %v92_v40 }
  0x44   :  { %333 = vmatmul.bf16.gmra.mxu1 %v92_v40  ;;  %362 = vmatmul.bf16.gmra.mxu2 %v92_v40 }
  0x45   :  { %391 = vmatmul.bf16.gmra.mxu3 %v92_v40 }
  0x53   :  { %309 = vmatmul.bf16.gmra.mxu0 %v93_v43 }
  0x54   :  { %338 = vmatmul.bf16.gmra.mxu1 %v93_v43  ;;  %367 = vmatmul.bf16.gmra.mxu2 %v93_v43 }
  0x55   :  { %396 = vmatmul.bf16.gmra.mxu3 %v93_v43 }
  0xa0   :  { %v295_v47 = vpop.f32.mrf.mxu0 }
  0xa1   :  { %v511_v48 = vadd.f32 %v978_v45, %v295_v47  ;;  %v324_v49 = vpop.f32.mrf.mxu1 }
  0xa2   :  { %v512_v50 = vadd.f32 %v980_v46, %v324_v49 }
  0xa3   :  { %543 = vst [vmem:[%s1117_s3] sm:$0xff] %v511_v48 }
  0xa4   :  { %544 = vst [vmem:[%s1117_s3 + $0x8] sm:$0xff] %v512_v50 }
  0xa7   :  { %v353_v53 = vpop.f32.mrf.mxu2 }
  0xa8   :  { %v513_v54 = vadd.f32 %v990_v51, %v353_v53  ;;  %v382_v55 = vpop.f32.mrf.mxu3  ;;  %v297_v56 = vpop.f32.mrf.mxu0 }
  0xa9   :  { %v514_v57 = vadd.f32 %v992_v52, %v382_v55  ;;  %v515_v58 = vadd.f32 %v978_v45, %v297_v56  ;;  %v326_v59 = vpop.f32.mrf.mxu1 }
  0xaa   :  { %545 = vst [vmem:[%s1117_s3 + $0x10] sm:$0xff] %v513_v54  ;;  %v516_v60 = vadd.f32 %v980_v46, %v326_v59 }
  0xab   :  { %546 = vst [vmem:[%s1117_s3 + $0x18] sm:$0xff] %v514_v57 }
  0xac   :  { %547 = vst [vmem:[%s1117_s3 + $0x20] sm:$0xff] %v515_v58 }
  0xad   :  { %548 = vst [vmem:[%s1117_s3 + $0x28] sm:$0xff] %v516_v60 }
  0xaf   :  { %v355_v61 = vpop.f32.mrf.mxu2 }
  0xb0   :  { %v517_v62 = vadd.f32 %v990_v51, %v355_v61  ;;  %v384_v63 = vpop.f32.mrf.mxu3  ;;  %v300_v0 = vpop.f32.mrf.mxu0 }
  0xb1   :  { %v518_v1 = vadd.f32 %v992_v52, %v384_v63  ;;  %v519_v2 = vadd.f32 %v978_v45, %v300_v0  ;;  %v329_v3 = vpop.f32.mrf.mxu1 }
  0xb2   :  { %549 = vst [vmem:[%s1117_s3 + $0x30] sm:$0xff] %v517_v62  ;;  %v520_v4 = vadd.f32 %v980_v46, %v329_v3 }
  0xb3   :  { %550 = vst [vmem:[%s1117_s3 + $0x38] sm:$0xff] %v518_v1 }
  0xb4   :  { %551 = vst [vmem:[%s1117_s3 + $0x40] sm:$0xff] %v519_v2 }
  0xb5   :  { %552 = vst [vmem:[%s1117_s3 + $0x48] sm:$0xff] %v520_v4 }
  0xb7   :  { %v358_v5 = vpop.f32.mrf.mxu2 }
  0xb8   :  { %v521_v6 = vadd.f32 %v990_v51, %v358_v5  ;;  %v387_v7 = vpop.f32.mrf.mxu3  ;;  %v302_v8 = vpop.f32.mrf.mxu0 }
  0xb9   :  { %v522_v9 = vadd.f32 %v992_v52, %v387_v7  ;;  %v523_v10 = vadd.f32 %v978_v45, %v302_v8  ;;  %v331_v11 = vpop.f32.mrf.mxu1 }
  0xba   :  { %553 = vst [vmem:[%s1117_s3 + $0x50] sm:$0xff] %v521_v6  ;;  %v524_v12 = vadd.f32 %v980_v46, %v331_v11 }
  0xbb   :  { %554 = vst [vmem:[%s1117_s3 + $0x58] sm:$0xff] %v522_v9 }
  0xbc   :  { %555 = vst [vmem:[%s1117_s3 + $0x60] sm:$0xff] %v523_v10 }
  0xbd   :  { %556 = vst [vmem:[%s1117_s3 + $0x68] sm:$0xff] %v524_v12 }
  0xbf   :  { %v360_v13 = vpop.f32.mrf.mxu2 }
  0xc0   :  { %v525_v14 = vadd.f32 %v990_v51, %v360_v13  ;;  %v389_v15 = vpop.f32.mrf.mxu3  ;;  %v305_v16 = vpop.f32.mrf.mxu0 }
  0xc1   :  { %v526_v17 = vadd.f32 %v992_v52, %v389_v15  ;;  %v527_v18 = vadd.f32 %v978_v45, %v305_v16  ;;  %v334_v19 = vpop.f32.mrf.mxu1 }
  0xc2   :  { %557 = vst [vmem:[%s1117_s3 + $0x70] sm:$0xff] %v525_v14  ;;  %v528_v20 = vadd.f32 %v980_v46, %v334_v19 }
  0xc3   :  { %558 = vst [vmem:[%s1117_s3 + $0x78] sm:$0xff] %v526_v17 }
  0xc4   :  { %559 = vst [vmem:[%s1117_s3 + $0x80] sm:$0xff] %v527_v18 }
  0xc5   :  { %560 = vst [vmem:[%s1117_s3 + $0x88] sm:$0xff] %v528_v20 }
  0xc7   :  { %v363_v21 = vpop.f32.mrf.mxu2 }
  0xc8   :  { %v529_v22 = vadd.f32 %v990_v51, %v363_v21  ;;  %v392_v23 = vpop.f32.mrf.mxu3  ;;  %v307_v24 = vpop.f32.mrf.mxu0 }
  0xc9   :  { %v530_v25 = vadd.f32 %v992_v52, %v392_v23  ;;  %v531_v26 = vadd.f32 %v978_v45, %v307_v24  ;;  %v336_v27 = vpop.f32.mrf.mxu1 }
  0xca   :  { %561 = vst [vmem:[%s1117_s3 + $0x90] sm:$0xff] %v529_v22  ;;  %v532_v28 = vadd.f32 %v980_v46, %v336_v27 }
  0xcb   :  { %562 = vst [vmem:[%s1117_s3 + $0x98] sm:$0xff] %v530_v25 }
  0xcc   :  { %563 = vst [vmem:[%s1117_s3 + $0xa0] sm:$0xff] %v531_v26 }
  0xcd   :  { %564 = vst [vmem:[%s1117_s3 + $0xa8] sm:$0xff] %v532_v28 }
  0xcf   :  { %v365_v29 = vpop.f32.mrf.mxu2 }
  0xd0   :  { %v533_v30 = vadd.f32 %v990_v51, %v365_v29  ;;  %v394_v31 = vpop.f32.mrf.mxu3  ;;  %v310_v32 = vpop.f32.mrf.mxu0 }
  0xd1   :  { %v534_v33 = vadd.f32 %v992_v52, %v394_v31  ;;  %v535_v34 = vadd.f32 %v978_v45, %v310_v32  ;;  %v339_v35 = vpop.f32.mrf.mxu1 }
  0xd2   :  { %565 = vst [vmem:[%s1117_s3 + $0xb0] sm:$0xff] %v533_v30  ;;  %v536_v36 = vadd.f32 %v980_v46, %v339_v35 }
  0xd3   :  { %566 = vst [vmem:[%s1117_s3 + $0xb8] sm:$0xff] %v534_v33 }
  0xd4   :  { %567 = vst [vmem:[%s1117_s3 + $0xc0] sm:$0xff] %v535_v34 }
  0xd5   :  { %568 = vst [vmem:[%s1117_s3 + $0xc8] sm:$0xff] %v536_v36 }
  0xd7   :  { %v368_v37 = vpop.f32.mrf.mxu2 }
  0xd8   :  { %v537_v38 = vadd.f32 %v990_v51, %v368_v37  ;;  %v397_v39 = vpop.f32.mrf.mxu3  ;;  %v312_v40 = vpop.f32.mrf.mxu0 }
  0xd9   :  { %v538_v41 = vadd.f32 %v992_v52, %v397_v39  ;;  %v539_v42 = vadd.f32 %v978_v45, %v312_v40  ;;  %v341_v43 = vpop.f32.mrf.mxu1 }
  0xda   :  { %569 = vst [vmem:[%s1117_s3 + $0xd0] sm:$0xff] %v537_v38  ;;  %v540_v44 = vadd.f32 %v980_v46, %v341_v43 }
  0xdb   :  { %570 = vst [vmem:[%s1117_s3 + $0xd8] sm:$0xff] %v538_v41 }
  0xdc   :  { %571 = vst [vmem:[%s1117_s3 + $0xe0] sm:$0xff] %v539_v42 }
  0xdd   :  { %572 = vst [vmem:[%s1117_s3 + $0xe8] sm:$0xff] %v540_v44 }
  0xdf   :  { %v370_v45 = vpop.f32.mrf.mxu2 }
  0xe0   :  { %v541_v47 = vadd.f32 %v990_v51, %v370_v45  ;;  %v399_v48 = vpop.f32.mrf.mxu3 }
  0xe1   :  { %v542_v49 = vadd.f32 %v992_v52, %v399_v48 }
  0xe2   :  { %573 = vst [vmem:[%s1117_s3 + $0xf0] sm:$0xff] %v541_v47 }
  0xe3   :  { %574 = vst [vmem:[%s1117_s3 + $0xf8] sm:$0xff] %v542_v49 }

</bundles_post_ra>
